<compile_context>
chip_gen: v6e
topology: v6e:2x2x1
jax: 0.10.0
libtpu: 0.0.40
codegen_flags: <defaults>
</compile_context>

<pallas_src>
import math

import jax
import jax.numpy as jnp
from jax.experimental import pallas as pl
from jax.experimental.pallas import tpu as pltpu


# ------------------------------ kernel ------------------------------------- #
def _l2fm_kernel(x_ref, w1_ref, b1_ref, w2_ref, b2_ref, w3_ref, b3_ref,
                 out_ref):
    tn, z = x_ref.shape

    # ---- Stage 1: linear + UpConvBlock1 (+ BN1), folded into one matmul ----
    x_bf = x_ref[...].astype(jnp.bfloat16)
    p1 = jnp.dot(x_bf, w1_ref[...], preferred_element_type=jnp.float32)
    p1 = jnp.maximum(p1 + b1_ref[...], 0.0)                    # [TN, 4Z]

    # ---- Stage 2: UpConvBlock2 (+ BN2), fully folded into one matmul -------
    # Upsample degeneracy: every conv2 tap sees one of the 4 stage-1 pixels,
    # so conv2 is a linear map [4Z] -> [16Z]; all padding MACs were removed on
    # the host when building w2_ref.
    p2 = jnp.dot(p1.astype(jnp.bfloat16), w2_ref[...],
                 preferred_element_type=jnp.float32)
    p2 = jnp.maximum(p2 + b2_ref[...], 0.0)                    # [TN, 16Z]
    p2b = p2.astype(jnp.bfloat16)                              # cast once

    # ---- Stage 3: ConvBlock via full im2col (one MXU contraction) ----------
    # LHS rows are pixel-major (output pixel, batch); columns are the 9 taps
    # stacked along the contraction dim (K = 9Z).  Out-of-range taps (the
    # conv's zero padding) are explicit bf16 zero blocks.
    zero_blk = jnp.zeros((tn, z), jnp.bfloat16)
    row_blocks = []
    for oy in range(4):
        for ox in range(4):
            cols = []
            for dy in range(3):
                for dx in range(3):
                    iy, ix = oy + dy - 1, ox + dx - 1
                    if 0 <= iy < 4 and 0 <= ix < 4:
                        ip = iy * 4 + ix
                        cols.append(p2b[:, ip * z:(ip + 1) * z])
                    else:
                        cols.append(zero_blk)
            row_blocks.append(jnp.concatenate(cols, axis=1))   # [TN, 9Z]
    lhs = jnp.concatenate(row_blocks, axis=0)                  # [16*TN, 9Z]

    o3 = jnp.dot(lhs, w3_ref[...], preferred_element_type=jnp.float32)
    o3 = o3 + b3_ref[...]                                      # [16*TN, Z]
    o3 = o3 / (1.0 + jnp.exp(-o3))                             # exact swish

    out_ref[...] = o3.reshape(16, tn, z).astype(out_ref.dtype)


# --------------------------- host-side folding ------------------------------ #
def _fold_params(params, z):
    """Fold linear, upsample tap-sums and eval-mode BN into matmul weights."""
    f32 = jnp.float32

    # ---- Stage 1: linear -> (1x1 -> 2x2 upsample) -> conv1 -> BN1 ----------
    wlin = params["wlin"].astype(f32)                 # [Z, Z] (gain pre-folded)
    blin = params["blin"].astype(f32)                 # [1, Z]
    w1, b1 = params["w1"].astype(f32), params["b1"].astype(f32)
    s1, t1 = params["s1"].astype(f32), params["t1"].astype(f32)
    w_cols, b_cols = [], []
    for y in range(2):
        for x in range(2):
            taps = jnp.zeros((z, z), f32)
            for dy in range(3):
                for dx in range(3):
                    iy, ix = y + dy - 1, x + dx - 1
                    if 0 <= iy < 2 and 0 <= ix < 2:
                        taps = taps + w1[dy * 3 + dx]
            w_cols.append((wlin @ taps) * s1)         # s1 scales Cout (last dim)
            b_cols.append((blin @ taps + b1) * s1 + t1)
    w1_eff = jnp.concatenate(w_cols, axis=1).astype(jnp.bfloat16)   # [Z, 4Z]
    b1_eff = jnp.concatenate(b_cols, axis=1).astype(f32)            # [1, 4Z]

    # ---- Stage 2: (2x2 -> 4x4 upsample) -> conv2 -> BN2 --------------------
    # Block (q, op): sum of the conv2 taps of output pixel op whose (padded)
    # input pixel falls in 2x2 quadrant q.  Zero-padding taps contribute
    # nothing, so the fold also removes conv2's padding MACs.
    w2, b2 = params["w2"].astype(f32), params["b2"].astype(f32)
    s2, t2 = params["s2"].astype(f32), params["t2"].astype(f32)
    col_blocks = []
    for Y in range(4):
        for X in range(4):
            qsum = [jnp.zeros((z, z), f32) for _ in range(4)]
            for dy in range(3):
                for dx in range(3):
                    iy, ix = Y + dy - 1, X + dx - 1
                    if 0 <= iy < 4 and 0 <= ix < 4:
                        q = (iy // 2) * 2 + (ix // 2)
                        qsum[q] = qsum[q] + w2[dy * 3 + dx]
            col_blocks.append(jnp.concatenate(qsum, axis=0) * s2)   # [4Z, Z]
    w2_eff = jnp.concatenate(col_blocks, axis=1).astype(jnp.bfloat16)  # [4Z,16Z]
    b2_eff = jnp.tile(b2 * s2 + t2, (1, 16)).astype(f32)               # [1,16Z]

    # ---- Stage 3: conv3 -> BN3; taps stacked along the contraction dim -----
    w3, b3 = params["w3"].astype(f32), params["b3"].astype(f32)
    s3, t3 = params["s3"].astype(f32), params["t3"].astype(f32)
    w3_eff = jnp.concatenate([w3[t] * s3 for t in range(9)],
                             axis=0).astype(jnp.bfloat16)              # [9Z, Z]
    b3_eff = (b3 * s3 + t3).astype(f32)                                # [1, Z]
    return w1_eff, b1_eff, w2_eff, b2_eff, w3_eff, b3_eff


# ------------------------------- wrapper ------------------------------------ #
def _round_up(a, m):
    return -(-a // m) * m


def up_latent_to_feat_map(x, params, *, tn=None):
    """Pallas forward. x: [N, Z] float32. Returns NCHW [N, Z, 4, 4]."""
    n, z = x.shape
    if tn is None:
        if n <= 32:
            tn = _round_up(max(n, 1), 16)     # tiny batch: a single grid step
        else:
            # Production: big tile amortizes the ~0.35us/step grid overhead
            # (16*tn = 1024 MXU rows for the conv3 matmul at tn=64), but keep
            # >= 2 grid steps so the "parallel" axis splits across both v7x
            # TensorCores (v5e/v6e are single-TC).
            tn = 64
            while tn > 16 and _round_up(n, tn) // tn < 2:
                tn //= 2
    tn = _round_up(tn, 16)                    # bf16 sublane-tile alignment
    n_pad = _round_up(n, tn)
    x_p = jnp.pad(x, ((0, n_pad - n), (0, 0))) if n_pad != n else x

    w1_eff, b1_eff, w2_eff, b2_eff, w3_eff, b3_eff = _fold_params(params, z)

    # Output is kept f32 for the NCHW module contract; emit bf16 here if the
    # downstream consumer tolerates it (halves output HBM traffic).
    out = pl.pallas_call(
        _l2fm_kernel,
        out_shape=jax.ShapeDtypeStruct((16, n_pad, z), jnp.float32),
        grid=(n_pad // tn,),
        in_specs=[
            pl.BlockSpec((tn, z), lambda i: (i, 0)),          # x (batch-tiled)
            pl.BlockSpec((z, 4 * z), lambda i: (0, 0)),       # folded lin+conv1
            pl.BlockSpec((1, 4 * z), lambda i: (0, 0)),
            pl.BlockSpec((4 * z, 16 * z), lambda i: (0, 0)),  # folded up+conv2
            pl.BlockSpec((1, 16 * z), lambda i: (0, 0)),
            pl.BlockSpec((9 * z, z), lambda i: (0, 0)),       # conv3, taps on K
            pl.BlockSpec((1, z), lambda i: (0, 0)),
        ],
        out_specs=pl.BlockSpec((16, tn, z), lambda i: (0, i, 0)),
        compiler_params=pltpu.CompilerParams(
            dimension_semantics=("parallel",),
            vmem_limit_bytes=32 * 1024 * 1024),
    )(x_p, w1_eff, b1_eff, w2_eff, b2_eff, w3_eff, b3_eff)

    # Pixel-major [16, N, Z] -> NCHW.  If the consumer accepts NHWC, return
    # jnp.transpose(out[:, :n, :].reshape(4, 4, n, z), (2, 0, 1, 3)) instead
    # and skip the channel-minor transpose below.
    out = out[:, :n, :].reshape(4, 4, n, z)          # [4,4,N,Z], pixel-major
    return jnp.transpose(out, (2, 3, 0, 1))          # NCHW [N, Z, 4, 4]


# ------------------------- pure-JAX reference ------------------------------ #
def _reference(x, params):
    z = x.shape[1]
    h = x @ params["wlin"] + params["blin"]          # [N, Z]
    fm = h[:, None, None, :]                         # NHWC [N, 1, 1, Z]

    def up2(f):
        return jnp.repeat(jnp.repeat(f, 2, axis=1), 2, axis=2)

    def conv_bn_act(f, w, b, s, t, act):
        w4 = w.reshape(3, 3, z, z)                   # HWIO
        y = jax.lax.conv_general_dilated(
            f, w4, (1, 1), 'SAME',
            dimension_numbers=('NHWC', 'HWIO', 'NHWC'))
        y = y + b.reshape(1, 1, 1, -1)
        y = y * s.reshape(1, 1, 1, -1) + t.reshape(1, 1, 1, -1)
        return act(y)

    relu = lambda v: jnp.maximum(v, 0.0)
    swish = lambda v: v * jax.nn.sigmoid(v)
    fm = conv_bn_act(up2(fm), params["w1"], params["b1"], params["s1"], params["t1"], relu)
    fm = conv_bn_act(up2(fm), params["w2"], params["b2"], params["s2"], params["t2"], relu)
    fm = conv_bn_act(fm, params["w3"], params["b3"], params["s3"], params["t3"], swish)
    return jnp.transpose(fm, (0, 3, 1, 2))           # NCHW


if __name__ == "__main__":
    N, Z = 8, 128                                    # batch, z_dims
    key = jax.random.PRNGKey(0)
    keys = jax.random.split(key, 20)

    def rn(k, shape, scale=1.0):
        return (scale * jax.random.normal(k, shape, jnp.float32)).astype(jnp.float32)

    x = rn(keys[0], (N, Z))

    params = {}
    # FullyConnectedLayer: weight ~ randn([out, in]), runtime gain 1/sqrt(in), bias 0.
    w_fc = rn(keys[1], (Z, Z))
    params["wlin"] = (w_fc.T / math.sqrt(Z)).astype(jnp.float32)
    params["blin"] = jnp.zeros((1, Z), jnp.float32)

    conv_scale = 1.0 / math.sqrt(9 * Z)              # ~kaiming fan-in scale
    eps = 1e-5
    kidx = 2
    for i in (1, 2, 3):
        w = rn(keys[kidx], (9, Z, Z), conv_scale); kidx += 1   # [tap, Cin, Cout]
        b = rn(keys[kidx], (1, Z), 0.1); kidx += 1
        gamma = 1.0 + rn(keys[kidx], (1, Z), 0.1); kidx += 1
        beta = rn(keys[kidx], (1, Z), 0.1); kidx += 1
        rmean = rn(keys[kidx], (1, Z), 0.05); kidx += 1
        rvar = 1.0 + jnp.abs(rn(keys[kidx], (1, Z), 0.1)); kidx += 1
        s = (gamma / jnp.sqrt(rvar + eps)).astype(jnp.float32)
        t = (beta - rmean * s).astype(jnp.float32)
        params[f"w{i}"] = w
        params[f"b{i}"] = b
        params[f"s{i}"] = s
        params[f"t{i}"] = t

    out = jax.block_until_ready(up_latent_to_feat_map(x, params))
    ref = jax.block_until_ready(_reference(x, params))

    assert out.shape == (N, Z, 4, 4), out.shape
    # bf16 matmul operands (f32 accumulation) -> relaxed tolerance vs f32 ref.
    if not bool(jnp.allclose(out, ref, atol=2e-2, rtol=2e-2)):
        raise AssertionError(
            f"kernel/reference mismatch, max_abs_err="
            f"{float(jnp.max(jnp.abs(out - ref)))}")
    print("KERNEL_OK")
</pallas_src>

<mosaic_0001>
module attributes {stable_mosaic.version = 11 : i64} {
  func.func @_l2fm_kernel(%arg0: i32, %arg1: memref<16x128xf32, #tpu.memory_space<vmem>>, %arg2: memref<128x512xbf16, #tpu.memory_space<vmem>>, %arg3: memref<1x512xf32, #tpu.memory_space<vmem>>, %arg4: memref<512x2048xbf16, #tpu.memory_space<vmem>>, %arg5: memref<1x2048xf32, #tpu.memory_space<vmem>>, %arg6: memref<1152x128xbf16, #tpu.memory_space<vmem>>, %arg7: memref<1x128xf32, #tpu.memory_space<vmem>>, %arg8: memref<16x16x128xf32, #tpu.memory_space<vmem>>) attributes {dimension_semantics = [#tpu.dimension_semantics<parallel>], iteration_bounds = array<i64: 1>, scalar_prefetch = 0 : i64, scratch_operands = 0 : i64, tpu.core_type = #tpu.core_type<tc>, window_params = [{transform_indices = @transform_0, window_bounds = array<i64: 16, 128>}, {pipeline_mode = #tpu.pipeline_mode<synchronous>, transform_indices = @transform_1, window_bounds = array<i64: 128, 512>}, {pipeline_mode = #tpu.pipeline_mode<synchronous>, transform_indices = @transform_2, window_bounds = array<i64: 1, 512>}, {pipeline_mode = #tpu.pipeline_mode<synchronous>, transform_indices = @transform_3, window_bounds = array<i64: 512, 2048>}, {pipeline_mode = #tpu.pipeline_mode<synchronous>, transform_indices = @transform_4, window_bounds = array<i64: 1, 2048>}, {pipeline_mode = #tpu.pipeline_mode<synchronous>, transform_indices = @transform_5, window_bounds = array<i64: 1152, 128>}, {pipeline_mode = #tpu.pipeline_mode<synchronous>, transform_indices = @transform_6, window_bounds = array<i64: 1, 128>}, {transform_indices = @transform_7, window_bounds = array<i64: 16, 16, 128>}]} {
    %c0 = arith.constant 0 : index
    %c0_0 = arith.constant 0 : index
    %0 = vector.load %arg1[%c0, %c0_0] : memref<16x128xf32, #tpu.memory_space<vmem>>, vector<16x128xf32>
    %1 = arith.truncf %0 : vector<16x128xf32> to vector<16x128xbf16>
    %c0_1 = arith.constant 0 : index
    %c0_2 = arith.constant 0 : index
    %2 = vector.load %arg2[%c0_1, %c0_2] : memref<128x512xbf16, #tpu.memory_space<vmem>>, vector<128x512xbf16>
    %cst = arith.constant dense<0.000000e+00> : vector<16x512xf32>
    %3 = tpu.matmul %1, %2, %cst {dimension_numbers = #tpu.dot_dimension_numbers<[1], [0], [0], [1], [0, 0, 1, 1], [], []>} : vector<16x128xbf16>, vector<128x512xbf16>, vector<16x512xf32> -> vector<16x512xf32>
    %c0_3 = arith.constant 0 : index
    %c0_4 = arith.constant 0 : index
    %4 = vector.load %arg3[%c0_3, %c0_4] : memref<1x512xf32, #tpu.memory_space<vmem>>, vector<1x512xf32>
    %5 = vector.broadcast %4 : vector<1x512xf32> to vector<16x512xf32>
    %6 = arith.addf %3, %5 : vector<16x512xf32>
    %cst_5 = arith.constant 0.000000e+00 : f32
    %7 = vector.broadcast %cst_5 : f32 to vector<16x512xf32>
    %8 = arith.maximumf %6, %7 : vector<16x512xf32>
    %9 = arith.truncf %8 : vector<16x512xf32> to vector<16x512xbf16>
    %c0_6 = arith.constant 0 : index
    %c0_7 = arith.constant 0 : index
    %10 = vector.load %arg4[%c0_6, %c0_7] : memref<512x2048xbf16, #tpu.memory_space<vmem>>, vector<512x2048xbf16>
    %cst_8 = arith.constant dense<0.000000e+00> : vector<16x2048xf32>
    %11 = tpu.matmul %9, %10, %cst_8 {dimension_numbers = #tpu.dot_dimension_numbers<[1], [0], [0], [1], [0, 0, 1, 1], [], []>} : vector<16x512xbf16>, vector<512x2048xbf16>, vector<16x2048xf32> -> vector<16x2048xf32>
    %c0_9 = arith.constant 0 : index
    %c0_10 = arith.constant 0 : index
    %12 = vector.load %arg5[%c0_9, %c0_10] : memref<1x2048xf32, #tpu.memory_space<vmem>>, vector<1x2048xf32>
    %13 = vector.broadcast %12 : vector<1x2048xf32> to vector<16x2048xf32>
    %14 = arith.addf %11, %13 : vector<16x2048xf32>
    %cst_11 = arith.constant 0.000000e+00 : f32
    %15 = vector.broadcast %cst_11 : f32 to vector<16x2048xf32>
    %16 = arith.maximumf %14, %15 : vector<16x2048xf32>
    %17 = arith.truncf %16 : vector<16x2048xf32> to vector<16x2048xbf16>
    %cst_12 = arith.constant 0.000000e+00 : bf16
    %18 = vector.broadcast %cst_12 : bf16 to vector<16x128xbf16>
    %19 = vector.extract_strided_slice %17 {offsets = [0, 0], sizes = [16, 128], strides = [1, 1]} : vector<16x2048xbf16> to vector<16x128xbf16>
    %20 = vector.extract_strided_slice %17 {offsets = [0, 128], sizes = [16, 128], strides = [1, 1]} : vector<16x2048xbf16> to vector<16x128xbf16>
    %21 = vector.extract_strided_slice %17 {offsets = [0, 512], sizes = [16, 128], strides = [1, 1]} : vector<16x2048xbf16> to vector<16x128xbf16>
    %22 = vector.extract_strided_slice %17 {offsets = [0, 640], sizes = [16, 128], strides = [1, 1]} : vector<16x2048xbf16> to vector<16x128xbf16>
    %23 = tpu.concatenate %18, %18, %18, %18, %19, %20, %18, %21, %22 in 1 : vector<16x128xbf16>, vector<16x128xbf16>, vector<16x128xbf16>, vector<16x128xbf16>, vector<16x128xbf16>, vector<16x128xbf16>, vector<16x128xbf16>, vector<16x128xbf16>, vector<16x128xbf16> -> vector<16x1152xbf16>
    %24 = vector.extract_strided_slice %17 {offsets = [0, 0], sizes = [16, 128], strides = [1, 1]} : vector<16x2048xbf16> to vector<16x128xbf16>
    %25 = vector.extract_strided_slice %17 {offsets = [0, 128], sizes = [16, 128], strides = [1, 1]} : vector<16x2048xbf16> to vector<16x128xbf16>
    %26 = vector.extract_strided_slice %17 {offsets = [0, 256], sizes = [16, 128], strides = [1, 1]} : vector<16x2048xbf16> to vector<16x128xbf16>
    %27 = vector.extract_strided_slice %17 {offsets = [0, 512], sizes = [16, 128], strides = [1, 1]} : vector<16x2048xbf16> to vector<16x128xbf16>
    %28 = vector.extract_strided_slice %17 {offsets = [0, 640], sizes = [16, 128], strides = [1, 1]} : vector<16x2048xbf16> to vector<16x128xbf16>
    %29 = vector.extract_strided_slice %17 {offsets = [0, 768], sizes = [16, 128], strides = [1, 1]} : vector<16x2048xbf16> to vector<16x128xbf16>
    %30 = tpu.concatenate %18, %18, %18, %24, %25, %26, %27, %28, %29 in 1 : vector<16x128xbf16>, vector<16x128xbf16>, vector<16x128xbf16>, vector<16x128xbf16>, vector<16x128xbf16>, vector<16x128xbf16>, vector<16x128xbf16>, vector<16x128xbf16>, vector<16x128xbf16> -> vector<16x1152xbf16>
    %31 = vector.extract_strided_slice %17 {offsets = [0, 128], sizes = [16, 128], strides = [1, 1]} : vector<16x2048xbf16> to vector<16x128xbf16>
    %32 = vector.extract_strided_slice %17 {offsets = [0, 256], sizes = [16, 128], strides = [1, 1]} : vector<16x2048xbf16> to vector<16x128xbf16>
    %33 = vector.extract_strided_slice %17 {offsets = [0, 384], sizes = [16, 128], strides = [1, 1]} : vector<16x2048xbf16> to vector<16x128xbf16>
    %34 = vector.extract_strided_slice %17 {offsets = [0, 640], sizes = [16, 128], strides = [1, 1]} : vector<16x2048xbf16> to vector<16x128xbf16>
    %35 = vector.extract_strided_slice %17 {offsets = [0, 768], sizes = [16, 128], strides = [1, 1]} : vector<16x2048xbf16> to vector<16x128xbf16>
    %36 = vector.extract_strided_slice %17 {offsets = [0, 896], sizes = [16, 128], strides = [1, 1]} : vector<16x2048xbf16> to vector<16x128xbf16>
    %37 = tpu.concatenate %18, %18, %18, %31, %32, %33, %34, %35, %36 in 1 : vector<16x128xbf16>, vector<16x128xbf16>, vector<16x128xbf16>, vector<16x128xbf16>, vector<16x128xbf16>, vector<16x128xbf16>, vector<16x128xbf16>, vector<16x128xbf16>, vector<16x128xbf16> -> vector<16x1152xbf16>
    %38 = vector.extract_strided_slice %17 {offsets = [0, 256], sizes = [16, 128], strides = [1, 1]} : vector<16x2048xbf16> to vector<16x128xbf16>
    %39 = vector.extract_strided_slice %17 {offsets = [0, 384], sizes = [16, 128], strides = [1, 1]} : vector<16x2048xbf16> to vector<16x128xbf16>
    %40 = vector.extract_strided_slice %17 {offsets = [0, 768], sizes = [16, 128], strides = [1, 1]} : vector<16x2048xbf16> to vector<16x128xbf16>
    %41 = vector.extract_strided_slice %17 {offsets = [0, 896], sizes = [16, 128], strides = [1, 1]} : vector<16x2048xbf16> to vector<16x128xbf16>
    %42 = tpu.concatenate %18, %18, %18, %38, %39, %18, %40, %41, %18 in 1 : vector<16x128xbf16>, vector<16x128xbf16>, vector<16x128xbf16>, vector<16x128xbf16>, vector<16x128xbf16>, vector<16x128xbf16>, vector<16x128xbf16>, vector<16x128xbf16>, vector<16x128xbf16> -> vector<16x1152xbf16>
    %43 = vector.extract_strided_slice %17 {offsets = [0, 0], sizes = [16, 128], strides = [1, 1]} : vector<16x2048xbf16> to vector<16x128xbf16>
    %44 = vector.extract_strided_slice %17 {offsets = [0, 128], sizes = [16, 128], strides = [1, 1]} : vector<16x2048xbf16> to vector<16x128xbf16>
    %45 = vector.extract_strided_slice %17 {offsets = [0, 512], sizes = [16, 128], strides = [1, 1]} : vector<16x2048xbf16> to vector<16x128xbf16>
    %46 = vector.extract_strided_slice %17 {offsets = [0, 640], sizes = [16, 128], strides = [1, 1]} : vector<16x2048xbf16> to vector<16x128xbf16>
    %47 = vector.extract_strided_slice %17 {offsets = [0, 1024], sizes = [16, 128], strides = [1, 1]} : vector<16x2048xbf16> to vector<16x128xbf16>
    %48 = vector.extract_strided_slice %17 {offsets = [0, 1152], sizes = [16, 128], strides = [1, 1]} : vector<16x2048xbf16> to vector<16x128xbf16>
    %49 = tpu.concatenate %18, %43, %44, %18, %45, %46, %18, %47, %48 in 1 : vector<16x128xbf16>, vector<16x128xbf16>, vector<16x128xbf16>, vector<16x128xbf16>, vector<16x128xbf16>, vector<16x128xbf16>, vector<16x128xbf16>, vector<16x128xbf16>, vector<16x128xbf16> -> vector<16x1152xbf16>
    %50 = vector.extract_strided_slice %17 {offsets = [0, 0], sizes = [16, 128], strides = [1, 1]} : vector<16x2048xbf16> to vector<16x128xbf16>
    %51 = vector.extract_strided_slice %17 {offsets = [0, 128], sizes = [16, 128], strides = [1, 1]} : vector<16x2048xbf16> to vector<16x128xbf16>
    %52 = vector.extract_strided_slice %17 {offsets = [0, 256], sizes = [16, 128], strides = [1, 1]} : vector<16x2048xbf16> to vector<16x128xbf16>
    %53 = vector.extract_strided_slice %17 {offsets = [0, 512], sizes = [16, 128], strides = [1, 1]} : vector<16x2048xbf16> to vector<16x128xbf16>
    %54 = vector.extract_strided_slice %17 {offsets = [0, 640], sizes = [16, 128], strides = [1, 1]} : vector<16x2048xbf16> to vector<16x128xbf16>
    %55 = vector.extract_strided_slice %17 {offsets = [0, 768], sizes = [16, 128], strides = [1, 1]} : vector<16x2048xbf16> to vector<16x128xbf16>
    %56 = vector.extract_strided_slice %17 {offsets = [0, 1024], sizes = [16, 128], strides = [1, 1]} : vector<16x2048xbf16> to vector<16x128xbf16>
    %57 = vector.extract_strided_slice %17 {offsets = [0, 1152], sizes = [16, 128], strides = [1, 1]} : vector<16x2048xbf16> to vector<16x128xbf16>
    %58 = vector.extract_strided_slice %17 {offsets = [0, 1280], sizes = [16, 128], strides = [1, 1]} : vector<16x2048xbf16> to vector<16x128xbf16>
    %59 = tpu.concatenate %50, %51, %52, %53, %54, %55, %56, %57, %58 in 1 : vector<16x128xbf16>, vector<16x128xbf16>, vector<16x128xbf16>, vector<16x128xbf16>, vector<16x128xbf16>, vector<16x128xbf16>, vector<16x128xbf16>, vector<16x128xbf16>, vector<16x128xbf16> -> vector<16x1152xbf16>
    %60 = vector.extract_strided_slice %17 {offsets = [0, 128], sizes = [16, 128], strides = [1, 1]} : vector<16x2048xbf16> to vector<16x128xbf16>
    %61 = vector.extract_strided_slice %17 {offsets = [0, 256], sizes = [16, 128], strides = [1, 1]} : vector<16x2048xbf16> to vector<16x128xbf16>
    %62 = vector.extract_strided_slice %17 {offsets = [0, 384], sizes = [16, 128], strides = [1, 1]} : vector<16x2048xbf16> to vector<16x128xbf16>
    %63 = vector.extract_strided_slice %17 {offsets = [0, 640], sizes = [16, 128], strides = [1, 1]} : vector<16x2048xbf16> to vector<16x128xbf16>
    %64 = vector.extract_strided_slice %17 {offsets = [0, 768], sizes = [16, 128], strides = [1, 1]} : vector<16x2048xbf16> to vector<16x128xbf16>
    %65 = vector.extract_strided_slice %17 {offsets = [0, 896], sizes = [16, 128], strides = [1, 1]} : vector<16x2048xbf16> to vector<16x128xbf16>
    %66 = vector.extract_strided_slice %17 {offsets = [0, 1152], sizes = [16, 128], strides = [1, 1]} : vector<16x2048xbf16> to vector<16x128xbf16>
    %67 = vector.extract_strided_slice %17 {offsets = [0, 1280], sizes = [16, 128], strides = [1, 1]} : vector<16x2048xbf16> to vector<16x128xbf16>
    %68 = vector.extract_strided_slice %17 {offsets = [0, 1408], sizes = [16, 128], strides = [1, 1]} : vector<16x2048xbf16> to vector<16x128xbf16>
    %69 = tpu.concatenate %60, %61, %62, %63, %64, %65, %66, %67, %68 in 1 : vector<16x128xbf16>, vector<16x128xbf16>, vector<16x128xbf16>, vector<16x128xbf16>, vector<16x128xbf16>, vector<16x128xbf16>, vector<16x128xbf16>, vector<16x128xbf16>, vector<16x128xbf16> -> vector<16x1152xbf16>
    %70 = vector.extract_strided_slice %17 {offsets = [0, 256], sizes = [16, 128], strides = [1, 1]} : vector<16x2048xbf16> to vector<16x128xbf16>
    %71 = vector.extract_strided_slice %17 {offsets = [0, 384], sizes = [16, 128], strides = [1, 1]} : vector<16x2048xbf16> to vector<16x128xbf16>
    %72 = vector.extract_strided_slice %17 {offsets = [0, 768], sizes = [16, 128], strides = [1, 1]} : vector<16x2048xbf16> to vector<16x128xbf16>
    %73 = vector.extract_strided_slice %17 {offsets = [0, 896], sizes = [16, 128], strides = [1, 1]} : vector<16x2048xbf16> to vector<16x128xbf16>
    %74 = vector.extract_strided_slice %17 {offsets = [0, 1280], sizes = [16, 128], strides = [1, 1]} : vector<16x2048xbf16> to vector<16x128xbf16>
    %75 = vector.extract_strided_slice %17 {offsets = [0, 1408], sizes = [16, 128], strides = [1, 1]} : vector<16x2048xbf16> to vector<16x128xbf16>
    %76 = tpu.concatenate %70, %71, %18, %72, %73, %18, %74, %75, %18 in 1 : vector<16x128xbf16>, vector<16x128xbf16>, vector<16x128xbf16>, vector<16x128xbf16>, vector<16x128xbf16>, vector<16x128xbf16>, vector<16x128xbf16>, vector<16x128xbf16>, vector<16x128xbf16> -> vector<16x1152xbf16>
    %77 = vector.extract_strided_slice %17 {offsets = [0, 512], sizes = [16, 128], strides = [1, 1]} : vector<16x2048xbf16> to vector<16x128xbf16>
    %78 = vector.extract_strided_slice %17 {offsets = [0, 640], sizes = [16, 128], strides = [1, 1]} : vector<16x2048xbf16> to vector<16x128xbf16>
    %79 = vector.extract_strided_slice %17 {offsets = [0, 1024], sizes = [16, 128], strides = [1, 1]} : vector<16x2048xbf16> to vector<16x128xbf16>
    %80 = vector.extract_strided_slice %17 {offsets = [0, 1152], sizes = [16, 128], strides = [1, 1]} : vector<16x2048xbf16> to vector<16x128xbf16>
    %81 = vector.extract_strided_slice %17 {offsets = [0, 1536], sizes = [16, 128], strides = [1, 1]} : vector<16x2048xbf16> to vector<16x128xbf16>
    %82 = vector.extract_strided_slice %17 {offsets = [0, 1664], sizes = [16, 128], strides = [1, 1]} : vector<16x2048xbf16> to vector<16x128xbf16>
    %83 = tpu.concatenate %18, %77, %78, %18, %79, %80, %18, %81, %82 in 1 : vector<16x128xbf16>, vector<16x128xbf16>, vector<16x128xbf16>, vector<16x128xbf16>, vector<16x128xbf16>, vector<16x128xbf16>, vector<16x128xbf16>, vector<16x128xbf16>, vector<16x128xbf16> -> vector<16x1152xbf16>
    %84 = vector.extract_strided_slice %17 {offsets = [0, 512], sizes = [16, 128], strides = [1, 1]} : vector<16x2048xbf16> to vector<16x128xbf16>
    %85 = vector.extract_strided_slice %17 {offsets = [0, 640], sizes = [16, 128], strides = [1, 1]} : vector<16x2048xbf16> to vector<16x128xbf16>
    %86 = vector.extract_strided_slice %17 {offsets = [0, 768], sizes = [16, 128], strides = [1, 1]} : vector<16x2048xbf16> to vector<16x128xbf16>
    %87 = vector.extract_strided_slice %17 {offsets = [0, 1024], sizes = [16, 128], strides = [1, 1]} : vector<16x2048xbf16> to vector<16x128xbf16>
    %88 = vector.extract_strided_slice %17 {offsets = [0, 1152], sizes = [16, 128], strides = [1, 1]} : vector<16x2048xbf16> to vector<16x128xbf16>
    %89 = vector.extract_strided_slice %17 {offsets = [0, 1280], sizes = [16, 128], strides = [1, 1]} : vector<16x2048xbf16> to vector<16x128xbf16>
    %90 = vector.extract_strided_slice %17 {offsets = [0, 1536], sizes = [16, 128], strides = [1, 1]} : vector<16x2048xbf16> to vector<16x128xbf16>
    %91 = vector.extract_strided_slice %17 {offsets = [0, 1664], sizes = [16, 128], strides = [1, 1]} : vector<16x2048xbf16> to vector<16x128xbf16>
    %92 = vector.extract_strided_slice %17 {offsets = [0, 1792], sizes = [16, 128], strides = [1, 1]} : vector<16x2048xbf16> to vector<16x128xbf16>
    %93 = tpu.concatenate %84, %85, %86, %87, %88, %89, %90, %91, %92 in 1 : vector<16x128xbf16>, vector<16x128xbf16>, vector<16x128xbf16>, vector<16x128xbf16>, vector<16x128xbf16>, vector<16x128xbf16>, vector<16x128xbf16>, vector<16x128xbf16>, vector<16x128xbf16> -> vector<16x1152xbf16>
    %94 = vector.extract_strided_slice %17 {offsets = [0, 640], sizes = [16, 128], strides = [1, 1]} : vector<16x2048xbf16> to vector<16x128xbf16>
    %95 = vector.extract_strided_slice %17 {offsets = [0, 768], sizes = [16, 128], strides = [1, 1]} : vector<16x2048xbf16> to vector<16x128xbf16>
    %96 = vector.extract_strided_slice %17 {offsets = [0, 896], sizes = [16, 128], strides = [1, 1]} : vector<16x2048xbf16> to vector<16x128xbf16>
    %97 = vector.extract_strided_slice %17 {offsets = [0, 1152], sizes = [16, 128], strides = [1, 1]} : vector<16x2048xbf16> to vector<16x128xbf16>
    %98 = vector.extract_strided_slice %17 {offsets = [0, 1280], sizes = [16, 128], strides = [1, 1]} : vector<16x2048xbf16> to vector<16x128xbf16>
    %99 = vector.extract_strided_slice %17 {offsets = [0, 1408], sizes = [16, 128], strides = [1, 1]} : vector<16x2048xbf16> to vector<16x128xbf16>
    %100 = vector.extract_strided_slice %17 {offsets = [0, 1664], sizes = [16, 128], strides = [1, 1]} : vector<16x2048xbf16> to vector<16x128xbf16>
    %101 = vector.extract_strided_slice %17 {offsets = [0, 1792], sizes = [16, 128], strides = [1, 1]} : vector<16x2048xbf16> to vector<16x128xbf16>
    %102 = vector.extract_strided_slice %17 {offsets = [0, 1920], sizes = [16, 128], strides = [1, 1]} : vector<16x2048xbf16> to vector<16x128xbf16>
    %103 = tpu.concatenate %94, %95, %96, %97, %98, %99, %100, %101, %102 in 1 : vector<16x128xbf16>, vector<16x128xbf16>, vector<16x128xbf16>, vector<16x128xbf16>, vector<16x128xbf16>, vector<16x128xbf16>, vector<16x128xbf16>, vector<16x128xbf16>, vector<16x128xbf16> -> vector<16x1152xbf16>
    %104 = vector.extract_strided_slice %17 {offsets = [0, 768], sizes = [16, 128], strides = [1, 1]} : vector<16x2048xbf16> to vector<16x128xbf16>
    %105 = vector.extract_strided_slice %17 {offsets = [0, 896], sizes = [16, 128], strides = [1, 1]} : vector<16x2048xbf16> to vector<16x128xbf16>
    %106 = vector.extract_strided_slice %17 {offsets = [0, 1280], sizes = [16, 128], strides = [1, 1]} : vector<16x2048xbf16> to vector<16x128xbf16>
    %107 = vector.extract_strided_slice %17 {offsets = [0, 1408], sizes = [16, 128], strides = [1, 1]} : vector<16x2048xbf16> to vector<16x128xbf16>
    %108 = vector.extract_strided_slice %17 {offsets = [0, 1792], sizes = [16, 128], strides = [1, 1]} : vector<16x2048xbf16> to vector<16x128xbf16>
    %109 = vector.extract_strided_slice %17 {offsets = [0, 1920], sizes = [16, 128], strides = [1, 1]} : vector<16x2048xbf16> to vector<16x128xbf16>
    %110 = tpu.concatenate %104, %105, %18, %106, %107, %18, %108, %109, %18 in 1 : vector<16x128xbf16>, vector<16x128xbf16>, vector<16x128xbf16>, vector<16x128xbf16>, vector<16x128xbf16>, vector<16x128xbf16>, vector<16x128xbf16>, vector<16x128xbf16>, vector<16x128xbf16> -> vector<16x1152xbf16>
    %111 = vector.extract_strided_slice %17 {offsets = [0, 1024], sizes = [16, 128], strides = [1, 1]} : vector<16x2048xbf16> to vector<16x128xbf16>
    %112 = vector.extract_strided_slice %17 {offsets = [0, 1152], sizes = [16, 128], strides = [1, 1]} : vector<16x2048xbf16> to vector<16x128xbf16>
    %113 = vector.extract_strided_slice %17 {offsets = [0, 1536], sizes = [16, 128], strides = [1, 1]} : vector<16x2048xbf16> to vector<16x128xbf16>
    %114 = vector.extract_strided_slice %17 {offsets = [0, 1664], sizes = [16, 128], strides = [1, 1]} : vector<16x2048xbf16> to vector<16x128xbf16>
    %115 = tpu.concatenate %18, %111, %112, %18, %113, %114, %18, %18, %18 in 1 : vector<16x128xbf16>, vector<16x128xbf16>, vector<16x128xbf16>, vector<16x128xbf16>, vector<16x128xbf16>, vector<16x128xbf16>, vector<16x128xbf16>, vector<16x128xbf16>, vector<16x128xbf16> -> vector<16x1152xbf16>
    %116 = vector.extract_strided_slice %17 {offsets = [0, 1024], sizes = [16, 128], strides = [1, 1]} : vector<16x2048xbf16> to vector<16x128xbf16>
    %117 = vector.extract_strided_slice %17 {offsets = [0, 1152], sizes = [16, 128], strides = [1, 1]} : vector<16x2048xbf16> to vector<16x128xbf16>
    %118 = vector.extract_strided_slice %17 {offsets = [0, 1280], sizes = [16, 128], strides = [1, 1]} : vector<16x2048xbf16> to vector<16x128xbf16>
    %119 = vector.extract_strided_slice %17 {offsets = [0, 1536], sizes = [16, 128], strides = [1, 1]} : vector<16x2048xbf16> to vector<16x128xbf16>
    %120 = vector.extract_strided_slice %17 {offsets = [0, 1664], sizes = [16, 128], strides = [1, 1]} : vector<16x2048xbf16> to vector<16x128xbf16>
    %121 = vector.extract_strided_slice %17 {offsets = [0, 1792], sizes = [16, 128], strides = [1, 1]} : vector<16x2048xbf16> to vector<16x128xbf16>
    %122 = tpu.concatenate %116, %117, %118, %119, %120, %121, %18, %18, %18 in 1 : vector<16x128xbf16>, vector<16x128xbf16>, vector<16x128xbf16>, vector<16x128xbf16>, vector<16x128xbf16>, vector<16x128xbf16>, vector<16x128xbf16>, vector<16x128xbf16>, vector<16x128xbf16> -> vector<16x1152xbf16>
    %123 = vector.extract_strided_slice %17 {offsets = [0, 1152], sizes = [16, 128], strides = [1, 1]} : vector<16x2048xbf16> to vector<16x128xbf16>
    %124 = vector.extract_strided_slice %17 {offsets = [0, 1280], sizes = [16, 128], strides = [1, 1]} : vector<16x2048xbf16> to vector<16x128xbf16>
    %125 = vector.extract_strided_slice %17 {offsets = [0, 1408], sizes = [16, 128], strides = [1, 1]} : vector<16x2048xbf16> to vector<16x128xbf16>
    %126 = vector.extract_strided_slice %17 {offsets = [0, 1664], sizes = [16, 128], strides = [1, 1]} : vector<16x2048xbf16> to vector<16x128xbf16>
    %127 = vector.extract_strided_slice %17 {offsets = [0, 1792], sizes = [16, 128], strides = [1, 1]} : vector<16x2048xbf16> to vector<16x128xbf16>
    %128 = vector.extract_strided_slice %17 {offsets = [0, 1920], sizes = [16, 128], strides = [1, 1]} : vector<16x2048xbf16> to vector<16x128xbf16>
    %129 = tpu.concatenate %123, %124, %125, %126, %127, %128, %18, %18, %18 in 1 : vector<16x128xbf16>, vector<16x128xbf16>, vector<16x128xbf16>, vector<16x128xbf16>, vector<16x128xbf16>, vector<16x128xbf16>, vector<16x128xbf16>, vector<16x128xbf16>, vector<16x128xbf16> -> vector<16x1152xbf16>
    %130 = vector.extract_strided_slice %17 {offsets = [0, 1280], sizes = [16, 128], strides = [1, 1]} : vector<16x2048xbf16> to vector<16x128xbf16>
    %131 = vector.extract_strided_slice %17 {offsets = [0, 1408], sizes = [16, 128], strides = [1, 1]} : vector<16x2048xbf16> to vector<16x128xbf16>
    %132 = vector.extract_strided_slice %17 {offsets = [0, 1792], sizes = [16, 128], strides = [1, 1]} : vector<16x2048xbf16> to vector<16x128xbf16>
    %133 = vector.extract_strided_slice %17 {offsets = [0, 1920], sizes = [16, 128], strides = [1, 1]} : vector<16x2048xbf16> to vector<16x128xbf16>
    %134 = tpu.concatenate %130, %131, %18, %132, %133, %18, %18, %18, %18 in 1 : vector<16x128xbf16>, vector<16x128xbf16>, vector<16x128xbf16>, vector<16x128xbf16>, vector<16x128xbf16>, vector<16x128xbf16>, vector<16x128xbf16>, vector<16x128xbf16>, vector<16x128xbf16> -> vector<16x1152xbf16>
    %135 = tpu.concatenate %23, %30, %37, %42, %49, %59, %69, %76, %83, %93, %103, %110, %115, %122, %129, %134 in 0 : vector<16x1152xbf16>, vector<16x1152xbf16>, vector<16x1152xbf16>, vector<16x1152xbf16>, vector<16x1152xbf16>, vector<16x1152xbf16>, vector<16x1152xbf16>, vector<16x1152xbf16>, vector<16x1152xbf16>, vector<16x1152xbf16>, vector<16x1152xbf16>, vector<16x1152xbf16>, vector<16x1152xbf16>, vector<16x1152xbf16>, vector<16x1152xbf16>, vector<16x1152xbf16> -> vector<256x1152xbf16>
    %c0_13 = arith.constant 0 : index
    %c0_14 = arith.constant 0 : index
    %136 = vector.load %arg6[%c0_13, %c0_14] : memref<1152x128xbf16, #tpu.memory_space<vmem>>, vector<1152x128xbf16>
    %cst_15 = arith.constant dense<0.000000e+00> : vector<256x128xf32>
    %137 = tpu.matmul %135, %136, %cst_15 {dimension_numbers = #tpu.dot_dimension_numbers<[1], [0], [0], [1], [0, 0, 1, 1], [], []>} : vector<256x1152xbf16>, vector<1152x128xbf16>, vector<256x128xf32> -> vector<256x128xf32>
    %c0_16 = arith.constant 0 : index
    %c0_17 = arith.constant 0 : index
    %138 = vector.load %arg7[%c0_16, %c0_17] : memref<1x128xf32, #tpu.memory_space<vmem>>, vector<1x128xf32>
    %139 = vector.broadcast %138 : vector<1x128xf32> to vector<256x128xf32>
    %140 = arith.addf %137, %139 : vector<256x128xf32>
    %cst_18 = arith.constant 0.000000e+00 : f32
    %141 = vector.broadcast %cst_18 : f32 to vector<256x128xf32>
    %142 = arith.subf %141, %140 : vector<256x128xf32>
    %143 = math.exp %142 : vector<256x128xf32>
    %cst_19 = arith.constant 1.000000e+00 : f32
    %144 = vector.broadcast %cst_19 : f32 to vector<256x128xf32>
    %145 = arith.addf %144, %143 : vector<256x128xf32>
    %146 = arith.divf %140, %145 : vector<256x128xf32>
    %147 = vector.shape_cast %146 : vector<256x128xf32> to vector<16x16x128xf32>
    %c0_20 = arith.constant 0 : index
    %c0_21 = arith.constant 0 : index
    %c0_22 = arith.constant 0 : index
    %148 = vector.load %arg8[%c0_20, %c0_21, %c0_22] : memref<16x16x128xf32, #tpu.memory_space<vmem>>, vector<16x16x128xf32>
    tpu.vector_store %arg8[%c0_20, %c0_21, %c0_22], %147 {strides = array<i32>} : memref<16x16x128xf32, #tpu.memory_space<vmem>>, vector<16x16x128xf32>,
    return
  }
  func.func @transform_0(%arg0: i32) -> (i32, i32) {
    %c0_i32 = arith.constant 0 : i32
    %c0_i32_0 = arith.constant 0 : i32
    return %arg0, %c0_i32 : i32, i32
  }
  func.func @transform_1(%arg0: i32) -> (i32, i32) {
    %c0_i32 = arith.constant 0 : i32
    %c0_i32_0 = arith.constant 0 : i32
    %c0_i32_1 = arith.constant 0 : i32
    return %c0_i32, %c0_i32_0 : i32, i32
  }
  func.func @transform_2(%arg0: i32) -> (i32, i32) {
    %c0_i32 = arith.constant 0 : i32
    %c0_i32_0 = arith.constant 0 : i32
    %c0_i32_1 = arith.constant 0 : i32
    return %c0_i32, %c0_i32_0 : i32, i32
  }
  func.func @transform_3(%arg0: i32) -> (i32, i32) {
    %c0_i32 = arith.constant 0 : i32
    %c0_i32_0 = arith.constant 0 : i32
    %c0_i32_1 = arith.constant 0 : i32
    return %c0_i32, %c0_i32_0 : i32, i32
  }
  func.func @transform_4(%arg0: i32) -> (i32, i32) {
    %c0_i32 = arith.constant 0 : i32
    %c0_i32_0 = arith.constant 0 : i32
    %c0_i32_1 = arith.constant 0 : i32
    return %c0_i32, %c0_i32_0 : i32, i32
  }
  func.func @transform_5(%arg0: i32) -> (i32, i32) {
    %c0_i32 = arith.constant 0 : i32
    %c0_i32_0 = arith.constant 0 : i32
    %c0_i32_1 = arith.constant 0 : i32
    return %c0_i32, %c0_i32_0 : i32, i32
  }
  func.func @transform_6(%arg0: i32) -> (i32, i32) {
    %c0_i32 = arith.constant 0 : i32
    %c0_i32_0 = arith.constant 0 : i32
    %c0_i32_1 = arith.constant 0 : i32
    return %c0_i32, %c0_i32_0 : i32, i32
  }
  func.func @transform_7(%arg0: i32) -> (i32, i32, i32) {
    %c0_i32 = arith.constant 0 : i32
    %c0_i32_0 = arith.constant 0 : i32
    %c0_i32_1 = arith.constant 0 : i32
    return %c0_i32, %arg0, %c0_i32_0 : i32, i32, i32
  }
}

</mosaic_0001>

<bundles_post_ra>
// kernel: tpu_custom_call.1
= control target key start
LH: loop header
LB: loop body
LE: loop exit
PB: predicated region body
PF: predicated region fallthrough
CT: control target
= control target key end

     0   :  { %12 = vsyncpa [#allocation3], 0  ;;  %s8411_s0 = inlined_call_operand.hbm [shape: f32[16,128], index: 0, kind: input, shape index: {}]   ;;  %s8412_s1 = inlined_call_operand.hbm [shape: bf16[128,512], index: 1, kind: input, shape index: {}]   ;;  %s8413_s2 = inlined_call_operand.hbm [shape: f32[1,512], index: 2, kind: input, shape index: {}]   ;;  %s8414_s3 = inlined_call_operand.hbm [shape: bf16[512,2048], index: 3, kind: input, shape index: {}]   ;;  %s8415_s4 = inlined_call_operand.hbm [shape: f32[1,2048], index: 4, kind: input, shape index: {}]   ;;  %s8416_s5 = inlined_call_operand.hbm [shape: bf16[1152,128], index: 5, kind: input, shape index: {}]   ;;  %s8417_s6 = inlined_call_operand.hbm [shape: f32[1,128], index: 6, kind: input, shape index: {}]   ;;  %s8418_s7 = inlined_call_operand.hbm [shape: f32[16,16,128], index: 7, kind: output, shape index: {}]  }
   0x1   :  { %13 = vsyncpa [#allocation6], 0 }
   0x2   :  { %14 = vsyncpa [#allocation9], 0 }
   0x3   :  { %15 = vsyncpa [#allocation12], 0 }
   0x4   :  { %16 = vsyncpa [#allocation4], 0  ;;  %s7527_s24 = smov [#allocation5]  }
   0x5   :  { %s34_s25 = sshll.u32 %s7527_s24, 4  ;;  %s35_s25 = int_to_ptr.vmem [resolvable:$true] %s34_s25 }
   0x6   :  { %s7365_s26 = scalar_lea.vmem %s35_s25, 4096  ;;  %p7370_p1 = scmp.lt.s32.totalorder %s35_s25, %s35_s25 }
   0x7   :  { %p7366_p0 = scmp.ne.s32.totalorder %s35_s25, %s7365_s26  ;;  %p7371_p2 = scmp.lt.s32.totalorder %s7365_s26, %s7365_s26 }
   0x9   :  { %p7372_p3 = por %p7371_p2, %p7370_p1 }
   0xb   :  { %p7373_p4 = pnand %p7372_p3, %p7366_p0 }
   0xd   :  { %7376 = shalt.err (!%p7373_p4)
}
   0xe   :  { %s7528_s27 = smov 256   ;;  %s7529_s28 = smov 16  }
   0xf   :  { %40 = dma.hbm_to_vmem [thread:$0]  %s8412_s1, 4096, %s35_s25, [#allocation6], %s7528_s27, %s7528_s27, %s7529_s28  }
  0x10   :  { %s7530_s8 = smov [#allocation8]  }
  0x11   :  { %s56_s9 = sshll.u32 %s7530_s8, 4  ;;  %s57_s9 = int_to_ptr.vmem [resolvable:$true] %s56_s9 }
  0x12   :  { %s7385_s10 = scalar_lea.vmem %s57_s9, 65536  ;;  %p7390_p6 = scmp.lt.s32.totalorder %s57_s9, %s57_s9 }
  0x13   :  { %p7386_p5 = scmp.ne.s32.totalorder %s57_s9, %s7385_s10  ;;  %p7391_p7 = scmp.lt.s32.totalorder %s7385_s10, %s7385_s10 }
  0x15   :  { %p7392_p8 = por %p7391_p7, %p7390_p6 }
  0x17   :  { %p7393_p9 = pnand %p7392_p8, %p7386_p5 }
  0x19   :  { %7396 = shalt.err (!%p7393_p9)
}
  0x1a   :  { %s7531_s11 = smov 1024   ;;  %s7532_s12 = smov 64  }
  0x1b   :  { %62 = dma.hbm_to_vmem [thread:$0]  %s8414_s3, 65536, %s57_s9, [#allocation9], %s7531_s11, %s7531_s11, %s7532_s12  }
  0x1c   :  { %s7533_s15 = smov [#allocation11]   ;;  %s7534_s1 = smov [#allocation2]  }
  0x1d   :  { %s78_s16 = sshll.u32 %s7533_s15, 4  ;;  %s22_s17 = sshll.u32 %s7534_s1, 4  ;;  %s79_s16 = int_to_ptr.vmem [resolvable:$true] %s78_s16  ;;  %s23_s17 = int_to_ptr.vmem [resolvable:$true] %s22_s17 }
  0x1e   :  { %s7405_s18 = scalar_lea.vmem %s79_s16, 9216  ;;  %p7410_p11 = scmp.lt.s32.totalorder %s79_s16, %s79_s16 }
  0x1f   :  { %p7406_p10 = scmp.ne.s32.totalorder %s79_s16, %s7405_s18  ;;  %p7411_p12 = scmp.lt.s32.totalorder %s7405_s18, %s7405_s18 }
  0x21   :  { %p7412_p13 = por %p7411_p12, %p7410_p11 }
  0x23   :  { %p7413_p0 = pnand %p7412_p13, %p7406_p10 }
  0x25   :  { %7416 = shalt.err (!%p7413_p0)
}
  0x26   :  { %s7535_s19 = smov 4   ;;  %s7425_s22 = scalar_lea.vmem %s23_s17, 256 }
  0x27   :  { %84 = dma.hbm_to_vmem [thread:$0]  %s8416_s5, 9216, %s79_s16, [#allocation12], %s7532_s12, %s7532_s12, %s7535_s19  }
  0x28   :  { %p7426_p1 = scmp.ne.s32.totalorder %s23_s17, %s7425_s22  ;;  %p7430_p2 = scmp.lt.s32.totalorder %s23_s17, %s23_s17 }
  0x29   :  { %p7431_p3 = scmp.lt.s32.totalorder %s7425_s22, %s7425_s22 }
  0x2b   :  { %p7432_p4 = por %p7431_p3, %p7430_p2 }
  0x2d   :  { %p7433_p5 = pnand %p7432_p4, %p7426_p1 }
  0x2f   :  { %7436 = shalt.err (!%p7433_p5)
}
  0x30   :  { %s7536_s3 = smov 128   ;;  %s7537_s23 = smov 8  }
  0x31   :  { %28 = dma.hbm_to_vmem [thread:$0]  %s8411_s0, 256, %s23_s17, [#allocation3], %s7536_s3, %s7536_s3, %s7537_s23  }
  0x32   :  { %s7538_s26 = smov [#allocation7]   ;;  %s7539_s5 = smov [#allocation10]  }
  0x33   :  { %s47_s27 = sshll.u32 %s7538_s26, 4  ;;  %s69_s28 = sshll.u32 %s7539_s5, 4  ;;  %s48_s27 = int_to_ptr.vmem [resolvable:$true] %s47_s27  ;;  %s70_s28 = int_to_ptr.vmem [resolvable:$true] %s69_s28 }
  0x34   :  { %s7445_s29 = scalar_lea.vmem %s48_s27, 64  ;;  %p7450_p7 = scmp.lt.s32.totalorder %s48_s27, %s48_s27 }
  0x35   :  { %p7446_p6 = scmp.ne.s32.totalorder %s48_s27, %s7445_s29  ;;  %p7451_p8 = scmp.lt.s32.totalorder %s7445_s29, %s7445_s29 }
  0x37   :  { %p7452_p9 = por %p7451_p8, %p7450_p7 }
  0x39   :  { %p7453_p10 = pnand %p7452_p9, %p7446_p6 }
  0x3b   :  { %7456 = shalt.err (!%p7453_p10)
}
  0x3c   :  { %50 = dma.hbm_to_vmem [thread:$0]  %s8413_s2, 64, %s48_s27, [#allocation6]  }
  0x3d   :  { %s7465_s9 = scalar_lea.vmem %s70_s28, 256  ;;  %p7470_p12 = scmp.lt.s32.totalorder %s70_s28, %s70_s28 }
  0x3e   :  { %p7466_p11 = scmp.ne.s32.totalorder %s70_s28, %s7465_s9  ;;  %p7471_p13 = scmp.lt.s32.totalorder %s7465_s9, %s7465_s9 }
  0x40   :  { %p7472_p0 = por %p7471_p13, %p7470_p12 }
  0x42   :  { %p7473_p1 = pnand %p7472_p0, %p7466_p11 }
  0x44   :  { %7476 = shalt.err (!%p7473_p1)
}
  0x45   :  { %72 = dma.hbm_to_vmem [thread:$0]  %s8415_s4, 256, %s70_s28, [#allocation9]  }
  0x46   :  { %s7540_s11 = smov [#allocation13]  }
  0x47   :  { %s91_s12 = sshll.u32 %s7540_s11, 4  ;;  %s92_s12 = int_to_ptr.vmem [resolvable:$true] %s91_s12 }
  0x48   :  { %s7485_s13 = scalar_lea.vmem %s92_s12, 16  ;;  %s7489_s14 = scalar_lea.vmem %s92_s12, 32 }
  0x49   :  { %p7486_p2 = scmp.ne.s32.totalorder %s92_s12, %s7485_s13  ;;  %p7490_p3 = scmp.lt.s32.totalorder %s92_s12, %s92_s12 }
  0x4a   :  { %p7491_p4 = scmp.lt.s32.totalorder %s7489_s14, %s7485_s13 }
  0x4c   :  { %p7492_p5 = por %p7491_p4, %p7490_p3 }
  0x4e   :  { %p7493_p6 = pnand %p7492_p5, %p7486_p2 }
  0x50   :  { %7496 = shalt.err (!%p7493_p6)
}
  0x51   :  { %94 = dma.hbm_to_vmem [thread:$0]  %s8417_s6, 16, %s92_s12, [#allocation12]  }
  0x52   :  { %7517 = dma.done.wait [#allocation3], 256  }
  0x53   :  { %7518 = vsyncadd [#allocation3], 4294967040 }
  0x54   :  { %7519 = dma.done.wait [#allocation6], 4160  }
  0x55   :  { %7520 = vsyncadd [#allocation6], 4294963136 }
  0x56   :  { %7521 = dma.done.wait [#allocation9], 65792  }
  0x57   :  { %7522 = vsyncadd [#allocation9], 4294901504 }
  0x58   :  { %7523 = dma.done.wait [#allocation12], 9232  }
  0x59   :  { %7524 = vsyncadd [#allocation12], 4294958064  ;;  %v7541_v0 = vmov 0   ;;  %v7109_v1 = vld [vmem:[#allocation5 + $0xe4] ss:$16 sps:$4 sm:$0xff]   ;;  %v118_v28 = vld [vmem:[#allocation2 + $0x8] sm:$0xff] }
  0x5a   :  { %366 = vmatprep.mubr.bf16.mxu1 %v7541_v0  ;;  %v7111_v2 = vld [vmem:[#allocation5 + $0xe0] ss:$16 sps:$4 sm:$0xff]   ;;  %334 = vmatprep.subr.bf16.mxu1 %v7109_v1  ;;  %v7112_v3 = vld [vmem:[#allocation5 + $0xc4] ss:$16 sps:$4 sm:$0xff]   ;;  %v7135_v30 = vld [vmem:[#allocation5 + $0xec] ss:$16 sps:$4 sm:$0xff]  }
  0x5b   :  { %335 = vmatpush1.bf16.msra.mxu1 %v7111_v2  ;;  %v7114_v4 = vld [vmem:[#allocation5 + $0xc0] ss:$16 sps:$4 sm:$0xff]   ;;  %v7115_v5 = vld [vmem:[#allocation5 + $0xa4] ss:$16 sps:$4 sm:$0xff]   ;;  %v7133_v35 = vld [vmem:[#allocation5 + $0xe8] ss:$16 sps:$4 sm:$0xff]  }
  0x5c   :  { %336 = vmatprep.subr.bf16.mxu1 %v7112_v3  ;;  %v7117_v6 = vld [vmem:[#allocation5 + $0xa0] ss:$16 sps:$4 sm:$0xff]   ;;  %v7118_v7 = vld [vmem:[#allocation5 + $0x84] ss:$16 sps:$4 sm:$0xff]   ;;  %v7138_v36 = vld [vmem:[#allocation5 + $0xcc] ss:$16 sps:$4 sm:$0xff]  }
  0x5d   :  { %v7120_v8 = vld [vmem:[#allocation5 + $0x80] ss:$16 sps:$4 sm:$0xff]   ;;  %v7121_v9 = vld [vmem:[#allocation5 + $0x64] ss:$16 sps:$4 sm:$0xff]   ;;  %v7136_v40 = vld [vmem:[#allocation5 + $0xc8] ss:$16 sps:$4 sm:$0xff]  }
  0x5e   :  { %v7123_v10 = vld [vmem:[#allocation5 + $0x60] ss:$16 sps:$4 sm:$0xff]   ;;  %v7124_v11 = vld [vmem:[#allocation5 + $0x44] ss:$16 sps:$4 sm:$0xff]   ;;  %v7141_v41 = vld [vmem:[#allocation5 + $0xac] ss:$16 sps:$4 sm:$0xff]  }
  0x5f   :  { %337 = vmatpush1.bf16.msra.mxu1 %v7114_v4  ;;  %v7126_v12 = vld [vmem:[#allocation5 + $0x40] ss:$16 sps:$4 sm:$0xff]   ;;  %v7127_v13 = vld [vmem:[#allocation5 + $0x24] ss:$16 sps:$4 sm:$0xff]   ;;  %v7139_v46 = vld [vmem:[#allocation5 + $0xa8] ss:$16 sps:$4 sm:$0xff]  }
  0x60   :  { %338 = vmatprep.subr.bf16.mxu1 %v7115_v5  ;;  %v544_v14 = vld [vmem:[#allocation8 + $0x380] sm:$0xff]  ;;  %v7129_v17 = vld [vmem:[#allocation5 + $0x20] ss:$16 sps:$4 sm:$0xff]   ;;  %v7144_v47 = vld [vmem:[#allocation5 + $0x8c] ss:$16 sps:$4 sm:$0xff]   ;;  %s7542_s4 = smov [#allocation14]  }
  0x61   :  { %v552_v15 = vld [vmem:[#allocation8 + $0x3c0] sm:$0xff]  ;;  %v7132_v26 = vld [vmem:[#allocation5] ss:$16 sps:$4 sm:$0xff]   ;;  %v7147_v53 = vld [vmem:[#allocation5 + $0x6c] ss:$16 sps:$4 sm:$0xff]   ;;  %s5941_s6 = sshll.u32 %s7542_s4, 4  ;;  %s5942_s6 = int_to_ptr.vmem [resolvable:$true] %s5941_s6 }
  0x62   :  { %v528_v16 = vld [vmem:[#allocation8 + $0x300] sm:$0xff]  ;;  %v6101_v18 = vcombine.high %v544_v14, %v552_v15  ;;  %v6100_v19 = vcombine.low %v544_v14, %v552_v15  ;;  %v117_v27 = vld [vmem:[#allocation2] sm:$0xff]  ;;  %v7150_v59 = vld [vmem:[#allocation5 + $0x4c] ss:$16 sps:$4 sm:$0xff]   ;;  %s7497_s16 = scalar_lea.vmem %s5942_s6, 4096  ;;  %p7502_p8 = scmp.lt.s32.totalorder %s5942_s6, %s5942_s6 }
  0x63   :  { %339 = vmatpush1.bf16.msra.mxu1 %v7117_v6  ;;  %v536_v20 = vld [vmem:[#allocation8 + $0x340] sm:$0xff]  ;;  %v7608_v33 = vpack.c.bf16 %v118_v28, %v117_v27  ;;  %v7153_v2 = vld [vmem:[#allocation5 + $0x2c] ss:$16 sps:$4 sm:$0xff]   ;;  %p7498_p7 = scmp.ne.s32.totalorder %s5942_s6, %s7497_s16  ;;  %p7503_p9 = scmp.lt.s32.totalorder %s7497_s16, %s7497_s16 }
  0x64   :  { %340 = vmatprep.subr.bf16.mxu1 %v7118_v7  ;;  %v7130_v21 = vld [vmem:[#allocation5 + $0x4] ss:$16 sps:$4 sm:$0xff]   ;;  %v6085_v22 = vcombine.high %v528_v16, %v536_v20  ;;  %3588 = vmatprep.subr.bf16.mxu0 %v6101_v18  ;;  %v6084_v25 = vcombine.low %v528_v16, %v536_v20  ;;  %v7142_v52 = vld [vmem:[#allocation5 + $0x88] ss:$16 sps:$4 sm:$0xff]  }
  0x65   :  { %v512_v23 = vld [vmem:[#allocation8 + $0x280] sm:$0xff]  ;;  %3589 = vmatpush1.bf16.msra.mxu0 %v6100_v19  ;;  %p7504_p10 = por %p7503_p9, %p7502_p8 }
  0x66   :  { %v520_v24 = vld [vmem:[#allocation8 + $0x2c0] sm:$0xff]  ;;  %3590 = vmatprep.subr.bf16.mxu0 %v6085_v22 }
  0x67   :  { %341 = vmatpush1.bf16.msra.mxu1 %v7120_v8  ;;  %v6069_v29 = vcombine.high %v512_v23, %v520_v24  ;;  %v496_v31 = vld [vmem:[#allocation8 + $0x200] sm:$0xff]  ;;  %v6068_v34 = vcombine.low %v512_v23, %v520_v24  ;;  %v7156_v8 = vld [vmem:[#allocation5 + $0xc] ss:$16 sps:$4 sm:$0xff]   ;;  %p7505_p11 = pnand %p7504_p10, %p7498_p7 }
  0x68   :  { %342 = vmatprep.subr.bf16.mxu1 %v7121_v9  ;;  %v504_v32 = vld [vmem:[#allocation8 + $0x240] sm:$0xff] }
  0x69   :  { %3591 = vmatpush1.bf16.msra.mxu0 %v6084_v25  ;;  %v6053_v37 = vcombine.high %v496_v31, %v504_v32  ;;  %v480_v38 = vld [vmem:[#allocation8 + $0x180] sm:$0xff]  ;;  %v6052_v42 = vcombine.low %v496_v31, %v504_v32 }
  0x6a   :  { %3592 = vmatprep.subr.bf16.mxu0 %v6069_v29  ;;  %v488_v39 = vld [vmem:[#allocation8 + $0x1c0] sm:$0xff] }
  0x6b   :  { %343 = vmatpush1.bf16.msra.mxu1 %v7123_v10  ;;  %v464_v43 = vld [vmem:[#allocation8 + $0x100] sm:$0xff]  ;;  %v6037_v45 = vcombine.high %v480_v38, %v488_v39  ;;  %v6036_v48 = vcombine.low %v480_v38, %v488_v39 }
  0x6c   :  { %344 = vmatprep.subr.bf16.mxu1 %v7124_v11  ;;  %v472_v44 = vld [vmem:[#allocation8 + $0x140] sm:$0xff] }
  0x6d   :  { %3593 = vmatpush1.bf16.msra.mxu0 %v6068_v34  ;;  %v448_v49 = vld [vmem:[#allocation8 + $0x80] sm:$0xff]  ;;  %v6021_v51 = vcombine.high %v464_v43, %v472_v44  ;;  %v6020_v54 = vcombine.low %v464_v43, %v472_v44 }
  0x6e   :  { %3594 = vmatprep.subr.bf16.mxu0 %v6053_v37  ;;  %v456_v50 = vld [vmem:[#allocation8 + $0xc0] sm:$0xff] }
  0x6f   :  { %345 = vmatpush1.bf16.msra.mxu1 %v7126_v12  ;;  %v432_v55 = vld [vmem:[#allocation8] sm:$0xff]  ;;  %v6005_v57 = vcombine.high %v448_v49, %v456_v50  ;;  %v6004_v60 = vcombine.low %v448_v49, %v456_v50 }
  0x70   :  { %346 = vmatprep.subr.bf16.mxu1 %v7127_v13  ;;  %v440_v56 = vld [vmem:[#allocation8 + $0x40] sm:$0xff] }
  0x71   :  { %3595 = vmatpush1.bf16.msra.mxu0 %v6052_v42  ;;  %v7145_v58 = vld [vmem:[#allocation5 + $0x68] ss:$16 sps:$4 sm:$0xff]   ;;  %v5989_v63 = vcombine.high %v432_v55, %v440_v56  ;;  %v5988_v3 = vcombine.low %v432_v55, %v440_v56 }
  0x72   :  { %3596 = vmatprep.subr.bf16.mxu0 %v6037_v45  ;;  %v672_v61 = vld [vmem:[#allocation8 + $0x780] sm:$0xff] }
  0x73   :  { %347 = vmatpush1.bf16.msra.mxu1 %v7129_v17  ;;  %v680_v62 = vld [vmem:[#allocation8 + $0x7c0] sm:$0xff] }
  0x74   :  { %348 = vmatprep.subr.bf16.mxu1 %v7130_v21  ;;  %v7148_v1 = vld [vmem:[#allocation5 + $0x48] ss:$16 sps:$4 sm:$0xff]   ;;  %v6229_v6 = vcombine.high %v672_v61, %v680_v62  ;;  %v6228_v9 = vcombine.low %v672_v61, %v680_v62 }
  0x75   :  { %3597 = vmatpush1.bf16.msra.mxu0 %v6036_v48  ;;  %v656_v4 = vld [vmem:[#allocation8 + $0x700] sm:$0xff] }
  0x76   :  { %3598 = vmatprep.subr.bf16.mxu0 %v6021_v51  ;;  %v664_v5 = vld [vmem:[#allocation8 + $0x740] sm:$0xff] }
  0x77   :  { %349 = vmatpush1.bf16.msra.mxu1 %v7132_v26  ;;  %v7151_v7 = vld [vmem:[#allocation5 + $0x28] ss:$16 sps:$4 sm:$0xff]   ;;  %v6213_v14 = vcombine.high %v656_v4, %v664_v5  ;;  %v6212_v16 = vcombine.low %v656_v4, %v664_v5 }
  0x78   :  { %377 = vmatprep.subr.bf16.mxu1 %v7135_v30  ;;  %v640_v10 = vld [vmem:[#allocation8 + $0x680] sm:$0xff] }
  0x79   :  { %3599 = vmatpush1.bf16.msra.mxu0 %v6020_v54  ;;  %v648_v11 = vld [vmem:[#allocation8 + $0x6c0] sm:$0xff] }
  0x7a   :  { %367 = vmatmul.mubr.bf16.vlgmr.msra.gmra.mxu1 %v7608_v33  ;;  %3600 = vmatprep.subr.bf16.mxu0 %v6005_v57  ;;  %v800_v12 = vld [vmem:[#allocation8 + $0xb80] sm:$0xff]  ;;  %v6197_v21 = vcombine.high %v640_v10, %v648_v11  ;;  %v6196_v23 = vcombine.low %v640_v10, %v648_v11  ;;  %v7615_v10 = vld [vmem:[#allocation8 + $0x3c8] sm:$0xff] }
  0x7b   :  { %378 = vmatpush1.bf16.msra.mxu1 %v7133_v35  ;;  %409 = vmatprep.mubr.bf16.mxu1 %v7541_v0  ;;  %v808_v13 = vld [vmem:[#allocation8 + $0xbc0] sm:$0xff] }
  0x7c   :  { %379 = vmatprep.subr.bf16.mxu1 %v7138_v36  ;;  %v7154_v15 = vld [vmem:[#allocation5 + $0x8] ss:$16 sps:$4 sm:$0xff]   ;;  %v6357_v22 = vcombine.high %v800_v12, %v808_v13  ;;  %v6356_v26 = vcombine.low %v800_v12, %v808_v13 }
  0x7d   :  { %3601 = vmatpush1.bf16.msra.mxu0 %v6004_v60  ;;  %v624_v17 = vld [vmem:[#allocation8 + $0x600] sm:$0xff] }
  0x7e   :  { %3602 = vmatprep.subr.bf16.mxu0 %v5989_v63  ;;  %v632_v18 = vld [vmem:[#allocation8 + $0x640] sm:$0xff] }
  0x7f   :  { %380 = vmatpush1.bf16.msra.mxu1 %v7136_v40  ;;  %v784_v19 = vld [vmem:[#allocation8 + $0xb00] sm:$0xff]  ;;  %v6181_v29 = vcombine.high %v624_v17, %v632_v18  ;;  %v6180_v31 = vcombine.low %v624_v17, %v632_v18 }
  0x80   :  { %381 = vmatprep.subr.bf16.mxu1 %v7141_v41  ;;  %v792_v20 = vld [vmem:[#allocation8 + $0xb40] sm:$0xff] }
  0x81   :  { %3603 = vmatpush1.bf16.msra.mxu0 %v5988_v3  ;;  %v608_v24 = vld [vmem:[#allocation8 + $0x580] sm:$0xff]  ;;  %v6341_v30 = vcombine.high %v784_v19, %v792_v20  ;;  %v6340_v32 = vcombine.low %v784_v19, %v792_v20 }
  0x82   :  { %3604 = vmatprep.subr.bf16.mxu0 %v6229_v6  ;;  %v616_v25 = vld [vmem:[#allocation8 + $0x5c0] sm:$0xff] }
  0x83   :  { %382 = vmatpush1.bf16.msra.mxu1 %v7139_v46  ;;  %v768_v27 = vld [vmem:[#allocation8 + $0xa80] sm:$0xff]  ;;  %v6165_v36 = vcombine.high %v608_v24, %v616_v25  ;;  %v6164_v38 = vcombine.low %v608_v24, %v616_v25 }
  0x84   :  { %383 = vmatprep.subr.bf16.mxu1 %v7144_v47  ;;  %v776_v28 = vld [vmem:[#allocation8 + $0xac0] sm:$0xff] }
  0x85   :  { %3605 = vmatpush2.bf16.msra.mxu0 %v6228_v9  ;;  %v752_v34 = vld [vmem:[#allocation8 + $0xa00] sm:$0xff]  ;;  %v6325_v37 = vcombine.high %v768_v27, %v776_v28  ;;  %v6324_v39 = vcombine.low %v768_v27, %v776_v28 }
  0x86   :  { %3606 = vmatprep.subr.bf16.mxu0 %v6213_v14  ;;  %v760_v35 = vld [vmem:[#allocation8 + $0xa40] sm:$0xff] }
  0x87   :  { %384 = vmatpush1.bf16.msra.mxu1 %v7142_v52  ;;  %v736_v40 = vld [vmem:[#allocation8 + $0x980] sm:$0xff]  ;;  %v6309_v42 = vcombine.high %v752_v34, %v760_v35 }
  0x88   :  { %385 = vmatprep.subr.bf16.mxu1 %v7147_v53  ;;  %v744_v41 = vld [vmem:[#allocation8 + $0x9c0] sm:$0xff] }
  0x89   :  { %3607 = vmatpush2.bf16.msra.mxu0 %v6212_v16  ;;  %v6293_v43 = vcombine.high %v736_v40, %v744_v41  ;;  %v6292_v44 = vcombine.low %v736_v40, %v744_v41  ;;  %v592_v45 = vld [vmem:[#allocation8 + $0x500] sm:$0xff] }
  0x8a   :  { %3608 = vmatprep.subr.bf16.mxu0 %v6197_v21  ;;  %v600_v46 = vld [vmem:[#allocation8 + $0x540] sm:$0xff] }
  0x8b   :  { %386 = vmatpush1.bf16.msra.mxu1 %v7145_v58  ;;  %v720_v47 = vld [vmem:[#allocation8 + $0x900] sm:$0xff]  ;;  %v6149_v48 = vcombine.high %v592_v45, %v600_v46  ;;  %v6148_v52 = vcombine.low %v592_v45, %v600_v46  ;;  %v154_v46 = vlaneseq }
  0x8c   :  { %387 = vmatprep.subr.bf16.mxu1 %v7150_v59  ;;  %v728_v49 = vld [vmem:[#allocation8 + $0x940] sm:$0xff] }
  0x8d   :  { %3609 = vmatpush2.bf16.msra.mxu0 %v6196_v23  ;;  %v6276_v50 = vcombine.low %v720_v47, %v728_v49  ;;  %v6277_v51 = vcombine.high %v720_v47, %v728_v49  ;;  %v576_v53 = vld [vmem:[#allocation8 + $0x480] sm:$0xff]  ;;  %v7629_v47 = vshrl.u32 %v154_v46, 7  ;;  %v152_v49 = vld [vmem:[#allocation7] sm:$0xf] }
  0x8e   :  { %3610 = vmatprep.subr.bf16.mxu0 %v6181_v29  ;;  %v584_v54 = vld [vmem:[#allocation8 + $0x4c0] sm:$0xff] }
  0x8f   :  { %388 = vmatpush1.bf16.msra.mxu1 %v7148_v1  ;;  %v704_v55 = vld [vmem:[#allocation8 + $0x880] sm:$0xff]  ;;  %v6133_v56 = vcombine.high %v576_v53, %v584_v54  ;;  %v6132_v60 = vcombine.low %v576_v53, %v584_v54 }
  0x90   :  { %389 = vmatprep.subr.bf16.mxu1 %v7153_v2  ;;  %v712_v57 = vld [vmem:[#allocation8 + $0x8c0] sm:$0xff] }
  0x91   :  { %3611 = vmatpush2.bf16.msra.mxu0 %v6180_v31  ;;  %v6260_v58 = vcombine.low %v704_v55, %v712_v57  ;;  %v6261_v59 = vcombine.high %v704_v55, %v712_v57  ;;  %v560_v61 = vld [vmem:[#allocation8 + $0x400] sm:$0xff] }
  0x92   :  { %3612 = vmatprep.subr.bf16.mxu0 %v6165_v36  ;;  %v568_v62 = vld [vmem:[#allocation8 + $0x440] sm:$0xff] }
  0x93   :  { %390 = vmatpush1.bf16.msra.mxu1 %v7151_v7  ;;  %v688_v63 = vld [vmem:[#allocation8 + $0x800] sm:$0xff]  ;;  %v6117_v1 = vcombine.high %v560_v61, %v568_v62  ;;  %v6116_v5 = vcombine.low %v560_v61, %v568_v62 }
  0x94   :  { %391 = vmatprep.subr.bf16.mxu1 %v7156_v8  ;;  %v696_v2 = vld [vmem:[#allocation8 + $0x840] sm:$0xff]  ;;  %v7613_v8 = vld [vmem:[#allocation8 + $0x388] sm:$0xff] }
  0x95   :  { %3613 = vmatpush2.bf16.msra.mxu0 %v6164_v38  ;;  %v6244_v3 = vcombine.low %v688_v63, %v696_v2  ;;  %v6245_v4 = vcombine.high %v688_v63, %v696_v2  ;;  %v928_v6 = vld [vmem:[#allocation8 + $0xf80] sm:$0xff]  ;;  %v6102_v12 = vcombine.low %v7613_v8, %v7615_v10  ;;  %v6103_v13 = vcombine.high %v7613_v8, %v7615_v10  ;;  %v537_v2 = vld [vmem:[#allocation8 + $0x348] sm:$0xff] }
  0x96   :  { %3614 = vmatprep.subr.bf16.mxu0 %v6149_v48  ;;  %v936_v7 = vld [vmem:[#allocation8 + $0xfc0] sm:$0xff]  ;;  %v7632_v48 = vsub.s32 1, %v7629_v47  ;;  %v473_v8 = vld [vmem:[#allocation8 + $0x148] sm:$0xff] }
  0x97   :  { %392 = vmatpush1.bf16.msra.mxu1 %v7154_v15  ;;  %v6485_v9 = vcombine.high %v928_v6, %v936_v7  ;;  %v6484_v11 = vcombine.low %v928_v6, %v936_v7  ;;  %v912_v14 = vld [vmem:[#allocation8 + $0xf00] sm:$0xff]  ;;  %v513_v7 = vld [vmem:[#allocation8 + $0x288] sm:$0xff] }
  0x98   :  { %3631 = vmatprep.subr.bf16.mxu1 %v6357_v22  ;;  %v920_v15 = vld [vmem:[#allocation8 + $0xf40] sm:$0xff] }
  0x99   :  { %3615 = vmatpush2.bf16.msra.mxu0 %v6148_v52  ;;  %v6468_v16 = vcombine.low %v912_v14, %v920_v15  ;;  %v6469_v17 = vcombine.high %v912_v14, %v920_v15  ;;  %v896_v18 = vld [vmem:[#allocation8 + $0xe80] sm:$0xff]  ;;  %v161_v52 = vrot.slane %v152_v49, %v7632_v48  ;;  %v497_v14 = vld [vmem:[#allocation8 + $0x208] sm:$0xff] }
  0x9a   :  { %410 = vmatmul.mubr.bf16.vlgmr.msra.gmra.mxu1 %v7608_v33  ;;  %v6308_v33 = vcombine.low %v752_v34, %v760_v35  ;;  %3616 = vmatprep.subr.bf16.mxu0 %v6133_v56  ;;  %v904_v19 = vld [vmem:[#allocation8 + $0xec0] sm:$0xff]  ;;  %v505_v15 = vld [vmem:[#allocation8 + $0x248] sm:$0xff] }
  0x9b   :  { %3632 = vmatpush1.bf16.msra.mxu1 %v6356_v26  ;;  %v6452_v20 = vcombine.low %v896_v18, %v904_v19  ;;  %v6453_v21 = vcombine.high %v896_v18, %v904_v19  ;;  %v880_v22 = vld [vmem:[#allocation8 + $0xe00] sm:$0xff]  ;;  %v481_v18 = vld [vmem:[#allocation8 + $0x188] sm:$0xff] }
  0x9c   :  { %3633 = vmatprep.subr.bf16.mxu1 %v6341_v30  ;;  %v888_v23 = vld [vmem:[#allocation8 + $0xe40] sm:$0xff]  ;;  %v489_v19 = vld [vmem:[#allocation8 + $0x1c8] sm:$0xff] }
  0x9d   :  { %3617 = vmatpush2.bf16.msra.mxu0 %v6132_v60  ;;  %v6436_v24 = vcombine.low %v880_v22, %v888_v23  ;;  %v6437_v25 = vcombine.high %v880_v22, %v888_v23  ;;  %v864_v26 = vld [vmem:[#allocation8 + $0xd80] sm:$0xff]  ;;  %v465_v22 = vld [vmem:[#allocation8 + $0x108] sm:$0xff]  ;;  %v6038_v10 = vcombine.low %v481_v18, %v489_v19  ;;  %v7650_v23 = vsub.s32 3, %v7629_v47 }
  0x9e   :  { %3618 = vmatprep.subr.bf16.mxu0 %v6117_v1  ;;  %v872_v27 = vld [vmem:[#allocation8 + $0xdc0] sm:$0xff]  ;;  %v529_v1 = vld [vmem:[#allocation8 + $0x308] sm:$0xff] }
  0x9f   :  { %3634 = vmatpush1.bf16.msra.mxu1 %v6340_v32  ;;  %v6420_v28 = vcombine.low %v864_v26, %v872_v27  ;;  %v6421_v29 = vcombine.high %v864_v26, %v872_v27  ;;  %v848_v30 = vld [vmem:[#allocation8 + $0xd00] sm:$0xff]  ;;  %v6087_v6 = vcombine.high %v529_v1, %v537_v2  ;;  %v7653_v26 = vsub.s32 2, %v7629_v47 }
  0xa0   :  { %3635 = vmatprep.subr.bf16.mxu1 %v6325_v37  ;;  %v856_v31 = vld [vmem:[#allocation8 + $0xd40] sm:$0xff]  ;;  %v6022_v27 = vcombine.low %v465_v22, %v473_v8 }
  0xa1   :  { %3619 = vmatpush2.bf16.msra.mxu0 %v6116_v5  ;;  %v6405_v32 = vcombine.high %v848_v30, %v856_v31  ;;  %v6404_v34 = vcombine.low %v848_v30, %v856_v31  ;;  %v832_v35 = vld [vmem:[#allocation8 + $0xc80] sm:$0xff]  ;;  %v169_v30 = vrot.slane %v152_v49, %v7650_v23  ;;  %v433_v31 = vld [vmem:[#allocation8 + $0x8] sm:$0xff] }
  0xa2   :  { %3674 = vmatprep.subr.bf16.mxu0 %v6103_v13  ;;  %v840_v36 = vld [vmem:[#allocation8 + $0xcc0] sm:$0xff] }
  0xa3   :  { %3636 = vmatpush1.bf16.msra.mxu1 %v6324_v39  ;;  %v6389_v37 = vcombine.high %v832_v35, %v840_v36  ;;  %v6388_v38 = vcombine.low %v832_v35, %v840_v36  ;;  %v816_v39 = vld [vmem:[#allocation8 + $0xc00] sm:$0xff] }
  0xa4   :  { %3637 = vmatprep.subr.bf16.mxu1 %v6309_v42  ;;  %v824_v40 = vld [vmem:[#allocation8 + $0xc40] sm:$0xff] }
  0xa5   :  { %v6373_v41 = vcombine.high %v816_v39, %v824_v40  ;;  %v6372_v42 = vcombine.low %v816_v39, %v824_v40 }
  0xa7   :  { %3638 = vmatpush1.bf16.msra.mxu1 %v6308_v33  ;;  %v7621_v33 = vld [vmem:[#allocation8 + $0xb88] sm:$0xff] }
  0xa8   :  { %3639 = vmatprep.subr.bf16.mxu1 %v6293_v43  ;;  %v7623_v43 = vld [vmem:[#allocation8 + $0xbc8] sm:$0xff] }
  0xa9   :  { %v6359_v45 = vcombine.high %v7621_v33, %v7623_v43 }
  0xab   :  { %3640 = vmatpush1.bf16.msra.mxu1 %v6292_v44  ;;  %v6358_v44 = vcombine.low %v7621_v33, %v7623_v43 }
  0xac   :  { %3641 = vmatprep.subr.bf16.mxu1 %v6277_v51 }
  0xaf   :  { %3642 = vmatpush1.bf16.msra.mxu1 %v6276_v50  ;;  %v7635_v50 = vsub.s32 0, %v7629_v47 }
  0xb0   :  { %3643 = vmatprep.subr.bf16.mxu1 %v6261_v59 }
  0xb1   :  { %v157_v53 = vrot.slane %v152_v49, %v7635_v50 }
  0xb3   :  { %3644 = vmatpush1.bf16.msra.mxu1 %v6260_v58 }
  0xb4   :  { %3645 = vmatprep.subr.bf16.mxu1 %v6245_v4 }
  0xb7   :  { %3646 = vmatpush1.bf16.msra.mxu1 %v6244_v3 }
  0xb8   :  { %3647 = vmatprep.subr.bf16.mxu1 %v6485_v9  ;;  %v521_v9 = vld [vmem:[#allocation8 + $0x2c8] sm:$0xff] }
  0xb9   :  { %v6071_v13 = vcombine.high %v513_v7, %v521_v9 }
  0xbb   :  { %3648 = vmatpush2.bf16.msra.mxu1 %v6484_v11  ;;  %v6086_v11 = vcombine.low %v529_v1, %v537_v2  ;;  %v641_v2 = vld [vmem:[#allocation8 + $0x688] sm:$0xff] }
  0xbc   :  { %3649 = vmatprep.subr.bf16.mxu1 %v6469_v17  ;;  %v6055_v17 = vcombine.high %v497_v14, %v505_v15 }
  0xbf   :  { %3650 = vmatpush2.bf16.msra.mxu1 %v6468_v16  ;;  %v6070_v16 = vcombine.low %v513_v7, %v521_v9  ;;  %v769_v7 = vld [vmem:[#allocation8 + $0xa88] sm:$0xff] }
  0xc0   :  { %3651 = vmatprep.subr.bf16.mxu1 %v6453_v21  ;;  %v6039_v21 = vcombine.high %v481_v18, %v489_v19  ;;  %v777_v9 = vld [vmem:[#allocation8 + $0xac8] sm:$0xff] }
  0xc1   :  { %v753_v18 = vld [vmem:[#allocation8 + $0xa08] sm:$0xff] }
  0xc2   :  { %v761_v19 = vld [vmem:[#allocation8 + $0xa48] sm:$0xff] }
  0xc3   :  { %3652 = vmatpush2.bf16.msra.mxu1 %v6452_v20  ;;  %v6054_v20 = vcombine.low %v497_v14, %v505_v15  ;;  %v6327_v15 = vcombine.high %v769_v7, %v777_v9  ;;  %v6311_v43 = vcombine.high %v753_v18, %v761_v19 }
  0xc4   :  { %3653 = vmatprep.subr.bf16.mxu1 %v6437_v25  ;;  %v457_v25 = vld [vmem:[#allocation8 + $0xc8] sm:$0xff] }
  0xc7   :  { %3654 = vmatpush2.bf16.msra.mxu1 %v6436_v24  ;;  %v449_v24 = vld [vmem:[#allocation8 + $0x88] sm:$0xff] }
  0xc8   :  { %3655 = vmatprep.subr.bf16.mxu1 %v6421_v29  ;;  %v6007_v29 = vcombine.high %v449_v24, %v457_v25  ;;  %v6006_v36 = vcombine.low %v449_v24, %v457_v25  ;;  %v6310_v24 = vcombine.low %v753_v18, %v761_v19  ;;  %v905_v19 = vld [vmem:[#allocation8 + $0xec8] sm:$0xff] }
  0xcb   :  { %3656 = vmatpush2.bf16.msra.mxu1 %v6420_v28 }
  0xcc   :  { %3657 = vmatprep.subr.bf16.mxu1 %v6405_v32  ;;  %v441_v32 = vld [vmem:[#allocation8 + $0x48] sm:$0xff] }
  0xcf   :  { %3658 = vmatpush2.bf16.msra.mxu1 %v6404_v34  ;;  %v165_v34 = vrot.slane %v152_v49, %v7653_v26 }
  0xd0   :  { %3659 = vmatprep.subr.bf16.mxu1 %v6389_v37 }
  0xd3   :  { %3660 = vmatpush2.bf16.msra.mxu1 %v6388_v38  ;;  %v5991_v38 = vcombine.high %v433_v31, %v441_v32 }
  0xd4   :  { %3661 = vmatprep.subr.bf16.mxu1 %v6373_v41  ;;  %v673_v41 = vld [vmem:[#allocation8 + $0x788] sm:$0xff] }
  0xd7   :  { %3662 = vmatpush2.bf16.msra.mxu1 %v6372_v42  ;;  %v681_v42 = vld [vmem:[#allocation8 + $0x7c8] sm:$0xff] }
  0xd8   :  { %3717 = vmatprep.subr.bf16.mxu1 %v6359_v45 }
 0x13a   :  { %v368_v51 = vpop.f32.mrf.mxu1 }
 0x13b   :  { %v369_v58 = vadd.f32 %v368_v51, %v157_v53 }
 0x13c   :  { %v370_v54 = vpop.f32.mrf.mxu1 }
 0x13d   :  { %v371_v56 = vadd.f32 %v370_v54, %v161_v52  ;;  %v420_v3 = vmax.f32 %v369_v58, 0.0  ;;  %v6231_v54 = vcombine.high %v673_v41, %v681_v42 }
 0x13e   :  { %v372_v55 = vpop.f32.mrf.mxu1 }
 0x13f   :  { %v373_v57 = vadd.f32 %v372_v55, %v157_v53  ;;  %v421_v62 = vmax.f32 %v371_v56, 0.0  ;;  %v657_v56 = vld [vmem:[#allocation8 + $0x708] sm:$0xff] }
 0x140   :  { %v374_v59 = vpop.f32.mrf.mxu1 }
 0x141   :  { %v375_v60 = vadd.f32 %v374_v59, %v161_v52  ;;  %v424_v61 = vmax.f32 %v373_v57, 0.0  ;;  %v5990_v52 = vcombine.low %v433_v31, %v441_v32  ;;  %v665_v57 = vld [vmem:[#allocation8 + $0x748] sm:$0xff] }
 0x142   :  { %v785_v59 = vld [vmem:[#allocation8 + $0xb08] sm:$0xff]  ;;  %v6215_v1 = vcombine.high %v657_v56, %v665_v57 }
 0x143   :  { %v425_v63 = vmax.f32 %v375_v60, 0.0  ;;  %v7641_v5 = vpack.c.bf16 %v424_v61, %v420_v3  ;;  %v793_v60 = vld [vmem:[#allocation8 + $0xb48] sm:$0xff] }
 0x144   :  { %v6343_v3 = vcombine.high %v785_v59, %v793_v60  ;;  %v729_v31 = vld [vmem:[#allocation8 + $0x948] sm:$0xff] }
 0x145   :  { %v7639_v4 = vpack.c.bf16 %v425_v63, %v421_v62  ;;  %v6230_v62 = vcombine.low %v673_v41, %v681_v42 }
 0x147   :  { %3620 = vmatprep.mubr.bf16.mxu0 %v7639_v4 }
 0x148   :  { %3621 = vmatmul.mubr.bf16.vlgmr.msra.gmra.mxu0 %v7641_v5 }
 0x149   :  { %3675 = vmatpush1.bf16.msra.mxu0 %v6102_v12  ;;  %3706 = vmatprep.mubr.bf16.mxu0 %v7639_v4  ;;  %v6023_v12 = vcombine.high %v465_v22, %v473_v8  ;;  %v617_v22 = vld [vmem:[#allocation8 + $0x5c8] sm:$0xff] }
 0x14a   :  { %3676 = vmatprep.subr.bf16.mxu0 %v6087_v6  ;;  %v649_v6 = vld [vmem:[#allocation8 + $0x6c8] sm:$0xff] }
 0x14b   :  { %v6199_v14 = vcombine.high %v641_v2, %v649_v6  ;;  %v737_v8 = vld [vmem:[#allocation8 + $0x988] sm:$0xff] }
 0x14d   :  { %3677 = vmatpush1.bf16.msra.mxu0 %v6086_v11  ;;  %v6214_v11 = vcombine.low %v657_v56, %v665_v57 }
 0x14e   :  { %3678 = vmatprep.subr.bf16.mxu0 %v6071_v13  ;;  %v6342_v13 = vcombine.low %v785_v59, %v793_v60  ;;  %v937_v59 = vld [vmem:[#allocation8 + $0xfc8] sm:$0xff]  ;;  %v546_v60 = vld [vmem:[#allocation8 + $0x390] sm:$0xff] }
 0x151   :  { %3679 = vmatpush1.bf16.msra.mxu0 %v6070_v16  ;;  %v625_v16 = vld [vmem:[#allocation8 + $0x608] sm:$0xff] }
 0x152   :  { %3680 = vmatprep.subr.bf16.mxu0 %v6055_v17  ;;  %v633_v17 = vld [vmem:[#allocation8 + $0x648] sm:$0xff] }
 0x153   :  { %v6183_v33 = vcombine.high %v625_v16, %v633_v17 }
 0x155   :  { %3681 = vmatpush1.bf16.msra.mxu0 %v6054_v20  ;;  %v6198_v20 = vcombine.low %v641_v2, %v649_v6 }
 0x156   :  { %3682 = vmatprep.subr.bf16.mxu0 %v6039_v21  ;;  %v6326_v21 = vcombine.low %v769_v7, %v777_v9  ;;  %v913_v7 = vld [vmem:[#allocation8 + $0xf08] sm:$0xff] }
 0x157   :  { %v921_v9 = vld [vmem:[#allocation8 + $0xf48] sm:$0xff] }
 0x159   :  { %3683 = vmatpush1.bf16.msra.mxu0 %v6038_v10  ;;  %v745_v10 = vld [vmem:[#allocation8 + $0x9c8] sm:$0xff] }
 0x15a   :  { %v411_v28 = vpop.f32.mrf.mxu1  ;;  %3684 = vmatprep.subr.bf16.mxu0 %v6023_v12  ;;  %v6182_v12 = vcombine.low %v625_v16, %v633_v17  ;;  %v6471_v16 = vcombine.high %v913_v7, %v921_v9  ;;  %v897_v17 = vld [vmem:[#allocation8 + $0xe88] sm:$0xff] }
 0x15b   :  { %v412_v45 = vadd.f32 %v411_v28, %v165_v34  ;;  %v593_v28 = vld [vmem:[#allocation8 + $0x508] sm:$0xff] }
 0x15c   :  { %v413_v35 = vpop.f32.mrf.mxu1 }
 0x15d   :  { %3685 = vmatpush1.bf16.msra.mxu0 %v6022_v27  ;;  %v414_v39 = vadd.f32 %v413_v35, %v169_v30  ;;  %v422_v58 = vmax.f32 %v412_v45, 0.0  ;;  %v6295_v27 = vcombine.high %v737_v8, %v745_v10 }
 0x15e   :  { %v415_v37 = vpop.f32.mrf.mxu1  ;;  %3686 = vmatprep.subr.bf16.mxu0 %v6007_v29  ;;  %v601_v29 = vld [vmem:[#allocation8 + $0x548] sm:$0xff] }
 0x15f   :  { %v416_v40 = vadd.f32 %v415_v37, %v165_v34  ;;  %v423_v55 = vmax.f32 %v414_v39, 0.0  ;;  %v6294_v34 = vcombine.low %v737_v8, %v745_v10  ;;  %v6151_v35 = vcombine.high %v593_v28, %v601_v29  ;;  %v577_v37 = vld [vmem:[#allocation8 + $0x488] sm:$0xff] }
 0x160   :  { %v417_v46 = vpop.f32.mrf.mxu1  ;;  %v705_v39 = vld [vmem:[#allocation8 + $0x888] sm:$0xff]  ;;  %v6150_v41 = vcombine.low %v593_v28, %v601_v29 }
 0x161   :  { %v418_v51 = vadd.f32 %v417_v46, %v169_v30  ;;  %3687 = vmatpush1.bf16.msra.mxu0 %v6006_v36  ;;  %v426_v53 = vmax.f32 %v416_v40, 0.0  ;;  %v721_v30 = vld [vmem:[#allocation8 + $0x908] sm:$0xff] }
 0x162   :  { %3688 = vmatprep.subr.bf16.mxu0 %v5991_v38  ;;  %v6279_v36 = vcombine.high %v721_v30, %v729_v31  ;;  %v585_v38 = vld [vmem:[#allocation8 + $0x4c8] sm:$0xff]  ;;  %v6278_v42 = vcombine.low %v721_v30, %v729_v31 }
 0x163   :  { %v427_v49 = vmax.f32 %v418_v51, 0.0  ;;  %v7659_v63 = vpack.c.bf16 %v426_v53, %v422_v58  ;;  %v713_v40 = vld [vmem:[#allocation8 + $0x8c8] sm:$0xff]  ;;  %v6135_v45 = vcombine.high %v577_v37, %v585_v38 }
 0x164   :  { %v6263_v46 = vcombine.high %v705_v39, %v713_v40  ;;  %v561_v51 = vld [vmem:[#allocation8 + $0x408] sm:$0xff] }
 0x165   :  { %v7657_v61 = vpack.c.bf16 %v427_v49, %v423_v55  ;;  %3689 = vmatpush1.bf16.msra.mxu0 %v5990_v52  ;;  %v569_v52 = vld [vmem:[#allocation8 + $0x448] sm:$0xff]  ;;  %v6134_v55 = vcombine.low %v577_v37, %v585_v38  ;;  %v6262_v49 = vcombine.low %v705_v39, %v713_v40 }
 0x166   :  { %3690 = vmatprep.subr.bf16.mxu0 %v6231_v54  ;;  %v689_v53 = vld [vmem:[#allocation8 + $0x808] sm:$0xff]  ;;  %v6119_v56 = vcombine.high %v561_v51, %v569_v52 }
 0x167   :  { %3663 = vmatprep.mubr.bf16.mxu1 %v7657_v61  ;;  %v697_v54 = vld [vmem:[#allocation8 + $0x848] sm:$0xff] }
 0x168   :  { %3664 = vmatmul.mubr.bf16.vlgmr.msra.gmra.mxu1 %v7659_v63  ;;  %v6247_v57 = vcombine.high %v689_v53, %v697_v54  ;;  %v929_v58 = vld [vmem:[#allocation8 + $0xf88] sm:$0xff]  ;;  %v6246_v2 = vcombine.low %v689_v53, %v697_v54 }
 0x169   :  { %3691 = vmatpush2.bf16.msra.mxu0 %v6230_v62  ;;  %3718 = vmatpush1.bf16.msra.mxu1 %v6358_v44  ;;  %v609_v44 = vld [vmem:[#allocation8 + $0x588] sm:$0xff]  ;;  %v554_v62 = vld [vmem:[#allocation8 + $0x3d0] sm:$0xff] }
 0x16a   :  { %3749 = vmatprep.mubr.bf16.mxu1 %v7657_v61  ;;  %3692 = vmatprep.subr.bf16.mxu0 %v6215_v1  ;;  %v6167_v25 = vcombine.high %v609_v44, %v617_v22  ;;  %v6166_v32 = vcombine.low %v609_v44, %v617_v22  ;;  %v6118_v1 = vcombine.low %v561_v51, %v569_v52  ;;  %v881_v8 = vld [vmem:[#allocation8 + $0xe08] sm:$0xff] }
 0x16b   :  { %3719 = vmatprep.subr.bf16.mxu1 %v6343_v3  ;;  %v6487_v3 = vcombine.high %v929_v58, %v937_v59  ;;  %v6105_v6 = vcombine.high %v546_v60, %v554_v62  ;;  %v6455_v44 = vcombine.high %v897_v17, %v905_v19  ;;  %v889_v10 = vld [vmem:[#allocation8 + $0xe48] sm:$0xff] }
 0x16c   :  { %v6439_v28 = vcombine.high %v881_v8, %v889_v10  ;;  %v865_v30 = vld [vmem:[#allocation8 + $0xd88] sm:$0xff] }
 0x16d   :  { %3693 = vmatpush2.bf16.msra.mxu0 %v6214_v11  ;;  %3720 = vmatpush1.bf16.msra.mxu1 %v6342_v13  ;;  %v530_v11 = vld [vmem:[#allocation8 + $0x310] sm:$0xff]  ;;  %v873_v31 = vld [vmem:[#allocation8 + $0xdc8] sm:$0xff] }
 0x16e   :  { %3694 = vmatprep.subr.bf16.mxu0 %v6199_v14  ;;  %3721 = vmatprep.subr.bf16.mxu1 %v6327_v15  ;;  %v538_v13 = vld [vmem:[#allocation8 + $0x350] sm:$0xff]  ;;  %v6486_v14 = vcombine.low %v929_v58, %v937_v59  ;;  %v6104_v15 = vcombine.low %v546_v60, %v554_v62  ;;  %v6423_v37 = vcombine.high %v865_v30, %v873_v31  ;;  %v849_v39 = vld [vmem:[#allocation8 + $0xd08] sm:$0xff] }
 0x16f   :  { %v6089_v18 = vcombine.high %v530_v11, %v538_v13  ;;  %v857_v40 = vld [vmem:[#allocation8 + $0xd48] sm:$0xff] }
 0x170   :  { %v6407_v51 = vcombine.high %v849_v39, %v857_v40  ;;  %v833_v53 = vld [vmem:[#allocation8 + $0xc88] sm:$0xff] }
 0x171   :  { %3695 = vmatpush2.bf16.msra.mxu0 %v6198_v20  ;;  %3722 = vmatpush1.bf16.msra.mxu1 %v6326_v21  ;;  %v514_v20 = vld [vmem:[#allocation8 + $0x290] sm:$0xff]  ;;  %v841_v54 = vld [vmem:[#allocation8 + $0xcc8] sm:$0xff] }
 0x172   :  { %3696 = vmatprep.subr.bf16.mxu0 %v6183_v33  ;;  %3723 = vmatprep.subr.bf16.mxu1 %v6311_v43  ;;  %v522_v21 = vld [vmem:[#allocation8 + $0x2d0] sm:$0xff]  ;;  %v6470_v33 = vcombine.low %v913_v7, %v921_v9  ;;  %v6088_v43 = vcombine.low %v530_v11, %v538_v13  ;;  %v6391_v58 = vcombine.high %v833_v53, %v841_v54  ;;  %v817_v60 = vld [vmem:[#allocation8 + $0xc08] sm:$0xff] }
 0x173   :  { %v6073_v22 = vcombine.high %v514_v20, %v522_v21  ;;  %v825_v62 = vld [vmem:[#allocation8 + $0xc48] sm:$0xff]  ;;  %v674_v11 = vld [vmem:[#allocation8 + $0x790] sm:$0xff] }
 0x174   :  { %v6375_v7 = vcombine.high %v817_v60, %v825_v62  ;;  %v682_v13 = vld [vmem:[#allocation8 + $0x7d0] sm:$0xff] }
 0x175   :  { %3697 = vmatpush2.bf16.msra.mxu0 %v6182_v12  ;;  %3724 = vmatpush1.bf16.msra.mxu1 %v6310_v24  ;;  %v498_v12 = vld [vmem:[#allocation8 + $0x210] sm:$0xff] }
 0x176   :  { %3698 = vmatprep.subr.bf16.mxu0 %v6167_v25  ;;  %3725 = vmatprep.subr.bf16.mxu1 %v6295_v27  ;;  %v506_v24 = vld [vmem:[#allocation8 + $0x250] sm:$0xff]  ;;  %v6454_v25 = vcombine.low %v897_v17, %v905_v19  ;;  %v6072_v27 = vcombine.low %v514_v20, %v522_v21 }
 0x177   :  { %v6057_v29 = vcombine.high %v498_v12, %v506_v24  ;;  %v658_v20 = vld [vmem:[#allocation8 + $0x710] sm:$0xff] }
 0x178   :  { %v666_v21 = vld [vmem:[#allocation8 + $0x750] sm:$0xff] }
 0x179   :  { %3699 = vmatpush2.bf16.msra.mxu0 %v6166_v32  ;;  %3726 = vmatpush1.bf16.msra.mxu1 %v6294_v34  ;;  %v482_v32 = vld [vmem:[#allocation8 + $0x190] sm:$0xff] }
 0x17a   :  { %3700 = vmatprep.subr.bf16.mxu0 %v6151_v35  ;;  %3727 = vmatprep.subr.bf16.mxu1 %v6279_v36  ;;  %v490_v34 = vld [vmem:[#allocation8 + $0x1d0] sm:$0xff]  ;;  %v6438_v35 = vcombine.low %v881_v8, %v889_v10  ;;  %v6056_v36 = vcombine.low %v498_v12, %v506_v24  ;;  %v6217_v8 = vcombine.high %v658_v20, %v666_v21 }
 0x17b   :  { %v6041_v38 = vcombine.high %v482_v32, %v490_v34  ;;  %v642_v10 = vld [vmem:[#allocation8 + $0x690] sm:$0xff] }
 0x17c   :  { %v650_v24 = vld [vmem:[#allocation8 + $0x6d0] sm:$0xff] }
 0x17d   :  { %3701 = vmatpush2.bf16.msra.mxu0 %v6150_v41  ;;  %3728 = vmatpush1.bf16.msra.mxu1 %v6278_v42  ;;  %v466_v41 = vld [vmem:[#allocation8 + $0x110] sm:$0xff] }
 0x17e   :  { %3702 = vmatprep.subr.bf16.mxu0 %v6135_v45  ;;  %3729 = vmatprep.subr.bf16.mxu1 %v6263_v46  ;;  %v474_v42 = vld [vmem:[#allocation8 + $0x150] sm:$0xff]  ;;  %v6422_v45 = vcombine.low %v865_v30, %v873_v31  ;;  %v6040_v46 = vcombine.low %v482_v32, %v490_v34  ;;  %v6201_v30 = vcombine.high %v642_v10, %v650_v24 }
 0x17f   :  { %v6025_v52 = vcombine.high %v466_v41, %v474_v42  ;;  %v626_v32 = vld [vmem:[#allocation8 + $0x610] sm:$0xff] }
 0x180   :  { %v634_v34 = vld [vmem:[#allocation8 + $0x650] sm:$0xff] }
 0x181   :  { %3703 = vmatpush2.bf16.msra.mxu0 %v6134_v55  ;;  %3730 = vmatpush1.bf16.msra.mxu1 %v6262_v49  ;;  %v450_v55 = vld [vmem:[#allocation8 + $0x90] sm:$0xff] }
 0x182   :  { %3704 = vmatprep.subr.bf16.mxu0 %v6119_v56  ;;  %3731 = vmatprep.subr.bf16.mxu1 %v6247_v57  ;;  %v458_v49 = vld [vmem:[#allocation8 + $0xd0] sm:$0xff]  ;;  %v6406_v56 = vcombine.low %v849_v39, %v857_v40  ;;  %v6024_v57 = vcombine.low %v466_v41, %v474_v42  ;;  %v6185_v39 = vcombine.high %v626_v32, %v634_v34 }
 0x183   :  { %v6009_v59 = vcombine.high %v450_v55, %v458_v49  ;;  %v610_v41 = vld [vmem:[#allocation8 + $0x590] sm:$0xff] }
 0x184   :  { %v618_v42 = vld [vmem:[#allocation8 + $0x5d0] sm:$0xff] }
 0x185   :  { %3705 = vmatpush2.bf16.msra.mxu0 %v6118_v1  ;;  %3732 = vmatpush1.bf16.msra.mxu1 %v6246_v2  ;;  %v434_v1 = vld [vmem:[#allocation8 + $0x10] sm:$0xff] }
 0x186   :  { %3733 = vmatprep.subr.bf16.mxu1 %v6487_v3  ;;  %3760 = vmatprep.subr.bf16.mxu0 %v6105_v6  ;;  %v442_v2 = vld [vmem:[#allocation8 + $0x50] sm:$0xff]  ;;  %v6390_v3 = vcombine.low %v833_v53, %v841_v54  ;;  %v6008_v6 = vcombine.low %v450_v55, %v458_v49  ;;  %v6169_v53 = vcombine.high %v610_v41, %v618_v42 }
 0x187   :  { %v5993_v9 = vcombine.high %v434_v1, %v442_v2  ;;  %v5992_v17 = vcombine.low %v434_v1, %v442_v2  ;;  %v594_v55 = vld [vmem:[#allocation8 + $0x510] sm:$0xff] }
 0x188   :  { %3707 = vmatmul.mubr.bf16.vlgmr.msra.gmra.mxu0 %v7641_v5  ;;  %v602_v49 = vld [vmem:[#allocation8 + $0x550] sm:$0xff] }
 0x189   :  { %3734 = vmatpush2.bf16.msra.mxu1 %v6486_v14  ;;  %3761 = vmatpush1.bf16.msra.mxu0 %v6104_v15  ;;  %v802_v14 = vld [vmem:[#allocation8 + $0xb90] sm:$0xff] }
 0x18a   :  { %3792 = vmatprep.mubr.bf16.mxu0 %v7639_v4  ;;  %3735 = vmatprep.subr.bf16.mxu1 %v6471_v16  ;;  %v810_v15 = vld [vmem:[#allocation8 + $0xbd0] sm:$0xff]  ;;  %v6374_v16 = vcombine.low %v817_v60, %v825_v62  ;;  %v6153_v60 = vcombine.high %v594_v55, %v602_v49 }
 0x18b   :  { %3762 = vmatprep.subr.bf16.mxu0 %v6089_v18  ;;  %v6233_v18 = vcombine.high %v674_v11, %v682_v13  ;;  %v6361_v19 = vcombine.high %v802_v14, %v810_v15  ;;  %v578_v1 = vld [vmem:[#allocation8 + $0x490] sm:$0xff] }
 0x18c   :  { %v586_v2 = vld [vmem:[#allocation8 + $0x4d0] sm:$0xff] }
 0x18d   :  { %3736 = vmatpush2.bf16.msra.mxu1 %v6470_v33  ;;  %3763 = vmatpush1.bf16.msra.mxu0 %v6088_v43  ;;  %v786_v33 = vld [vmem:[#allocation8 + $0xb10] sm:$0xff] }
 0x18e   :  { %3737 = vmatprep.subr.bf16.mxu1 %v6455_v44  ;;  %3764 = vmatprep.subr.bf16.mxu0 %v6073_v22  ;;  %v794_v43 = vld [vmem:[#allocation8 + $0xb50] sm:$0xff]  ;;  %v6232_v44 = vcombine.low %v674_v11, %v682_v13  ;;  %v6360_v22 = vcombine.low %v802_v14, %v810_v15  ;;  %v6137_v11 = vcombine.high %v578_v1, %v586_v2 }
 0x18f   :  { %v6345_v12 = vcombine.high %v786_v33, %v794_v43  ;;  %v562_v14 = vld [vmem:[#allocation8 + $0x410] sm:$0xff] }
 0x190   :  { %v570_v15 = vld [vmem:[#allocation8 + $0x450] sm:$0xff] }
 0x191   :  { %3738 = vmatpush2.bf16.msra.mxu1 %v6454_v25  ;;  %3765 = vmatpush1.bf16.msra.mxu0 %v6072_v27  ;;  %v770_v25 = vld [vmem:[#allocation8 + $0xa90] sm:$0xff] }
 0x192   :  { %3739 = vmatprep.subr.bf16.mxu1 %v6439_v28  ;;  %3766 = vmatprep.subr.bf16.mxu0 %v6057_v29  ;;  %v778_v27 = vld [vmem:[#allocation8 + $0xad0] sm:$0xff]  ;;  %v6216_v28 = vcombine.low %v658_v20, %v666_v21  ;;  %v6344_v29 = vcombine.low %v786_v33, %v794_v43  ;;  %v6121_v20 = vcombine.high %v562_v14, %v570_v15 }
 0x193   :  { %v6329_v31 = vcombine.high %v770_v25, %v778_v27  ;;  %v930_v33 = vld [vmem:[#allocation8 + $0xf90] sm:$0xff] }
 0x194   :  { %v938_v43 = vld [vmem:[#allocation8 + $0xfd0] sm:$0xff] }
 0x195   :  { %3740 = vmatpush2.bf16.msra.mxu1 %v6438_v35  ;;  %3767 = vmatpush1.bf16.msra.mxu0 %v6056_v36  ;;  %v754_v35 = vld [vmem:[#allocation8 + $0xa10] sm:$0xff] }
 0x196   :  { %3741 = vmatprep.subr.bf16.mxu1 %v6423_v37  ;;  %3768 = vmatprep.subr.bf16.mxu0 %v6041_v38  ;;  %v762_v36 = vld [vmem:[#allocation8 + $0xa50] sm:$0xff]  ;;  %v6200_v37 = vcombine.low %v642_v10, %v650_v24  ;;  %v6328_v38 = vcombine.low %v770_v25, %v778_v27 }
 0x197   :  { %v6313_v40 = vcombine.high %v754_v35, %v762_v36  ;;  %v914_v25 = vld [vmem:[#allocation8 + $0xf10] sm:$0xff] }
 0x198   :  { %v922_v27 = vld [vmem:[#allocation8 + $0xf50] sm:$0xff] }
 0x199   :  { %3742 = vmatpush2.bf16.msra.mxu1 %v6422_v45  ;;  %3769 = vmatpush1.bf16.msra.mxu0 %v6040_v46  ;;  %v738_v45 = vld [vmem:[#allocation8 + $0x990] sm:$0xff] }
 0x19a   :  { %3743 = vmatprep.subr.bf16.mxu1 %v6407_v51  ;;  %3770 = vmatprep.subr.bf16.mxu0 %v6025_v52  ;;  %v746_v46 = vld [vmem:[#allocation8 + $0x9d0] sm:$0xff]  ;;  %v6184_v51 = vcombine.low %v626_v32, %v634_v34  ;;  %v6312_v52 = vcombine.low %v754_v35, %v762_v36  ;;  %v6473_v32 = vcombine.high %v914_v25, %v922_v27 }
 0x19b   :  { %v6297_v54 = vcombine.high %v738_v45, %v746_v46  ;;  %v898_v34 = vld [vmem:[#allocation8 + $0xe90] sm:$0xff] }
 0x19c   :  { %v906_v36 = vld [vmem:[#allocation8 + $0xed0] sm:$0xff] }
 0x19d   :  { %3744 = vmatpush2.bf16.msra.mxu1 %v6406_v56  ;;  %3771 = vmatpush1.bf16.msra.mxu0 %v6024_v57  ;;  %v722_v56 = vld [vmem:[#allocation8 + $0x910] sm:$0xff] }
 0x19e   :  { %3745 = vmatprep.subr.bf16.mxu1 %v6391_v58  ;;  %3772 = vmatprep.subr.bf16.mxu0 %v6009_v59  ;;  %v730_v57 = vld [vmem:[#allocation8 + $0x950] sm:$0xff]  ;;  %v6168_v58 = vcombine.low %v610_v41, %v618_v42  ;;  %v6296_v59 = vcombine.low %v738_v45, %v746_v46  ;;  %v6457_v41 = vcombine.high %v898_v34, %v906_v36 }
 0x19f   :  { %v6281_v62 = vcombine.high %v722_v56, %v730_v57  ;;  %v882_v45 = vld [vmem:[#allocation8 + $0xe10] sm:$0xff] }
 0x1a0   :  { %v890_v46 = vld [vmem:[#allocation8 + $0xe50] sm:$0xff] }
 0x1a1   :  { %3746 = vmatpush2.bf16.msra.mxu1 %v6390_v3  ;;  %3773 = vmatpush1.bf16.msra.mxu0 %v6008_v6  ;;  %v706_v3 = vld [vmem:[#allocation8 + $0x890] sm:$0xff] }
 0x1a2   :  { %3747 = vmatprep.subr.bf16.mxu1 %v6375_v7  ;;  %3774 = vmatprep.subr.bf16.mxu0 %v5993_v9  ;;  %v714_v6 = vld [vmem:[#allocation8 + $0x8d0] sm:$0xff]  ;;  %v6152_v7 = vcombine.low %v594_v55, %v602_v49  ;;  %v6280_v9 = vcombine.low %v722_v56, %v730_v57  ;;  %v6441_v55 = vcombine.high %v882_v45, %v890_v46 }
 0x1a3   :  { %v6265_v13 = vcombine.high %v706_v3, %v714_v6  ;;  %v866_v56 = vld [vmem:[#allocation8 + $0xd90] sm:$0xff] }
 0x1a4   :  { %v874_v57 = vld [vmem:[#allocation8 + $0xdd0] sm:$0xff] }
 0x1a5   :  { %3748 = vmatpush2.bf16.msra.mxu1 %v6374_v16  ;;  %3775 = vmatpush1.bf16.msra.mxu0 %v5992_v17  ;;  %v690_v16 = vld [vmem:[#allocation8 + $0x810] sm:$0xff] }
 0x1a6   :  { %3776 = vmatprep.subr.bf16.mxu0 %v6233_v18  ;;  %3803 = vmatprep.subr.bf16.mxu1 %v6361_v19  ;;  %v698_v17 = vld [vmem:[#allocation8 + $0x850] sm:$0xff]  ;;  %v6136_v18 = vcombine.low %v578_v1, %v586_v2  ;;  %v6264_v19 = vcombine.low %v706_v3, %v714_v6  ;;  %v6425_v1 = vcombine.high %v866_v56, %v874_v57 }
 0x1a7   :  { %v6249_v21 = vcombine.high %v690_v16, %v698_v17  ;;  %v6248_v10 = vcombine.low %v690_v16, %v698_v17  ;;  %v850_v3 = vld [vmem:[#allocation8 + $0xd10] sm:$0xff] }
 0x1a8   :  { %3750 = vmatmul.mubr.bf16.vlgmr.msra.gmra.mxu1 %v7659_v63  ;;  %v858_v6 = vld [vmem:[#allocation8 + $0xd50] sm:$0xff] }
 0x1a9   :  { %3777 = vmatpush2.bf16.msra.mxu0 %v6232_v44  ;;  %3804 = vmatpush1.bf16.msra.mxu1 %v6360_v22  ;;  %v547_v44 = vld [vmem:[#allocation8 + $0x398] sm:$0xff]  ;;  %v834_v16 = vld [vmem:[#allocation8 + $0xc90] sm:$0xff] }
 0x1aa   :  { %3835 = vmatprep.mubr.bf16.mxu1 %v7657_v61  ;;  %3778 = vmatprep.subr.bf16.mxu0 %v6217_v8  ;;  %v555_v22 = vld [vmem:[#allocation8 + $0x3d8] sm:$0xff]  ;;  %v6120_v8 = vcombine.low %v562_v14, %v570_v15  ;;  %v6409_v14 = vcombine.high %v850_v3, %v858_v6  ;;  %v842_v17 = vld [vmem:[#allocation8 + $0xcd0] sm:$0xff] }
 0x1ab   :  { %3805 = vmatprep.subr.bf16.mxu1 %v6345_v12  ;;  %v6489_v12 = vcombine.high %v930_v33, %v938_v43  ;;  %v6107_v24 = vcombine.high %v547_v44, %v555_v22 }
 0x1ad   :  { %3779 = vmatpush2.bf16.msra.mxu0 %v6216_v28  ;;  %3806 = vmatpush1.bf16.msra.mxu1 %v6344_v29  ;;  %v531_v28 = vld [vmem:[#allocation8 + $0x318] sm:$0xff] }
 0x1ae   :  { %3780 = vmatprep.subr.bf16.mxu0 %v6201_v30  ;;  %3807 = vmatprep.subr.bf16.mxu1 %v6329_v31  ;;  %v539_v29 = vld [vmem:[#allocation8 + $0x358] sm:$0xff]  ;;  %v6488_v30 = vcombine.low %v930_v33, %v938_v43  ;;  %v6106_v31 = vcombine.low %v547_v44, %v555_v22  ;;  %v6393_v33 = vcombine.high %v834_v16, %v842_v17  ;;  %v818_v44 = vld [vmem:[#allocation8 + $0xc10] sm:$0xff] }
 0x1af   :  { %v6091_v35 = vcombine.high %v531_v28, %v539_v29  ;;  %v826_v22 = vld [vmem:[#allocation8 + $0xc50] sm:$0xff] }
 0x1b1   :  { %3781 = vmatpush2.bf16.msra.mxu0 %v6200_v37  ;;  %3808 = vmatpush1.bf16.msra.mxu1 %v6328_v38  ;;  %v515_v37 = vld [vmem:[#allocation8 + $0x298] sm:$0xff] }
 0x1b2   :  { %3782 = vmatprep.subr.bf16.mxu0 %v6185_v39  ;;  %3809 = vmatprep.subr.bf16.mxu1 %v6313_v40  ;;  %v523_v38 = vld [vmem:[#allocation8 + $0x2d8] sm:$0xff]  ;;  %v6472_v39 = vcombine.low %v914_v25, %v922_v27  ;;  %v6090_v40 = vcombine.low %v531_v28, %v539_v29  ;;  %v6377_v25 = vcombine.high %v818_v44, %v826_v22 }
 0x1b3   :  { %v6075_v42 = vcombine.high %v515_v37, %v523_v38  ;;  %v675_v28 = vld [vmem:[#allocation8 + $0x798] sm:$0xff] }
 0x1b4   :  { %v683_v29 = vld [vmem:[#allocation8 + $0x7d8] sm:$0xff] }
 0x1b5   :  { %3783 = vmatpush2.bf16.msra.mxu0 %v6184_v51  ;;  %3810 = vmatpush1.bf16.msra.mxu1 %v6312_v52  ;;  %v499_v51 = vld [vmem:[#allocation8 + $0x218] sm:$0xff] }
 0x1b6   :  { %3784 = vmatprep.subr.bf16.mxu0 %v6169_v53  ;;  %3811 = vmatprep.subr.bf16.mxu1 %v6297_v54  ;;  %v507_v52 = vld [vmem:[#allocation8 + $0x258] sm:$0xff]  ;;  %v6456_v53 = vcombine.low %v898_v34, %v906_v36  ;;  %v6074_v54 = vcombine.low %v515_v37, %v523_v38 }
 0x1b7   :  { %v6059_v49 = vcombine.high %v499_v51, %v507_v52  ;;  %v659_v37 = vld [vmem:[#allocation8 + $0x718] sm:$0xff] }
 0x1b8   :  { %v667_v38 = vld [vmem:[#allocation8 + $0x758] sm:$0xff] }
 0x1b9   :  { %3785 = vmatpush2.bf16.msra.mxu0 %v6168_v58  ;;  %3812 = vmatpush1.bf16.msra.mxu1 %v6296_v59  ;;  %v483_v58 = vld [vmem:[#allocation8 + $0x198] sm:$0xff] }
 0x1ba   :  { %3786 = vmatprep.subr.bf16.mxu0 %v6153_v60  ;;  %3813 = vmatprep.subr.bf16.mxu1 %v6281_v62  ;;  %v491_v59 = vld [vmem:[#allocation8 + $0x1d8] sm:$0xff]  ;;  %v6440_v60 = vcombine.low %v882_v45, %v890_v46  ;;  %v6058_v62 = vcombine.low %v499_v51, %v507_v52  ;;  %v6219_v45 = vcombine.high %v659_v37, %v667_v38 }
 0x1bb   :  { %v6043_v2 = vcombine.high %v483_v58, %v491_v59  ;;  %v643_v46 = vld [vmem:[#allocation8 + $0x698] sm:$0xff] }
 0x1bc   :  { %v651_v52 = vld [vmem:[#allocation8 + $0x6d8] sm:$0xff] }
 0x1bd   :  { %3787 = vmatpush2.bf16.msra.mxu0 %v6152_v7  ;;  %3814 = vmatpush1.bf16.msra.mxu1 %v6280_v9  ;;  %v467_v7 = vld [vmem:[#allocation8 + $0x118] sm:$0xff] }
 0x1be   :  { %3788 = vmatprep.subr.bf16.mxu0 %v6137_v11  ;;  %3815 = vmatprep.subr.bf16.mxu1 %v6265_v13  ;;  %v475_v9 = vld [vmem:[#allocation8 + $0x158] sm:$0xff]  ;;  %v6424_v11 = vcombine.low %v866_v56, %v874_v57  ;;  %v6042_v13 = vcombine.low %v483_v58, %v491_v59  ;;  %v6203_v56 = vcombine.high %v643_v46, %v651_v52 }
 0x1bf   :  { %v6027_v15 = vcombine.high %v467_v7, %v475_v9  ;;  %v627_v58 = vld [vmem:[#allocation8 + $0x618] sm:$0xff] }
 0x1c0   :  { %v635_v59 = vld [vmem:[#allocation8 + $0x658] sm:$0xff] }
 0x1c1   :  { %3789 = vmatpush2.bf16.msra.mxu0 %v6136_v18  ;;  %3816 = vmatpush1.bf16.msra.mxu1 %v6264_v19  ;;  %v451_v18 = vld [vmem:[#allocation8 + $0x98] sm:$0xff] }
 0x1c2   :  { %3790 = vmatprep.subr.bf16.mxu0 %v6121_v20  ;;  %3817 = vmatprep.subr.bf16.mxu1 %v6249_v21  ;;  %v459_v19 = vld [vmem:[#allocation8 + $0xd8] sm:$0xff]  ;;  %v6408_v20 = vcombine.low %v850_v3, %v858_v6  ;;  %v6026_v21 = vcombine.low %v467_v7, %v475_v9  ;;  %v6187_v3 = vcombine.high %v627_v58, %v635_v59 }
 0x1c3   :  { %v6011_v43 = vcombine.high %v451_v18, %v459_v19  ;;  %v611_v7 = vld [vmem:[#allocation8 + $0x598] sm:$0xff] }
 0x1c4   :  { %v619_v9 = vld [vmem:[#allocation8 + $0x5d8] sm:$0xff] }
 0x1c5   :  { %3791 = vmatpush2.bf16.msra.mxu0 %v6120_v8  ;;  %3818 = vmatpush1.bf16.msra.mxu1 %v6248_v10  ;;  %v435_v8 = vld [vmem:[#allocation8 + $0x18] sm:$0xff] }
 0x1c6   :  { %3819 = vmatprep.subr.bf16.mxu1 %v6489_v12  ;;  %3846 = vmatprep.subr.bf16.mxu0 %v6107_v24  ;;  %v443_v10 = vld [vmem:[#allocation8 + $0x58] sm:$0xff]  ;;  %v6392_v12 = vcombine.low %v834_v16, %v842_v17  ;;  %v6010_v24 = vcombine.low %v451_v18, %v459_v19  ;;  %v6171_v16 = vcombine.high %v611_v7, %v619_v9 }
 0x1c7   :  { %v5995_v27 = vcombine.high %v435_v8, %v443_v10  ;;  %v5994_v34 = vcombine.low %v435_v8, %v443_v10  ;;  %v595_v18 = vld [vmem:[#allocation8 + $0x518] sm:$0xff] }
 0x1c8   :  { %3793 = vmatmul.mubr.bf16.vlgmr.msra.gmra.mxu0 %v7641_v5  ;;  %v603_v19 = vld [vmem:[#allocation8 + $0x558] sm:$0xff] }
 0x1c9   :  { %3820 = vmatpush2.bf16.msra.mxu1 %v6488_v30  ;;  %3847 = vmatpush1.bf16.msra.mxu0 %v6106_v31  ;;  %v803_v30 = vld [vmem:[#allocation8 + $0xb98] sm:$0xff] }
 0x1ca   :  { %3878 = vmatprep.mubr.bf16.mxu0 %v7639_v4  ;;  %3821 = vmatprep.subr.bf16.mxu1 %v6473_v32  ;;  %v811_v31 = vld [vmem:[#allocation8 + $0xbd8] sm:$0xff]  ;;  %v6376_v32 = vcombine.low %v818_v44, %v826_v22  ;;  %v6155_v44 = vcombine.high %v595_v18, %v603_v19 }
 0x1cb   :  { %3848 = vmatprep.subr.bf16.mxu0 %v6091_v35  ;;  %v6235_v35 = vcombine.high %v675_v28, %v683_v29  ;;  %v6363_v36 = vcombine.high %v803_v30, %v811_v31  ;;  %v579_v8 = vld [vmem:[#allocation8 + $0x498] sm:$0xff] }
 0x1cc   :  { %v587_v10 = vld [vmem:[#allocation8 + $0x4d8] sm:$0xff] }
 0x1cd   :  { %3822 = vmatpush2.bf16.msra.mxu1 %v6472_v39  ;;  %3849 = vmatpush1.bf16.msra.mxu0 %v6090_v40  ;;  %v787_v39 = vld [vmem:[#allocation8 + $0xb18] sm:$0xff] }
 0x1ce   :  { %3823 = vmatprep.subr.bf16.mxu1 %v6457_v41  ;;  %3850 = vmatprep.subr.bf16.mxu0 %v6075_v42  ;;  %v795_v40 = vld [vmem:[#allocation8 + $0xb58] sm:$0xff]  ;;  %v6234_v41 = vcombine.low %v675_v28, %v683_v29  ;;  %v6362_v42 = vcombine.low %v803_v30, %v811_v31  ;;  %v6139_v28 = vcombine.high %v579_v8, %v587_v10 }
 0x1cf   :  { %v6347_v51 = vcombine.high %v787_v39, %v795_v40  ;;  %v563_v30 = vld [vmem:[#allocation8 + $0x418] sm:$0xff] }
 0x1d0   :  { %v571_v31 = vld [vmem:[#allocation8 + $0x458] sm:$0xff] }
 0x1d1   :  { %3824 = vmatpush2.bf16.msra.mxu1 %v6456_v53  ;;  %3851 = vmatpush1.bf16.msra.mxu0 %v6074_v54  ;;  %v771_v53 = vld [vmem:[#allocation8 + $0xa98] sm:$0xff] }
 0x1d2   :  { %3825 = vmatprep.subr.bf16.mxu1 %v6441_v55  ;;  %3852 = vmatprep.subr.bf16.mxu0 %v6059_v49  ;;  %v779_v54 = vld [vmem:[#allocation8 + $0xad8] sm:$0xff]  ;;  %v6218_v55 = vcombine.low %v659_v37, %v667_v38  ;;  %v6346_v49 = vcombine.low %v787_v39, %v795_v40  ;;  %v6123_v37 = vcombine.high %v563_v30, %v571_v31 }
 0x1d3   :  { %v6331_v57 = vcombine.high %v771_v53, %v779_v54  ;;  %v931_v39 = vld [vmem:[#allocation8 + $0xf98] sm:$0xff] }
 0x1d4   :  { %v939_v40 = vld [vmem:[#allocation8 + $0xfd8] sm:$0xff] }
 0x1d5   :  { %3826 = vmatpush2.bf16.msra.mxu1 %v6440_v60  ;;  %3853 = vmatpush1.bf16.msra.mxu0 %v6058_v62  ;;  %v755_v60 = vld [vmem:[#allocation8 + $0xa18] sm:$0xff] }
 0x1d6   :  { %3827 = vmatprep.subr.bf16.mxu1 %v6425_v1  ;;  %3854 = vmatprep.subr.bf16.mxu0 %v6043_v2  ;;  %v763_v62 = vld [vmem:[#allocation8 + $0xa58] sm:$0xff]  ;;  %v6202_v1 = vcombine.low %v643_v46, %v651_v52  ;;  %v6330_v2 = vcombine.low %v771_v53, %v779_v54 }
 0x1d7   :  { %v6315_v6 = vcombine.high %v755_v60, %v763_v62  ;;  %v915_v53 = vld [vmem:[#allocation8 + $0xf18] sm:$0xff] }
 0x1d8   :  { %v923_v54 = vld [vmem:[#allocation8 + $0xf58] sm:$0xff] }
 0x1d9   :  { %3828 = vmatpush2.bf16.msra.mxu1 %v6424_v11  ;;  %3855 = vmatpush1.bf16.msra.mxu0 %v6042_v13  ;;  %v739_v11 = vld [vmem:[#allocation8 + $0x998] sm:$0xff] }
 0x1da   :  { %3829 = vmatprep.subr.bf16.mxu1 %v6409_v14  ;;  %3856 = vmatprep.subr.bf16.mxu0 %v6027_v15  ;;  %v747_v13 = vld [vmem:[#allocation8 + $0x9d8] sm:$0xff]  ;;  %v6186_v14 = vcombine.low %v627_v58, %v635_v59  ;;  %v6314_v15 = vcombine.low %v755_v60, %v763_v62  ;;  %v6475_v58 = vcombine.high %v915_v53, %v923_v54 }
 0x1db   :  { %v6299_v17 = vcombine.high %v739_v11, %v747_v13  ;;  %v899_v59 = vld [vmem:[#allocation8 + $0xe98] sm:$0xff] }
 0x1dc   :  { %v907_v62 = vld [vmem:[#allocation8 + $0xed8] sm:$0xff] }
 0x1dd   :  { %3830 = vmatpush2.bf16.msra.mxu1 %v6408_v20  ;;  %3857 = vmatpush1.bf16.msra.mxu0 %v6026_v21  ;;  %v723_v20 = vld [vmem:[#allocation8 + $0x918] sm:$0xff] }
 0x1de   :  { %3831 = vmatprep.subr.bf16.mxu1 %v6393_v33  ;;  %3858 = vmatprep.subr.bf16.mxu0 %v6011_v43  ;;  %v731_v21 = vld [vmem:[#allocation8 + $0x958] sm:$0xff]  ;;  %v6170_v33 = vcombine.low %v611_v7, %v619_v9  ;;  %v6298_v43 = vcombine.low %v739_v11, %v747_v13  ;;  %v6459_v7 = vcombine.high %v899_v59, %v907_v62 }
 0x1df   :  { %v6283_v22 = vcombine.high %v723_v20, %v731_v21  ;;  %v883_v11 = vld [vmem:[#allocation8 + $0xe18] sm:$0xff] }
 0x1e0   :  { %v891_v13 = vld [vmem:[#allocation8 + $0xe58] sm:$0xff] }
 0x1e1   :  { %3832 = vmatpush2.bf16.msra.mxu1 %v6392_v12  ;;  %3859 = vmatpush1.bf16.msra.mxu0 %v6010_v24  ;;  %v707_v12 = vld [vmem:[#allocation8 + $0x898] sm:$0xff] }
 0x1e2   :  { %3833 = vmatprep.subr.bf16.mxu1 %v6377_v25  ;;  %3860 = vmatprep.subr.bf16.mxu0 %v5995_v27  ;;  %v715_v24 = vld [vmem:[#allocation8 + $0x8d8] sm:$0xff]  ;;  %v6154_v25 = vcombine.low %v595_v18, %v603_v19  ;;  %v6282_v27 = vcombine.low %v723_v20, %v731_v21  ;;  %v6443_v18 = vcombine.high %v883_v11, %v891_v13 }
 0x1e3   :  { %v6267_v29 = vcombine.high %v707_v12, %v715_v24  ;;  %v867_v20 = vld [vmem:[#allocation8 + $0xd98] sm:$0xff] }
 0x1e4   :  { %v875_v21 = vld [vmem:[#allocation8 + $0xdd8] sm:$0xff] }
 0x1e5   :  { %3834 = vmatpush2.bf16.msra.mxu1 %v6376_v32  ;;  %3861 = vmatpush1.bf16.msra.mxu0 %v5994_v34  ;;  %v691_v32 = vld [vmem:[#allocation8 + $0x818] sm:$0xff] }
 0x1e6   :  { %3862 = vmatprep.subr.bf16.mxu0 %v6235_v35  ;;  %3889 = vmatprep.subr.bf16.mxu1 %v6363_v36  ;;  %v699_v34 = vld [vmem:[#allocation8 + $0x858] sm:$0xff]  ;;  %v6138_v35 = vcombine.low %v579_v8, %v587_v10  ;;  %v6266_v36 = vcombine.low %v707_v12, %v715_v24  ;;  %v6427_v8 = vcombine.high %v867_v20, %v875_v21 }
 0x1e7   :  { %v6251_v38 = vcombine.high %v691_v32, %v699_v34  ;;  %v6250_v46 = vcombine.low %v691_v32, %v699_v34  ;;  %v851_v12 = vld [vmem:[#allocation8 + $0xd18] sm:$0xff] }
 0x1e8   :  { %3836 = vmatmul.mubr.bf16.vlgmr.msra.gmra.mxu1 %v7659_v63  ;;  %v859_v24 = vld [vmem:[#allocation8 + $0xd58] sm:$0xff] }
 0x1e9   :  { %3863 = vmatpush2.bf16.msra.mxu0 %v6234_v41  ;;  %3890 = vmatpush1.bf16.msra.mxu1 %v6362_v42  ;;  %v548_v41 = vld [vmem:[#allocation8 + $0x3a0] sm:$0xff]  ;;  %v835_v32 = vld [vmem:[#allocation8 + $0xc98] sm:$0xff] }
 0x1ea   :  { %3921 = vmatprep.mubr.bf16.mxu1 %v7657_v61  ;;  %3864 = vmatprep.subr.bf16.mxu0 %v6219_v45  ;;  %v556_v42 = vld [vmem:[#allocation8 + $0x3e0] sm:$0xff]  ;;  %v6122_v45 = vcombine.low %v563_v30, %v571_v31  ;;  %v6411_v30 = vcombine.high %v851_v12, %v859_v24  ;;  %v843_v34 = vld [vmem:[#allocation8 + $0xcd8] sm:$0xff] }
 0x1eb   :  { %3891 = vmatprep.subr.bf16.mxu1 %v6347_v51  ;;  %v6491_v51 = vcombine.high %v931_v39, %v939_v40  ;;  %v6109_v52 = vcombine.high %v548_v41, %v556_v42 }
 0x1ed   :  { %3865 = vmatpush2.bf16.msra.mxu0 %v6218_v55  ;;  %3892 = vmatpush1.bf16.msra.mxu1 %v6346_v49  ;;  %v532_v55 = vld [vmem:[#allocation8 + $0x320] sm:$0xff] }
 0x1ee   :  { %3866 = vmatprep.subr.bf16.mxu0 %v6203_v56  ;;  %3893 = vmatprep.subr.bf16.mxu1 %v6331_v57  ;;  %v540_v49 = vld [vmem:[#allocation8 + $0x360] sm:$0xff]  ;;  %v6490_v56 = vcombine.low %v931_v39, %v939_v40  ;;  %v6108_v57 = vcombine.low %v548_v41, %v556_v42  ;;  %v6395_v39 = vcombine.high %v835_v32, %v843_v34  ;;  %v819_v41 = vld [vmem:[#allocation8 + $0xc18] sm:$0xff] }
 0x1ef   :  { %v6093_v60 = vcombine.high %v532_v55, %v540_v49  ;;  %v827_v42 = vld [vmem:[#allocation8 + $0xc58] sm:$0xff] }
 0x1f1   :  { %3867 = vmatpush2.bf16.msra.mxu0 %v6202_v1  ;;  %3894 = vmatpush1.bf16.msra.mxu1 %v6330_v2  ;;  %v516_v1 = vld [vmem:[#allocation8 + $0x2a0] sm:$0xff] }
 0x1f2   :  { %3868 = vmatprep.subr.bf16.mxu0 %v6187_v3  ;;  %3895 = vmatprep.subr.bf16.mxu1 %v6315_v6  ;;  %v524_v2 = vld [vmem:[#allocation8 + $0x2e0] sm:$0xff]  ;;  %v6474_v3 = vcombine.low %v915_v53, %v923_v54  ;;  %v6092_v6 = vcombine.low %v532_v55, %v540_v49  ;;  %v6379_v53 = vcombine.high %v819_v41, %v827_v42 }
 0x1f3   :  { %v6077_v9 = vcombine.high %v516_v1, %v524_v2  ;;  %v676_v55 = vld [vmem:[#allocation8 + $0x7a0] sm:$0xff] }
 0x1f4   :  { %v684_v49 = vld [vmem:[#allocation8 + $0x7e0] sm:$0xff] }
 0x1f5   :  { %3869 = vmatpush2.bf16.msra.mxu0 %v6186_v14  ;;  %3896 = vmatpush1.bf16.msra.mxu1 %v6314_v15  ;;  %v500_v14 = vld [vmem:[#allocation8 + $0x220] sm:$0xff] }
 0x1f6   :  { %3870 = vmatprep.subr.bf16.mxu0 %v6171_v16  ;;  %3897 = vmatprep.subr.bf16.mxu1 %v6299_v17  ;;  %v508_v15 = vld [vmem:[#allocation8 + $0x260] sm:$0xff]  ;;  %v6458_v16 = vcombine.low %v899_v59, %v907_v62  ;;  %v6076_v17 = vcombine.low %v516_v1, %v524_v2 }
 0x1f7   :  { %v6061_v19 = vcombine.high %v500_v14, %v508_v15  ;;  %v660_v1 = vld [vmem:[#allocation8 + $0x720] sm:$0xff] }
 0x1f8   :  { %v668_v2 = vld [vmem:[#allocation8 + $0x760] sm:$0xff] }
 0x1f9   :  { %3871 = vmatpush2.bf16.msra.mxu0 %v6170_v33  ;;  %3898 = vmatpush1.bf16.msra.mxu1 %v6298_v43  ;;  %v484_v33 = vld [vmem:[#allocation8 + $0x1a0] sm:$0xff] }
 0x1fa   :  { %3872 = vmatprep.subr.bf16.mxu0 %v6155_v44  ;;  %3899 = vmatprep.subr.bf16.mxu1 %v6283_v22  ;;  %v492_v43 = vld [vmem:[#allocation8 + $0x1e0] sm:$0xff]  ;;  %v6442_v44 = vcombine.low %v883_v11, %v891_v13  ;;  %v6060_v22 = vcombine.low %v500_v14, %v508_v15  ;;  %v6221_v11 = vcombine.high %v660_v1, %v668_v2 }
 0x1fb   :  { %v6045_v10 = vcombine.high %v484_v33, %v492_v43  ;;  %v644_v13 = vld [vmem:[#allocation8 + $0x6a0] sm:$0xff] }
 0x1fc   :  { %v652_v15 = vld [vmem:[#allocation8 + $0x6e0] sm:$0xff] }
 0x1fd   :  { %3873 = vmatpush2.bf16.msra.mxu0 %v6154_v25  ;;  %3900 = vmatpush1.bf16.msra.mxu1 %v6282_v27  ;;  %v468_v25 = vld [vmem:[#allocation8 + $0x120] sm:$0xff] }
 0x1fe   :  { %3874 = vmatprep.subr.bf16.mxu0 %v6139_v28  ;;  %3901 = vmatprep.subr.bf16.mxu1 %v6267_v29  ;;  %v476_v27 = vld [vmem:[#allocation8 + $0x160] sm:$0xff]  ;;  %v6426_v28 = vcombine.low %v867_v20, %v875_v21  ;;  %v6044_v29 = vcombine.low %v484_v33, %v492_v43  ;;  %v6205_v20 = vcombine.high %v644_v13, %v652_v15 }
 0x1ff   :  { %v6029_v31 = vcombine.high %v468_v25, %v476_v27  ;;  %v628_v33 = vld [vmem:[#allocation8 + $0x620] sm:$0xff] }
 0x200   :  { %v636_v43 = vld [vmem:[#allocation8 + $0x660] sm:$0xff] }
 0x201   :  { %3875 = vmatpush2.bf16.msra.mxu0 %v6138_v35  ;;  %3902 = vmatpush1.bf16.msra.mxu1 %v6266_v36  ;;  %v452_v35 = vld [vmem:[#allocation8 + $0xa0] sm:$0xff] }
 0x202   :  { %3876 = vmatprep.subr.bf16.mxu0 %v6123_v37  ;;  %3903 = vmatprep.subr.bf16.mxu1 %v6251_v38  ;;  %v460_v36 = vld [vmem:[#allocation8 + $0xe0] sm:$0xff]  ;;  %v6410_v37 = vcombine.low %v851_v12, %v859_v24  ;;  %v6028_v38 = vcombine.low %v468_v25, %v476_v27  ;;  %v6189_v12 = vcombine.high %v628_v33, %v636_v43 }
 0x203   :  { %v6013_v40 = vcombine.high %v452_v35, %v460_v36  ;;  %v612_v25 = vld [vmem:[#allocation8 + $0x5a0] sm:$0xff] }
 0x204   :  { %v620_v27 = vld [vmem:[#allocation8 + $0x5e0] sm:$0xff] }
 0x205   :  { %3877 = vmatpush2.bf16.msra.mxu0 %v6122_v45  ;;  %3904 = vmatpush1.bf16.msra.mxu1 %v6250_v46  ;;  %v436_v45 = vld [vmem:[#allocation8 + $0x20] sm:$0xff] }
 0x206   :  { %3905 = vmatprep.subr.bf16.mxu1 %v6491_v51  ;;  %3932 = vmatprep.subr.bf16.mxu0 %v6109_v52  ;;  %v444_v46 = vld [vmem:[#allocation8 + $0x60] sm:$0xff]  ;;  %v6394_v51 = vcombine.low %v835_v32, %v843_v34  ;;  %v6012_v52 = vcombine.low %v452_v35, %v460_v36  ;;  %v6173_v32 = vcombine.high %v612_v25, %v620_v27 }
 0x207   :  { %v5997_v54 = vcombine.high %v436_v45, %v444_v46  ;;  %v5996_v59 = vcombine.low %v436_v45, %v444_v46  ;;  %v596_v35 = vld [vmem:[#allocation8 + $0x520] sm:$0xff] }
 0x208   :  { %3879 = vmatmul.mubr.bf16.vlgmr.msra.gmra.mxu0 %v7641_v5  ;;  %v604_v36 = vld [vmem:[#allocation8 + $0x560] sm:$0xff] }
 0x209   :  { %3906 = vmatpush2.bf16.msra.mxu1 %v6490_v56  ;;  %3933 = vmatpush1.bf16.msra.mxu0 %v6108_v57  ;;  %v804_v56 = vld [vmem:[#allocation8 + $0xba0] sm:$0xff] }
 0x20a   :  { %3964 = vmatprep.mubr.bf16.mxu0 %v7639_v4  ;;  %3907 = vmatprep.subr.bf16.mxu1 %v6475_v58  ;;  %v812_v57 = vld [vmem:[#allocation8 + $0xbe0] sm:$0xff]  ;;  %v6378_v58 = vcombine.low %v819_v41, %v827_v42  ;;  %v6157_v41 = vcombine.high %v596_v35, %v604_v36 }
 0x20b   :  { %3934 = vmatprep.subr.bf16.mxu0 %v6093_v60  ;;  %v6237_v60 = vcombine.high %v676_v55, %v684_v49  ;;  %v6365_v62 = vcombine.high %v804_v56, %v812_v57  ;;  %v580_v45 = vld [vmem:[#allocation8 + $0x4a0] sm:$0xff] }
 0x20c   :  { %v588_v46 = vld [vmem:[#allocation8 + $0x4e0] sm:$0xff] }
 0x20d   :  { %3908 = vmatpush2.bf16.msra.mxu1 %v6474_v3  ;;  %3935 = vmatpush1.bf16.msra.mxu0 %v6092_v6  ;;  %v788_v3 = vld [vmem:[#allocation8 + $0xb20] sm:$0xff] }
 0x20e   :  { %3909 = vmatprep.subr.bf16.mxu1 %v6459_v7  ;;  %3936 = vmatprep.subr.bf16.mxu0 %v6077_v9  ;;  %v796_v6 = vld [vmem:[#allocation8 + $0xb60] sm:$0xff]  ;;  %v6236_v7 = vcombine.low %v676_v55, %v684_v49  ;;  %v6364_v9 = vcombine.low %v804_v56, %v812_v57  ;;  %v6141_v55 = vcombine.high %v580_v45, %v588_v46 }
 0x20f   :  { %v6349_v14 = vcombine.high %v788_v3, %v796_v6  ;;  %v564_v56 = vld [vmem:[#allocation8 + $0x420] sm:$0xff] }
 0x210   :  { %v572_v57 = vld [vmem:[#allocation8 + $0x460] sm:$0xff] }
 0x211   :  { %3910 = vmatpush2.bf16.msra.mxu1 %v6458_v16  ;;  %3937 = vmatpush1.bf16.msra.mxu0 %v6076_v17  ;;  %v772_v16 = vld [vmem:[#allocation8 + $0xaa0] sm:$0xff] }
 0x212   :  { %3911 = vmatprep.subr.bf16.mxu1 %v6443_v18  ;;  %3938 = vmatprep.subr.bf16.mxu0 %v6061_v19  ;;  %v780_v17 = vld [vmem:[#allocation8 + $0xae0] sm:$0xff]  ;;  %v6220_v18 = vcombine.low %v660_v1, %v668_v2  ;;  %v6348_v19 = vcombine.low %v788_v3, %v796_v6  ;;  %v6125_v1 = vcombine.high %v564_v56, %v572_v57 }
 0x213   :  { %v6333_v21 = vcombine.high %v772_v16, %v780_v17  ;;  %v932_v3 = vld [vmem:[#allocation8 + $0xfa0] sm:$0xff] }
 0x214   :  { %v940_v6 = vld [vmem:[#allocation8 + $0xfe0] sm:$0xff] }
 0x215   :  { %3912 = vmatpush2.bf16.msra.mxu1 %v6442_v44  ;;  %3939 = vmatpush1.bf16.msra.mxu0 %v6060_v22  ;;  %v756_v44 = vld [vmem:[#allocation8 + $0xa20] sm:$0xff] }
 0x216   :  { %3913 = vmatprep.subr.bf16.mxu1 %v6427_v8  ;;  %3940 = vmatprep.subr.bf16.mxu0 %v6045_v10  ;;  %v764_v22 = vld [vmem:[#allocation8 + $0xa60] sm:$0xff]  ;;  %v6204_v8 = vcombine.low %v644_v13, %v652_v15  ;;  %v6332_v10 = vcombine.low %v772_v16, %v780_v17 }
 0x217   :  { %v6317_v24 = vcombine.high %v756_v44, %v764_v22  ;;  %v916_v16 = vld [vmem:[#allocation8 + $0xf20] sm:$0xff] }
 0x218   :  { %v924_v17 = vld [vmem:[#allocation8 + $0xf60] sm:$0xff] }
 0x219   :  { %3914 = vmatpush2.bf16.msra.mxu1 %v6426_v28  ;;  %3941 = vmatpush1.bf16.msra.mxu0 %v6044_v29  ;;  %v740_v28 = vld [vmem:[#allocation8 + $0x9a0] sm:$0xff] }
 0x21a   :  { %3915 = vmatprep.subr.bf16.mxu1 %v6411_v30  ;;  %3942 = vmatprep.subr.bf16.mxu0 %v6029_v31  ;;  %v748_v29 = vld [vmem:[#allocation8 + $0x9e0] sm:$0xff]  ;;  %v6188_v30 = vcombine.low %v628_v33, %v636_v43  ;;  %v6316_v31 = vcombine.low %v756_v44, %v764_v22  ;;  %v6477_v33 = vcombine.high %v916_v16, %v924_v17 }
 0x21b   :  { %v6301_v34 = vcombine.high %v740_v28, %v748_v29  ;;  %v900_v43 = vld [vmem:[#allocation8 + $0xea0] sm:$0xff] }
 0x21c   :  { %v908_v22 = vld [vmem:[#allocation8 + $0xee0] sm:$0xff] }
 0x21d   :  { %3916 = vmatpush2.bf16.msra.mxu1 %v6410_v37  ;;  %3943 = vmatpush1.bf16.msra.mxu0 %v6028_v38  ;;  %v724_v37 = vld [vmem:[#allocation8 + $0x920] sm:$0xff] }
 0x21e   :  { %3917 = vmatprep.subr.bf16.mxu1 %v6395_v39  ;;  %3944 = vmatprep.subr.bf16.mxu0 %v6013_v40  ;;  %v732_v38 = vld [vmem:[#allocation8 + $0x960] sm:$0xff]  ;;  %v6172_v39 = vcombine.low %v612_v25, %v620_v27  ;;  %v6300_v40 = vcombine.low %v740_v28, %v748_v29  ;;  %v6461_v25 = vcombine.high %v900_v43, %v908_v22 }
 0x21f   :  { %v6285_v42 = vcombine.high %v724_v37, %v732_v38  ;;  %v884_v28 = vld [vmem:[#allocation8 + $0xe20] sm:$0xff] }
 0x220   :  { %v892_v29 = vld [vmem:[#allocation8 + $0xe60] sm:$0xff] }
 0x221   :  { %3918 = vmatpush2.bf16.msra.mxu1 %v6394_v51  ;;  %3945 = vmatpush1.bf16.msra.mxu0 %v6012_v52  ;;  %v708_v51 = vld [vmem:[#allocation8 + $0x8a0] sm:$0xff] }
 0x222   :  { %3919 = vmatprep.subr.bf16.mxu1 %v6379_v53  ;;  %3946 = vmatprep.subr.bf16.mxu0 %v5997_v54  ;;  %v716_v52 = vld [vmem:[#allocation8 + $0x8e0] sm:$0xff]  ;;  %v6156_v53 = vcombine.low %v596_v35, %v604_v36  ;;  %v6284_v54 = vcombine.low %v724_v37, %v732_v38  ;;  %v6445_v35 = vcombine.high %v884_v28, %v892_v29 }
 0x223   :  { %v6269_v49 = vcombine.high %v708_v51, %v716_v52  ;;  %v868_v37 = vld [vmem:[#allocation8 + $0xda0] sm:$0xff] }
 0x224   :  { %v876_v38 = vld [vmem:[#allocation8 + $0xde0] sm:$0xff] }
 0x225   :  { %3920 = vmatpush2.bf16.msra.mxu1 %v6378_v58  ;;  %3947 = vmatpush1.bf16.msra.mxu0 %v5996_v59  ;;  %v692_v58 = vld [vmem:[#allocation8 + $0x820] sm:$0xff] }
 0x226   :  { %3948 = vmatprep.subr.bf16.mxu0 %v6237_v60  ;;  %3975 = vmatprep.subr.bf16.mxu1 %v6365_v62  ;;  %v700_v59 = vld [vmem:[#allocation8 + $0x860] sm:$0xff]  ;;  %v6140_v60 = vcombine.low %v580_v45, %v588_v46  ;;  %v6268_v62 = vcombine.low %v708_v51, %v716_v52  ;;  %v6429_v45 = vcombine.high %v868_v37, %v876_v38 }
 0x227   :  { %v6253_v2 = vcombine.high %v692_v58, %v700_v59  ;;  %v6252_v13 = vcombine.low %v692_v58, %v700_v59  ;;  %v852_v51 = vld [vmem:[#allocation8 + $0xd20] sm:$0xff] }
 0x228   :  { %3922 = vmatmul.mubr.bf16.vlgmr.msra.gmra.mxu1 %v7659_v63  ;;  %v860_v52 = vld [vmem:[#allocation8 + $0xd60] sm:$0xff] }
 0x229   :  { %3949 = vmatpush2.bf16.msra.mxu0 %v6236_v7  ;;  %3976 = vmatpush1.bf16.msra.mxu1 %v6364_v9  ;;  %v549_v7 = vld [vmem:[#allocation8 + $0x3a8] sm:$0xff]  ;;  %v836_v58 = vld [vmem:[#allocation8 + $0xca0] sm:$0xff] }
 0x22a   :  { %4007 = vmatprep.mubr.bf16.mxu1 %v7657_v61  ;;  %3950 = vmatprep.subr.bf16.mxu0 %v6221_v11  ;;  %v557_v9 = vld [vmem:[#allocation8 + $0x3e8] sm:$0xff]  ;;  %v6124_v11 = vcombine.low %v564_v56, %v572_v57  ;;  %v6413_v56 = vcombine.high %v852_v51, %v860_v52  ;;  %v844_v59 = vld [vmem:[#allocation8 + $0xce0] sm:$0xff] }
 0x22b   :  { %3977 = vmatprep.subr.bf16.mxu1 %v6349_v14  ;;  %v6493_v14 = vcombine.high %v932_v3, %v940_v6  ;;  %v6111_v15 = vcombine.high %v549_v7, %v557_v9 }
 0x22d   :  { %3951 = vmatpush2.bf16.msra.mxu0 %v6220_v18  ;;  %3978 = vmatpush1.bf16.msra.mxu1 %v6348_v19  ;;  %v533_v18 = vld [vmem:[#allocation8 + $0x328] sm:$0xff] }
 0x22e   :  { %3952 = vmatprep.subr.bf16.mxu0 %v6205_v20  ;;  %3979 = vmatprep.subr.bf16.mxu1 %v6333_v21  ;;  %v541_v19 = vld [vmem:[#allocation8 + $0x368] sm:$0xff]  ;;  %v6492_v20 = vcombine.low %v932_v3, %v940_v6  ;;  %v6110_v21 = vcombine.low %v549_v7, %v557_v9  ;;  %v6397_v3 = vcombine.high %v836_v58, %v844_v59  ;;  %v820_v7 = vld [vmem:[#allocation8 + $0xc20] sm:$0xff] }
 0x22f   :  { %v6095_v44 = vcombine.high %v533_v18, %v541_v19  ;;  %v828_v9 = vld [vmem:[#allocation8 + $0xc60] sm:$0xff] }
 0x231   :  { %3953 = vmatpush2.bf16.msra.mxu0 %v6204_v8  ;;  %3980 = vmatpush1.bf16.msra.mxu1 %v6332_v10  ;;  %v517_v8 = vld [vmem:[#allocation8 + $0x2a8] sm:$0xff] }
 0x232   :  { %3954 = vmatprep.subr.bf16.mxu0 %v6189_v12  ;;  %3981 = vmatprep.subr.bf16.mxu1 %v6317_v24  ;;  %v525_v10 = vld [vmem:[#allocation8 + $0x2e8] sm:$0xff]  ;;  %v6476_v12 = vcombine.low %v916_v16, %v924_v17  ;;  %v6094_v24 = vcombine.low %v533_v18, %v541_v19  ;;  %v6381_v16 = vcombine.high %v820_v7, %v828_v9 }
 0x233   :  { %v6079_v27 = vcombine.high %v517_v8, %v525_v10  ;;  %v677_v18 = vld [vmem:[#allocation8 + $0x7a8] sm:$0xff] }
 0x234   :  { %v685_v19 = vld [vmem:[#allocation8 + $0x7e8] sm:$0xff] }
 0x235   :  { %3955 = vmatpush2.bf16.msra.mxu0 %v6188_v30  ;;  %3982 = vmatpush1.bf16.msra.mxu1 %v6316_v31  ;;  %v501_v30 = vld [vmem:[#allocation8 + $0x228] sm:$0xff] }
 0x236   :  { %3956 = vmatprep.subr.bf16.mxu0 %v6173_v32  ;;  %3983 = vmatprep.subr.bf16.mxu1 %v6301_v34  ;;  %v509_v31 = vld [vmem:[#allocation8 + $0x268] sm:$0xff]  ;;  %v6460_v32 = vcombine.low %v900_v43, %v908_v22  ;;  %v6078_v34 = vcombine.low %v517_v8, %v525_v10 }
 0x237   :  { %v6063_v36 = vcombine.high %v501_v30, %v509_v31  ;;  %v661_v8 = vld [vmem:[#allocation8 + $0x728] sm:$0xff] }
 0x238   :  { %v669_v10 = vld [vmem:[#allocation8 + $0x768] sm:$0xff] }
 0x239   :  { %3957 = vmatpush2.bf16.msra.mxu0 %v6172_v39  ;;  %3984 = vmatpush1.bf16.msra.mxu1 %v6300_v40  ;;  %v485_v39 = vld [vmem:[#allocation8 + $0x1a8] sm:$0xff] }
 0x23a   :  { %3958 = vmatprep.subr.bf16.mxu0 %v6157_v41  ;;  %3985 = vmatprep.subr.bf16.mxu1 %v6285_v42  ;;  %v493_v40 = vld [vmem:[#allocation8 + $0x1e8] sm:$0xff]  ;;  %v6444_v41 = vcombine.low %v884_v28, %v892_v29  ;;  %v6062_v42 = vcombine.low %v501_v30, %v509_v31  ;;  %v6223_v28 = vcombine.high %v661_v8, %v669_v10 }
 0x23b   :  { %v6047_v46 = vcombine.high %v485_v39, %v493_v40  ;;  %v645_v29 = vld [vmem:[#allocation8 + $0x6a8] sm:$0xff] }
 0x23c   :  { %v653_v31 = vld [vmem:[#allocation8 + $0x6e8] sm:$0xff] }
 0x23d   :  { %3959 = vmatpush2.bf16.msra.mxu0 %v6156_v53  ;;  %3986 = vmatpush1.bf16.msra.mxu1 %v6284_v54  ;;  %v469_v53 = vld [vmem:[#allocation8 + $0x128] sm:$0xff] }
 0x23e   :  { %3960 = vmatprep.subr.bf16.mxu0 %v6141_v55  ;;  %3987 = vmatprep.subr.bf16.mxu1 %v6269_v49  ;;  %v477_v54 = vld [vmem:[#allocation8 + $0x168] sm:$0xff]  ;;  %v6428_v55 = vcombine.low %v868_v37, %v876_v38  ;;  %v6046_v49 = vcombine.low %v485_v39, %v493_v40  ;;  %v6207_v37 = vcombine.high %v645_v29, %v653_v31 }
 0x23f   :  { %v6031_v57 = vcombine.high %v469_v53, %v477_v54  ;;  %v629_v39 = vld [vmem:[#allocation8 + $0x628] sm:$0xff] }
 0x240   :  { %v637_v40 = vld [vmem:[#allocation8 + $0x668] sm:$0xff] }
 0x241   :  { %3961 = vmatpush2.bf16.msra.mxu0 %v6140_v60  ;;  %3988 = vmatpush1.bf16.msra.mxu1 %v6268_v62  ;;  %v453_v60 = vld [vmem:[#allocation8 + $0xa8] sm:$0xff] }
 0x242   :  { %3962 = vmatprep.subr.bf16.mxu0 %v6125_v1  ;;  %3989 = vmatprep.subr.bf16.mxu1 %v6253_v2  ;;  %v461_v62 = vld [vmem:[#allocation8 + $0xe8] sm:$0xff]  ;;  %v6412_v1 = vcombine.low %v852_v51, %v860_v52  ;;  %v6030_v2 = vcombine.low %v469_v53, %v477_v54  ;;  %v6191_v51 = vcombine.high %v629_v39, %v637_v40 }
 0x243   :  { %v6015_v6 = vcombine.high %v453_v60, %v461_v62  ;;  %v613_v53 = vld [vmem:[#allocation8 + $0x5a8] sm:$0xff] }
 0x244   :  { %v621_v54 = vld [vmem:[#allocation8 + $0x5e8] sm:$0xff] }
 0x245   :  { %3963 = vmatpush2.bf16.msra.mxu0 %v6124_v11  ;;  %3990 = vmatpush1.bf16.msra.mxu1 %v6252_v13  ;;  %v437_v11 = vld [vmem:[#allocation8 + $0x28] sm:$0xff] }
 0x246   :  { %3991 = vmatprep.subr.bf16.mxu1 %v6493_v14  ;;  %4018 = vmatprep.subr.bf16.mxu0 %v6111_v15  ;;  %v445_v13 = vld [vmem:[#allocation8 + $0x68] sm:$0xff]  ;;  %v6396_v14 = vcombine.low %v836_v58, %v844_v59  ;;  %v6014_v15 = vcombine.low %v453_v60, %v461_v62  ;;  %v6175_v58 = vcombine.high %v613_v53, %v621_v54 }
 0x247   :  { %v5999_v17 = vcombine.high %v437_v11, %v445_v13  ;;  %v5998_v43 = vcombine.low %v437_v11, %v445_v13  ;;  %v597_v60 = vld [vmem:[#allocation8 + $0x528] sm:$0xff] }
 0x248   :  { %3965 = vmatmul.mubr.bf16.vlgmr.msra.gmra.mxu0 %v7641_v5  ;;  %v605_v62 = vld [vmem:[#allocation8 + $0x568] sm:$0xff] }
 0x249   :  { %3992 = vmatpush2.bf16.msra.mxu1 %v6492_v20  ;;  %4019 = vmatpush1.bf16.msra.mxu0 %v6110_v21  ;;  %v805_v20 = vld [vmem:[#allocation8 + $0xba8] sm:$0xff] }
 0x24a   :  { %4050 = vmatprep.mubr.bf16.mxu0 %v7639_v4  ;;  %3993 = vmatprep.subr.bf16.mxu1 %v6477_v33  ;;  %v813_v21 = vld [vmem:[#allocation8 + $0xbe8] sm:$0xff]  ;;  %v6380_v33 = vcombine.low %v820_v7, %v828_v9  ;;  %v6159_v7 = vcombine.high %v597_v60, %v605_v62 }
 0x24b   :  { %4020 = vmatprep.subr.bf16.mxu0 %v6095_v44  ;;  %v6239_v44 = vcombine.high %v677_v18, %v685_v19  ;;  %v6367_v22 = vcombine.high %v805_v20, %v813_v21  ;;  %v581_v11 = vld [vmem:[#allocation8 + $0x4a8] sm:$0xff] }
 0x24c   :  { %v589_v13 = vld [vmem:[#allocation8 + $0x4e8] sm:$0xff] }
 0x24d   :  { %3994 = vmatpush2.bf16.msra.mxu1 %v6476_v12  ;;  %4021 = vmatpush1.bf16.msra.mxu0 %v6094_v24  ;;  %v789_v12 = vld [vmem:[#allocation8 + $0xb28] sm:$0xff] }
 0x24e   :  { %3995 = vmatprep.subr.bf16.mxu1 %v6461_v25  ;;  %4022 = vmatprep.subr.bf16.mxu0 %v6079_v27  ;;  %v797_v24 = vld [vmem:[#allocation8 + $0xb68] sm:$0xff]  ;;  %v6238_v25 = vcombine.low %v677_v18, %v685_v19  ;;  %v6366_v27 = vcombine.low %v805_v20, %v813_v21  ;;  %v6143_v18 = vcombine.high %v581_v11, %v589_v13 }
 0x24f   :  { %v6351_v30 = vcombine.high %v789_v12, %v797_v24  ;;  %v565_v20 = vld [vmem:[#allocation8 + $0x428] sm:$0xff] }
 0x250   :  { %v573_v21 = vld [vmem:[#allocation8 + $0x468] sm:$0xff] }
 0x251   :  { %3996 = vmatpush2.bf16.msra.mxu1 %v6460_v32  ;;  %4023 = vmatpush1.bf16.msra.mxu0 %v6078_v34  ;;  %v773_v32 = vld [vmem:[#allocation8 + $0xaa8] sm:$0xff] }
 0x252   :  { %3997 = vmatprep.subr.bf16.mxu1 %v6445_v35  ;;  %4024 = vmatprep.subr.bf16.mxu0 %v6063_v36  ;;  %v781_v34 = vld [vmem:[#allocation8 + $0xae8] sm:$0xff]  ;;  %v6222_v35 = vcombine.low %v661_v8, %v669_v10  ;;  %v6350_v36 = vcombine.low %v789_v12, %v797_v24  ;;  %v6127_v8 = vcombine.high %v565_v20, %v573_v21 }
 0x253   :  { %v6335_v38 = vcombine.high %v773_v32, %v781_v34  ;;  %v933_v12 = vld [vmem:[#allocation8 + $0xfa8] sm:$0xff] }
 0x254   :  { %v941_v24 = vld [vmem:[#allocation8 + $0xfe8] sm:$0xff] }
 0x255   :  { %3998 = vmatpush2.bf16.msra.mxu1 %v6444_v41  ;;  %4025 = vmatpush1.bf16.msra.mxu0 %v6062_v42  ;;  %v757_v41 = vld [vmem:[#allocation8 + $0xa28] sm:$0xff] }
 0x256   :  { %3999 = vmatprep.subr.bf16.mxu1 %v6429_v45  ;;  %4026 = vmatprep.subr.bf16.mxu0 %v6047_v46  ;;  %v765_v42 = vld [vmem:[#allocation8 + $0xa68] sm:$0xff]  ;;  %v6206_v45 = vcombine.low %v645_v29, %v653_v31  ;;  %v6334_v46 = vcombine.low %v773_v32, %v781_v34 }
 0x257   :  { %v6319_v52 = vcombine.high %v757_v41, %v765_v42  ;;  %v917_v32 = vld [vmem:[#allocation8 + $0xf28] sm:$0xff] }
 0x258   :  { %v925_v34 = vld [vmem:[#allocation8 + $0xf68] sm:$0xff] }
 0x259   :  { %4000 = vmatpush2.bf16.msra.mxu1 %v6428_v55  ;;  %4027 = vmatpush1.bf16.msra.mxu0 %v6046_v49  ;;  %v741_v55 = vld [vmem:[#allocation8 + $0x9a8] sm:$0xff] }
 0x25a   :  { %4001 = vmatprep.subr.bf16.mxu1 %v6413_v56  ;;  %4028 = vmatprep.subr.bf16.mxu0 %v6031_v57  ;;  %v749_v49 = vld [vmem:[#allocation8 + $0x9e8] sm:$0xff]  ;;  %v6190_v56 = vcombine.low %v629_v39, %v637_v40  ;;  %v6318_v57 = vcombine.low %v757_v41, %v765_v42  ;;  %v6479_v39 = vcombine.high %v917_v32, %v925_v34 }
 0x25b   :  { %v6303_v59 = vcombine.high %v741_v55, %v749_v49  ;;  %v901_v40 = vld [vmem:[#allocation8 + $0xea8] sm:$0xff] }
 0x25c   :  { %v909_v42 = vld [vmem:[#allocation8 + $0xee8] sm:$0xff] }
 0x25d   :  { %4002 = vmatpush2.bf16.msra.mxu1 %v6412_v1  ;;  %4029 = vmatpush1.bf16.msra.mxu0 %v6030_v2  ;;  %v725_v1 = vld [vmem:[#allocation8 + $0x928] sm:$0xff] }
 0x25e   :  { %4003 = vmatprep.subr.bf16.mxu1 %v6397_v3  ;;  %4030 = vmatprep.subr.bf16.mxu0 %v6015_v6  ;;  %v733_v2 = vld [vmem:[#allocation8 + $0x968] sm:$0xff]  ;;  %v6174_v3 = vcombine.low %v613_v53, %v621_v54  ;;  %v6302_v6 = vcombine.low %v741_v55, %v749_v49  ;;  %v6463_v53 = vcombine.high %v901_v40, %v909_v42 }
 0x25f   :  { %v6287_v9 = vcombine.high %v725_v1, %v733_v2  ;;  %v885_v55 = vld [vmem:[#allocation8 + $0xe28] sm:$0xff] }
 0x260   :  { %v893_v49 = vld [vmem:[#allocation8 + $0xe68] sm:$0xff] }
 0x261   :  { %4004 = vmatpush2.bf16.msra.mxu1 %v6396_v14  ;;  %4031 = vmatpush1.bf16.msra.mxu0 %v6014_v15  ;;  %v709_v14 = vld [vmem:[#allocation8 + $0x8a8] sm:$0xff] }
 0x262   :  { %4005 = vmatprep.subr.bf16.mxu1 %v6381_v16  ;;  %4032 = vmatprep.subr.bf16.mxu0 %v5999_v17  ;;  %v717_v15 = vld [vmem:[#allocation8 + $0x8e8] sm:$0xff]  ;;  %v6158_v16 = vcombine.low %v597_v60, %v605_v62  ;;  %v6286_v17 = vcombine.low %v725_v1, %v733_v2  ;;  %v6447_v60 = vcombine.high %v885_v55, %v893_v49 }
 0x263   :  { %v6271_v19 = vcombine.high %v709_v14, %v717_v15  ;;  %v869_v1 = vld [vmem:[#allocation8 + $0xda8] sm:$0xff] }
 0x264   :  { %v877_v2 = vld [vmem:[#allocation8 + $0xde8] sm:$0xff] }
 0x265   :  { %4006 = vmatpush2.bf16.msra.mxu1 %v6380_v33  ;;  %4033 = vmatpush1.bf16.msra.mxu0 %v5998_v43  ;;  %v693_v33 = vld [vmem:[#allocation8 + $0x828] sm:$0xff] }
 0x266   :  { %4034 = vmatprep.subr.bf16.mxu0 %v6239_v44  ;;  %4061 = vmatprep.subr.bf16.mxu1 %v6367_v22  ;;  %v701_v43 = vld [vmem:[#allocation8 + $0x868] sm:$0xff]  ;;  %v6142_v44 = vcombine.low %v581_v11, %v589_v13  ;;  %v6270_v22 = vcombine.low %v709_v14, %v717_v15  ;;  %v6431_v11 = vcombine.high %v869_v1, %v877_v2 }
 0x267   :  { %v6255_v10 = vcombine.high %v693_v33, %v701_v43  ;;  %v6254_v29 = vcombine.low %v693_v33, %v701_v43  ;;  %v853_v14 = vld [vmem:[#allocation8 + $0xd28] sm:$0xff] }
 0x268   :  { %4008 = vmatmul.mubr.bf16.vlgmr.msra.gmra.mxu1 %v7659_v63  ;;  %v861_v15 = vld [vmem:[#allocation8 + $0xd68] sm:$0xff] }
 0x269   :  { %4035 = vmatpush2.bf16.msra.mxu0 %v6238_v25  ;;  %4062 = vmatpush1.bf16.msra.mxu1 %v6366_v27  ;;  %v550_v25 = vld [vmem:[#allocation8 + $0x3b0] sm:$0xff]  ;;  %v837_v33 = vld [vmem:[#allocation8 + $0xca8] sm:$0xff] }
 0x26a   :  { %4093 = vmatprep.mubr.bf16.mxu1 %v7657_v61  ;;  %4036 = vmatprep.subr.bf16.mxu0 %v6223_v28  ;;  %v558_v27 = vld [vmem:[#allocation8 + $0x3f0] sm:$0xff]  ;;  %v6126_v28 = vcombine.low %v565_v20, %v573_v21  ;;  %v6415_v20 = vcombine.high %v853_v14, %v861_v15  ;;  %v845_v43 = vld [vmem:[#allocation8 + $0xce8] sm:$0xff] }
 0x26b   :  { %4063 = vmatprep.subr.bf16.mxu1 %v6351_v30  ;;  %v6495_v30 = vcombine.high %v933_v12, %v941_v24  ;;  %v6113_v31 = vcombine.high %v550_v25, %v558_v27 }
 0x26d   :  { %4037 = vmatpush2.bf16.msra.mxu0 %v6222_v35  ;;  %4064 = vmatpush1.bf16.msra.mxu1 %v6350_v36  ;;  %v534_v35 = vld [vmem:[#allocation8 + $0x330] sm:$0xff] }
 0x26e   :  { %4038 = vmatprep.subr.bf16.mxu0 %v6207_v37  ;;  %4065 = vmatprep.subr.bf16.mxu1 %v6335_v38  ;;  %v542_v36 = vld [vmem:[#allocation8 + $0x370] sm:$0xff]  ;;  %v6494_v37 = vcombine.low %v933_v12, %v941_v24  ;;  %v6112_v38 = vcombine.low %v550_v25, %v558_v27  ;;  %v6399_v12 = vcombine.high %v837_v33, %v845_v43  ;;  %v821_v25 = vld [vmem:[#allocation8 + $0xc28] sm:$0xff] }
 0x26f   :  { %v6097_v41 = vcombine.high %v534_v35, %v542_v36  ;;  %v829_v27 = vld [vmem:[#allocation8 + $0xc68] sm:$0xff] }
 0x271   :  { %4039 = vmatpush2.bf16.msra.mxu0 %v6206_v45  ;;  %4066 = vmatpush1.bf16.msra.mxu1 %v6334_v46  ;;  %v518_v45 = vld [vmem:[#allocation8 + $0x2b0] sm:$0xff] }
 0x272   :  { %4040 = vmatprep.subr.bf16.mxu0 %v6191_v51  ;;  %4067 = vmatprep.subr.bf16.mxu1 %v6319_v52  ;;  %v526_v46 = vld [vmem:[#allocation8 + $0x2f0] sm:$0xff]  ;;  %v6478_v51 = vcombine.low %v917_v32, %v925_v34  ;;  %v6096_v52 = vcombine.low %v534_v35, %v542_v36  ;;  %v6383_v32 = vcombine.high %v821_v25, %v829_v27 }
 0x273   :  { %v6081_v54 = vcombine.high %v518_v45, %v526_v46  ;;  %v678_v35 = vld [vmem:[#allocation8 + $0x7b0] sm:$0xff] }
 0x274   :  { %v686_v36 = vld [vmem:[#allocation8 + $0x7f0] sm:$0xff] }
 0x275   :  { %4041 = vmatpush2.bf16.msra.mxu0 %v6190_v56  ;;  %4068 = vmatpush1.bf16.msra.mxu1 %v6318_v57  ;;  %v502_v56 = vld [vmem:[#allocation8 + $0x230] sm:$0xff] }
 0x276   :  { %4042 = vmatprep.subr.bf16.mxu0 %v6175_v58  ;;  %4069 = vmatprep.subr.bf16.mxu1 %v6303_v59  ;;  %v510_v57 = vld [vmem:[#allocation8 + $0x270] sm:$0xff]  ;;  %v6462_v58 = vcombine.low %v901_v40, %v909_v42  ;;  %v6080_v59 = vcombine.low %v518_v45, %v526_v46 }
 0x277   :  { %v6065_v62 = vcombine.high %v502_v56, %v510_v57  ;;  %v662_v45 = vld [vmem:[#allocation8 + $0x730] sm:$0xff] }
 0x278   :  { %v670_v46 = vld [vmem:[#allocation8 + $0x770] sm:$0xff] }
 0x279   :  { %4043 = vmatpush2.bf16.msra.mxu0 %v6174_v3  ;;  %4070 = vmatpush1.bf16.msra.mxu1 %v6302_v6  ;;  %v486_v3 = vld [vmem:[#allocation8 + $0x1b0] sm:$0xff] }
 0x27a   :  { %4044 = vmatprep.subr.bf16.mxu0 %v6159_v7  ;;  %4071 = vmatprep.subr.bf16.mxu1 %v6287_v9  ;;  %v494_v6 = vld [vmem:[#allocation8 + $0x1f0] sm:$0xff]  ;;  %v6446_v7 = vcombine.low %v885_v55, %v893_v49  ;;  %v6064_v9 = vcombine.low %v502_v56, %v510_v57  ;;  %v6225_v55 = vcombine.high %v662_v45, %v670_v46 }
 0x27b   :  { %v6049_v13 = vcombine.high %v486_v3, %v494_v6  ;;  %v646_v49 = vld [vmem:[#allocation8 + $0x6b0] sm:$0xff] }
 0x27c   :  { %v654_v57 = vld [vmem:[#allocation8 + $0x6f0] sm:$0xff] }
 0x27d   :  { %4045 = vmatpush2.bf16.msra.mxu0 %v6158_v16  ;;  %4072 = vmatpush1.bf16.msra.mxu1 %v6286_v17  ;;  %v470_v16 = vld [vmem:[#allocation8 + $0x130] sm:$0xff] }
 0x27e   :  { %4046 = vmatprep.subr.bf16.mxu0 %v6143_v18  ;;  %4073 = vmatprep.subr.bf16.mxu1 %v6271_v19  ;;  %v478_v17 = vld [vmem:[#allocation8 + $0x170] sm:$0xff]  ;;  %v6430_v18 = vcombine.low %v869_v1, %v877_v2  ;;  %v6048_v19 = vcombine.low %v486_v3, %v494_v6  ;;  %v6209_v1 = vcombine.high %v646_v49, %v654_v57 }
 0x27f   :  { %v6033_v21 = vcombine.high %v470_v16, %v478_v17  ;;  %v630_v3 = vld [vmem:[#allocation8 + $0x630] sm:$0xff] }
 0x280   :  { %v638_v6 = vld [vmem:[#allocation8 + $0x670] sm:$0xff] }
 0x281   :  { %4047 = vmatpush2.bf16.msra.mxu0 %v6142_v44  ;;  %4074 = vmatpush1.bf16.msra.mxu1 %v6270_v22  ;;  %v454_v44 = vld [vmem:[#allocation8 + $0xb0] sm:$0xff] }
 0x282   :  { %4048 = vmatprep.subr.bf16.mxu0 %v6127_v8  ;;  %4075 = vmatprep.subr.bf16.mxu1 %v6255_v10  ;;  %v462_v22 = vld [vmem:[#allocation8 + $0xf0] sm:$0xff]  ;;  %v6414_v8 = vcombine.low %v853_v14, %v861_v15  ;;  %v6032_v10 = vcombine.low %v470_v16, %v478_v17  ;;  %v6193_v14 = vcombine.high %v630_v3, %v638_v6 }
 0x283   :  { %v6017_v24 = vcombine.high %v454_v44, %v462_v22  ;;  %v614_v16 = vld [vmem:[#allocation8 + $0x5b0] sm:$0xff] }
 0x284   :  { %v622_v17 = vld [vmem:[#allocation8 + $0x5f0] sm:$0xff] }
 0x285   :  { %4049 = vmatpush2.bf16.msra.mxu0 %v6126_v28  ;;  %4076 = vmatpush1.bf16.msra.mxu1 %v6254_v29  ;;  %v438_v28 = vld [vmem:[#allocation8 + $0x30] sm:$0xff] }
 0x286   :  { %4077 = vmatprep.subr.bf16.mxu1 %v6495_v30  ;;  %4104 = vmatprep.subr.bf16.mxu0 %v6113_v31  ;;  %v446_v29 = vld [vmem:[#allocation8 + $0x70] sm:$0xff]  ;;  %v6398_v30 = vcombine.low %v837_v33, %v845_v43  ;;  %v6016_v31 = vcombine.low %v454_v44, %v462_v22  ;;  %v6177_v33 = vcombine.high %v614_v16, %v622_v17 }
 0x287   :  { %v6001_v34 = vcombine.high %v438_v28, %v446_v29  ;;  %v6000_v40 = vcombine.low %v438_v28, %v446_v29  ;;  %v598_v44 = vld [vmem:[#allocation8 + $0x530] sm:$0xff] }
 0x288   :  { %4051 = vmatmul.mubr.bf16.vlgmr.msra.gmra.mxu0 %v7641_v5  ;;  %v606_v22 = vld [vmem:[#allocation8 + $0x570] sm:$0xff] }
 0x289   :  { %4078 = vmatpush2.bf16.msra.mxu1 %v6494_v37  ;;  %4105 = vmatpush1.bf16.msra.mxu0 %v6112_v38  ;;  %v806_v37 = vld [vmem:[#allocation8 + $0xbb0] sm:$0xff] }
 0x28a   :  { %4136 = vmatprep.mubr.bf16.mxu0 %v7639_v4  ;;  %4079 = vmatprep.subr.bf16.mxu1 %v6479_v39  ;;  %v814_v38 = vld [vmem:[#allocation8 + $0xbf0] sm:$0xff]  ;;  %v6382_v39 = vcombine.low %v821_v25, %v829_v27  ;;  %v6161_v25 = vcombine.high %v598_v44, %v606_v22 }
 0x28b   :  { %4106 = vmatprep.subr.bf16.mxu0 %v6097_v41  ;;  %v6241_v41 = vcombine.high %v678_v35, %v686_v36  ;;  %v6369_v42 = vcombine.high %v806_v37, %v814_v38  ;;  %v582_v28 = vld [vmem:[#allocation8 + $0x4b0] sm:$0xff] }
 0x28c   :  { %v590_v29 = vld [vmem:[#allocation8 + $0x4f0] sm:$0xff] }
 0x28d   :  { %4080 = vmatpush2.bf16.msra.mxu1 %v6478_v51  ;;  %4107 = vmatpush1.bf16.msra.mxu0 %v6096_v52  ;;  %v790_v51 = vld [vmem:[#allocation8 + $0xb30] sm:$0xff] }
 0x28e   :  { %4081 = vmatprep.subr.bf16.mxu1 %v6463_v53  ;;  %4108 = vmatprep.subr.bf16.mxu0 %v6081_v54  ;;  %v798_v52 = vld [vmem:[#allocation8 + $0xb70] sm:$0xff]  ;;  %v6240_v53 = vcombine.low %v678_v35, %v686_v36  ;;  %v6368_v54 = vcombine.low %v806_v37, %v814_v38  ;;  %v6145_v35 = vcombine.high %v582_v28, %v590_v29 }
 0x28f   :  { %v6353_v56 = vcombine.high %v790_v51, %v798_v52  ;;  %v566_v37 = vld [vmem:[#allocation8 + $0x430] sm:$0xff] }
 0x290   :  { %v574_v38 = vld [vmem:[#allocation8 + $0x470] sm:$0xff] }
 0x291   :  { %4082 = vmatpush2.bf16.msra.mxu1 %v6462_v58  ;;  %4109 = vmatpush1.bf16.msra.mxu0 %v6080_v59  ;;  %v774_v58 = vld [vmem:[#allocation8 + $0xab0] sm:$0xff] }
 0x292   :  { %4083 = vmatprep.subr.bf16.mxu1 %v6447_v60  ;;  %4110 = vmatprep.subr.bf16.mxu0 %v6065_v62  ;;  %v782_v59 = vld [vmem:[#allocation8 + $0xaf0] sm:$0xff]  ;;  %v6224_v60 = vcombine.low %v662_v45, %v670_v46  ;;  %v6352_v62 = vcombine.low %v790_v51, %v798_v52  ;;  %v6129_v45 = vcombine.high %v566_v37, %v574_v38 }
 0x293   :  { %v6337_v2 = vcombine.high %v774_v58, %v782_v59  ;;  %v934_v51 = vld [vmem:[#allocation8 + $0xfb0] sm:$0xff] }
 0x294   :  { %v942_v52 = vld [vmem:[#allocation8 + $0xff0] sm:$0xff] }
 0x295   :  { %4084 = vmatpush2.bf16.msra.mxu1 %v6446_v7  ;;  %4111 = vmatpush1.bf16.msra.mxu0 %v6064_v9  ;;  %v758_v7 = vld [vmem:[#allocation8 + $0xa30] sm:$0xff] }
 0x296   :  { %4085 = vmatprep.subr.bf16.mxu1 %v6431_v11  ;;  %4112 = vmatprep.subr.bf16.mxu0 %v6049_v13  ;;  %v766_v9 = vld [vmem:[#allocation8 + $0xa70] sm:$0xff]  ;;  %v6208_v11 = vcombine.low %v646_v49, %v654_v57  ;;  %v6336_v13 = vcombine.low %v774_v58, %v782_v59 }
 0x297   :  { %v6321_v15 = vcombine.high %v758_v7, %v766_v9  ;;  %v918_v58 = vld [vmem:[#allocation8 + $0xf30] sm:$0xff] }
 0x298   :  { %v926_v59 = vld [vmem:[#allocation8 + $0xf70] sm:$0xff] }
 0x299   :  { %4086 = vmatpush2.bf16.msra.mxu1 %v6430_v18  ;;  %4113 = vmatpush1.bf16.msra.mxu0 %v6048_v19  ;;  %v742_v18 = vld [vmem:[#allocation8 + $0x9b0] sm:$0xff] }
 0x29a   :  { %4087 = vmatprep.subr.bf16.mxu1 %v6415_v20  ;;  %4114 = vmatprep.subr.bf16.mxu0 %v6033_v21  ;;  %v750_v19 = vld [vmem:[#allocation8 + $0x9f0] sm:$0xff]  ;;  %v6192_v20 = vcombine.low %v630_v3, %v638_v6  ;;  %v6320_v21 = vcombine.low %v758_v7, %v766_v9  ;;  %v6481_v3 = vcombine.high %v918_v58, %v926_v59 }
 0x29b   :  { %v6305_v43 = vcombine.high %v742_v18, %v750_v19  ;;  %v902_v6 = vld [vmem:[#allocation8 + $0xeb0] sm:$0xff] }
 0x29c   :  { %v910_v9 = vld [vmem:[#allocation8 + $0xef0] sm:$0xff] }
 0x29d   :  { %4088 = vmatpush2.bf16.msra.mxu1 %v6414_v8  ;;  %4115 = vmatpush1.bf16.msra.mxu0 %v6032_v10  ;;  %v726_v8 = vld [vmem:[#allocation8 + $0x930] sm:$0xff] }
 0x29e   :  { %4089 = vmatprep.subr.bf16.mxu1 %v6399_v12  ;;  %4116 = vmatprep.subr.bf16.mxu0 %v6017_v24  ;;  %v734_v10 = vld [vmem:[#allocation8 + $0x970] sm:$0xff]  ;;  %v6176_v12 = vcombine.low %v614_v16, %v622_v17  ;;  %v6304_v24 = vcombine.low %v742_v18, %v750_v19  ;;  %v6465_v16 = vcombine.high %v902_v6, %v910_v9 }
 0x29f   :  { %v6289_v27 = vcombine.high %v726_v8, %v734_v10  ;;  %v886_v18 = vld [vmem:[#allocation8 + $0xe30] sm:$0xff] }
 0x2a0   :  { %v894_v19 = vld [vmem:[#allocation8 + $0xe70] sm:$0xff] }
 0x2a1   :  { %4090 = vmatpush2.bf16.msra.mxu1 %v6398_v30  ;;  %4117 = vmatpush1.bf16.msra.mxu0 %v6016_v31  ;;  %v710_v30 = vld [vmem:[#allocation8 + $0x8b0] sm:$0xff] }
 0x2a2   :  { %4091 = vmatprep.subr.bf16.mxu1 %v6383_v32  ;;  %4118 = vmatprep.subr.bf16.mxu0 %v6001_v34  ;;  %v718_v31 = vld [vmem:[#allocation8 + $0x8f0] sm:$0xff]  ;;  %v6160_v32 = vcombine.low %v598_v44, %v606_v22  ;;  %v6288_v34 = vcombine.low %v726_v8, %v734_v10  ;;  %v6449_v44 = vcombine.high %v886_v18, %v894_v19 }
 0x2a3   :  { %v6273_v36 = vcombine.high %v710_v30, %v718_v31  ;;  %v870_v8 = vld [vmem:[#allocation8 + $0xdb0] sm:$0xff] }
 0x2a4   :  { %v878_v10 = vld [vmem:[#allocation8 + $0xdf0] sm:$0xff] }
 0x2a5   :  { %4092 = vmatpush2.bf16.msra.mxu1 %v6382_v39  ;;  %4119 = vmatpush1.bf16.msra.mxu0 %v6000_v40  ;;  %v694_v39 = vld [vmem:[#allocation8 + $0x830] sm:$0xff] }
 0x2a6   :  { %4120 = vmatprep.subr.bf16.mxu0 %v6241_v41  ;;  %4147 = vmatprep.subr.bf16.mxu1 %v6369_v42  ;;  %v702_v40 = vld [vmem:[#allocation8 + $0x870] sm:$0xff]  ;;  %v6144_v41 = vcombine.low %v582_v28, %v590_v29  ;;  %v6272_v42 = vcombine.low %v710_v30, %v718_v31  ;;  %v471_v31 = vld [vmem:[#allocation8 + $0x138] sm:$0xff] }
 0x2a7   :  { %v6257_v46 = vcombine.high %v694_v39, %v702_v40  ;;  %v6256_v49 = vcombine.low %v694_v39, %v702_v40  ;;  %v854_v29 = vld [vmem:[#allocation8 + $0xd30] sm:$0xff]  ;;  %v455_v40 = vld [vmem:[#allocation8 + $0xb8] sm:$0xff] }
 0x2a8   :  { %4094 = vmatmul.mubr.bf16.vlgmr.msra.gmra.mxu1 %v7659_v63  ;;  %v862_v30 = vld [vmem:[#allocation8 + $0xd70] sm:$0xff] }
 0x2a9   :  { %4121 = vmatpush2.bf16.msra.mxu0 %v6240_v53  ;;  %4148 = vmatpush1.bf16.msra.mxu1 %v6368_v54  ;;  %v551_v53 = vld [vmem:[#allocation8 + $0x3b8] sm:$0xff]  ;;  %v846_v39 = vld [vmem:[#allocation8 + $0xcf0] sm:$0xff] }
 0x2aa   :  { %4179 = vmatprep.mubr.bf16.mxu1 %v7657_v61  ;;  %4122 = vmatprep.subr.bf16.mxu0 %v6225_v55  ;;  %v559_v54 = vld [vmem:[#allocation8 + $0x3f8] sm:$0xff]  ;;  %v6128_v55 = vcombine.low %v566_v37, %v574_v38  ;;  %v838_v38 = vld [vmem:[#allocation8 + $0xcb0] sm:$0xff] }
 0x2ab   :  { %4149 = vmatprep.subr.bf16.mxu1 %v6353_v56  ;;  %v6497_v56 = vcombine.high %v934_v51, %v942_v52  ;;  %v6115_v57 = vcombine.high %v551_v53, %v559_v54 }
 0x2ad   :  { %4123 = vmatpush2.bf16.msra.mxu0 %v6224_v60  ;;  %4150 = vmatpush1.bf16.msra.mxu1 %v6352_v62  ;;  %v535_v60 = vld [vmem:[#allocation8 + $0x338] sm:$0xff] }
 0x2ae   :  { %4124 = vmatprep.subr.bf16.mxu0 %v6209_v1  ;;  %4151 = vmatprep.subr.bf16.mxu1 %v6337_v2  ;;  %v543_v62 = vld [vmem:[#allocation8 + $0x378] sm:$0xff]  ;;  %v6496_v1 = vcombine.low %v934_v51, %v942_v52  ;;  %v6114_v2 = vcombine.low %v551_v53, %v559_v54  ;;  %v822_v52 = vld [vmem:[#allocation8 + $0xc30] sm:$0xff] }
 0x2af   :  { %v6099_v7 = vcombine.high %v535_v60, %v543_v62  ;;  %v830_v53 = vld [vmem:[#allocation8 + $0xc70] sm:$0xff]  ;;  %v439_v54 = vld [vmem:[#allocation8 + $0x38] sm:$0xff] }
 0x2b1   :  { %4125 = vmatpush2.bf16.msra.mxu0 %v6208_v11  ;;  %4152 = vmatpush1.bf16.msra.mxu1 %v6336_v13  ;;  %v519_v11 = vld [vmem:[#allocation8 + $0x2b8] sm:$0xff] }
 0x2b2   :  { %4126 = vmatprep.subr.bf16.mxu0 %v6193_v14  ;;  %4153 = vmatprep.subr.bf16.mxu1 %v6321_v15  ;;  %v527_v13 = vld [vmem:[#allocation8 + $0x2f8] sm:$0xff]  ;;  %v6480_v14 = vcombine.low %v918_v58, %v926_v59  ;;  %v6098_v15 = vcombine.low %v535_v60, %v543_v62 }
 0x2b3   :  { %v6083_v17 = vcombine.high %v519_v11, %v527_v13  ;;  %v679_v59 = vld [vmem:[#allocation8 + $0x7b8] sm:$0xff] }
 0x2b4   :  { %v687_v60 = vld [vmem:[#allocation8 + $0x7f8] sm:$0xff] }
 0x2b5   :  { %4127 = vmatpush2.bf16.msra.mxu0 %v6192_v20  ;;  %4154 = vmatpush1.bf16.msra.mxu1 %v6320_v21  ;;  %v503_v20 = vld [vmem:[#allocation8 + $0x238] sm:$0xff] }
 0x2b6   :  { %4128 = vmatprep.subr.bf16.mxu0 %v6177_v33  ;;  %4155 = vmatprep.subr.bf16.mxu1 %v6305_v43  ;;  %v511_v21 = vld [vmem:[#allocation8 + $0x278] sm:$0xff]  ;;  %v6464_v33 = vcombine.low %v902_v6, %v910_v9  ;;  %v6082_v43 = vcombine.low %v519_v11, %v527_v13  ;;  %v6243_v6 = vcombine.high %v679_v59, %v687_v60 }
 0x2b7   :  { %v6067_v22 = vcombine.high %v503_v20, %v511_v21  ;;  %v807_v62 = vld [vmem:[#allocation8 + $0xbb8] sm:$0xff] }
 0x2b8   :  { %v663_v9 = vld [vmem:[#allocation8 + $0x738] sm:$0xff] }
 0x2b9   :  { %4129 = vmatpush2.bf16.msra.mxu0 %v6176_v12  ;;  %4156 = vmatpush1.bf16.msra.mxu1 %v6304_v24  ;;  %v487_v12 = vld [vmem:[#allocation8 + $0x1b8] sm:$0xff]  ;;  %v6448_v24 = vcombine.low %v886_v18, %v894_v19 }
 0x2ba   :  { %4130 = vmatprep.subr.bf16.mxu0 %v6161_v25  ;;  %4157 = vmatprep.subr.bf16.mxu1 %v6289_v27  ;;  %v6066_v25 = vcombine.low %v503_v20, %v511_v21  ;;  %v6433_v27 = vcombine.high %v870_v8, %v878_v10  ;;  %v671_v11 = vld [vmem:[#allocation8 + $0x778] sm:$0xff] }
 0x2bb   :  { %v791_v13 = vld [vmem:[#allocation8 + $0xb38] sm:$0xff] }
 0x2bc   :  { %v647_v18 = vld [vmem:[#allocation8 + $0x6b8] sm:$0xff] }
 0x2bd   :  { %4131 = vmatpush2.bf16.msra.mxu0 %v6160_v32  ;;  %4158 = vmatpush1.bf16.msra.mxu1 %v6288_v34  ;;  %v479_v32 = vld [vmem:[#allocation8 + $0x178] sm:$0xff]  ;;  %v6432_v34 = vcombine.low %v870_v8, %v878_v10 }
 0x2be   :  { %4132 = vmatprep.subr.bf16.mxu0 %v6145_v35  ;;  %4159 = vmatprep.subr.bf16.mxu1 %v6273_v36  ;;  %v6417_v36 = vcombine.high %v854_v29, %v862_v30  ;;  %v6035_v37 = vcombine.high %v471_v31, %v479_v32  ;;  %v655_v20 = vld [vmem:[#allocation8 + $0x6f8] sm:$0xff] }
 0x2bf   :  { %v775_v21 = vld [vmem:[#allocation8 + $0xab8] sm:$0xff] }
 0x2c0   :  { %v631_v10 = vld [vmem:[#allocation8 + $0x638] sm:$0xff] }
 0x2c1   :  { %4133 = vmatpush2.bf16.msra.mxu0 %v6144_v41  ;;  %4160 = vmatpush1.bf16.msra.mxu1 %v6272_v42  ;;  %v463_v41 = vld [vmem:[#allocation8 + $0xf8] sm:$0xff]  ;;  %v6416_v42 = vcombine.low %v854_v29, %v862_v30 }
 0x2c2   :  { %4134 = vmatprep.subr.bf16.mxu0 %v6129_v45  ;;  %4161 = vmatprep.subr.bf16.mxu1 %v6257_v46  ;;  %v6034_v45 = vcombine.low %v471_v31, %v479_v32  ;;  %v6401_v46 = vcombine.high %v838_v38, %v846_v39  ;;  %v6019_v51 = vcombine.high %v455_v40, %v463_v41  ;;  %v615_v30 = vld [vmem:[#allocation8 + $0x5b8] sm:$0xff] }
 0x2c3   :  { %v623_v31 = vld [vmem:[#allocation8 + $0x5f8] sm:$0xff] }
 0x2c4   :  { %v743_v32 = vld [vmem:[#allocation8 + $0x9b8] sm:$0xff] }
 0x2c5   :  { %4135 = vmatpush2.bf16.msra.mxu0 %v6128_v55  ;;  %4162 = vmatpush1.bf16.msra.mxu1 %v6256_v49  ;;  %v447_v55 = vld [vmem:[#allocation8 + $0x78] sm:$0xff]  ;;  %v6400_v49 = vcombine.low %v838_v38, %v846_v39 }
 0x2c6   :  { %4163 = vmatprep.subr.bf16.mxu1 %v6497_v56  ;;  %4190 = vmatprep.subr.bf16.mxu0 %v6115_v57  ;;  %v6018_v56 = vcombine.low %v455_v40, %v463_v41  ;;  %v6385_v57 = vcombine.high %v822_v52, %v830_v53  ;;  %v6003_v58 = vcombine.high %v439_v54, %v447_v55  ;;  %v599_v38 = vld [vmem:[#allocation8 + $0x538] sm:$0xff] }
 0x2c7   :  { %v607_v39 = vld [vmem:[#allocation8 + $0x578] sm:$0xff] }
 0x2c8   :  { %4137 = vmatmul.mubr.bf16.vlgmr.msra.gmra.mxu0 %v7641_v5  ;;  %v727_v40 = vld [vmem:[#allocation8 + $0x938] sm:$0xff] }
 0x2c9   :  { %4164 = vmatpush2.bf16.msra.mxu1 %v6496_v1  ;;  %4191 = vmatpush1.bf16.msra.mxu0 %v6114_v2  ;;  %v815_v1 = vld [vmem:[#allocation8 + $0xbf8] sm:$0xff]  ;;  %v6384_v2 = vcombine.low %v822_v52, %v830_v53 }
 0x2ca   :  { %4222 = vmatprep.mubr.bf16.mxu0 %v7639_v4  ;;  %4165 = vmatprep.subr.bf16.mxu1 %v6481_v3  ;;  %v495_v4 = vld [vmem:[#allocation8 + $0x1f8] sm:$0xff]  ;;  %v6002_v3 = vcombine.low %v439_v54, %v447_v55 }
 0x2cb   :  { %4192 = vmatprep.subr.bf16.mxu0 %v6099_v7  ;;  %v6051_v28 = vcombine.high %v487_v12, %v495_v4  ;;  %v6050_v35 = vcombine.low %v487_v12, %v495_v4  ;;  %v6371_v7 = vcombine.high %v807_v62, %v815_v1  ;;  %v639_v12 = vld [vmem:[#allocation8 + $0x678] sm:$0xff] }
 0x2cc   :  { %v759_v4 = vld [vmem:[#allocation8 + $0xa38] sm:$0xff] }
 0x2cd   :  { %4166 = vmatpush2.bf16.msra.mxu1 %v6480_v14  ;;  %4193 = vmatpush1.bf16.msra.mxu0 %v6098_v15  ;;  %v799_v14 = vld [vmem:[#allocation8 + $0xb78] sm:$0xff]  ;;  %v6242_v15 = vcombine.low %v679_v59, %v687_v60 }
 0x2ce   :  { %4167 = vmatprep.subr.bf16.mxu1 %v6465_v16  ;;  %4194 = vmatprep.subr.bf16.mxu0 %v6083_v17  ;;  %v6370_v16 = vcombine.low %v807_v62, %v815_v1  ;;  %v6227_v17 = vcombine.high %v663_v9, %v671_v11  ;;  %v6355_v19 = vcombine.high %v791_v13, %v799_v14  ;;  %v735_v41 = vld [vmem:[#allocation8 + $0x978] sm:$0xff] }
 0x2cf   :  { %v583_v52 = vld [vmem:[#allocation8 + $0x4b8] sm:$0xff] }
 0x2d0   :  { %v591_v53 = vld [vmem:[#allocation8 + $0x4f8] sm:$0xff] }
 0x2d1   :  { %4168 = vmatpush2.bf16.msra.mxu1 %v6464_v33  ;;  %4195 = vmatpush1.bf16.msra.mxu0 %v6082_v43  ;;  %v783_v33 = vld [vmem:[#allocation8 + $0xaf8] sm:$0xff]  ;;  %v6226_v43 = vcombine.low %v663_v9, %v671_v11 }
 0x2d2   :  { %4169 = vmatprep.subr.bf16.mxu1 %v6449_v44  ;;  %4196 = vmatprep.subr.bf16.mxu0 %v6067_v22  ;;  %v6354_v44 = vcombine.low %v791_v13, %v799_v14  ;;  %v6211_v22 = vcombine.high %v647_v18, %v655_v20  ;;  %v6339_v8 = vcombine.high %v775_v21, %v783_v33  ;;  %v711_v54 = vld [vmem:[#allocation8 + $0x8b8] sm:$0xff] }
 0x2d3   :  { %v719_v55 = vld [vmem:[#allocation8 + $0x8f8] sm:$0xff] }
 0x2d4   :  { %v567_v59 = vld [vmem:[#allocation8 + $0x438] sm:$0xff] }
 0x2d5   :  { %4170 = vmatpush2.bf16.msra.mxu1 %v6448_v24  ;;  %4197 = vmatpush1.bf16.msra.mxu0 %v6066_v25  ;;  %v767_v24 = vld [vmem:[#allocation8 + $0xa78] sm:$0xff]  ;;  %v6210_v25 = vcombine.low %v647_v18, %v655_v20  ;;  %v7158_v20 = vld [vmem:[#allocation11 + $0x38] sm:$0xff]  }
 0x2d6   :  { %4171 = vmatprep.subr.bf16.mxu1 %v6433_v27  ;;  %4198 = vmatprep.subr.bf16.mxu0 %v6051_v28  ;;  %v6338_v27 = vcombine.low %v775_v21, %v783_v33  ;;  %v6195_v28 = vcombine.high %v631_v10, %v639_v12  ;;  %v6323_v29 = vcombine.high %v759_v4, %v767_v24  ;;  %v575_v60 = vld [vmem:[#allocation8 + $0x478] sm:$0xff]  ;;  %v7159_v33 = vld [vmem:[#allocation11 + $0x70] sm:$0xff]  }
 0x2d7   :  { %v695_v62 = vld [vmem:[#allocation8 + $0x838] sm:$0xff]  ;;  %v6130_v13 = vcombine.low %v567_v59, %v575_v60 }
 0x2d8   :  { %v703_v1 = vld [vmem:[#allocation8 + $0x878] sm:$0xff] }
 0x2d9   :  { %4172 = vmatpush2.bf16.msra.mxu1 %v6432_v34  ;;  %4199 = vmatpush1.bf16.msra.mxu0 %v6050_v35  ;;  %v6194_v34 = vcombine.low %v631_v10, %v639_v12  ;;  %v6322_v35 = vcombine.low %v759_v4, %v767_v24  ;;  %v935_v9 = vld [vmem:[#allocation8 + $0xfb8] sm:$0xff]  ;;  %v6258_v14 = vcombine.low %v695_v62, %v703_v1 }
 0x2da   :  { %4173 = vmatprep.subr.bf16.mxu1 %v6417_v36  ;;  %4200 = vmatprep.subr.bf16.mxu0 %v6035_v37  ;;  %v6179_v36 = vcombine.high %v615_v30, %v623_v31  ;;  %v943_v11 = vld [vmem:[#allocation8 + $0xff8] sm:$0xff] }
 0x2db   :  { %v927_v18 = vld [vmem:[#allocation8 + $0xf78] sm:$0xff] }
 0x2dc   :  { %v7161_v12 = vld [vmem:[#allocation11 + $0x68] sm:$0xff]  }
 0x2dd   :  { %4174 = vmatpush2.bf16.msra.mxu1 %v6416_v42  ;;  %4201 = vmatpush1.bf16.msra.mxu0 %v6034_v45  ;;  %v6178_v42 = vcombine.low %v615_v30, %v623_v31  ;;  %v887_v4 = vld [vmem:[#allocation8 + $0xe38] sm:$0xff] }
 0x2de   :  { %4175 = vmatprep.subr.bf16.mxu1 %v6401_v46  ;;  %4202 = vmatprep.subr.bf16.mxu0 %v6019_v51  ;;  %v6163_v46 = vcombine.high %v599_v38, %v607_v39  ;;  %v6291_v51 = vcombine.high %v727_v40, %v735_v41  ;;  %v895_v24 = vld [vmem:[#allocation8 + $0xe78] sm:$0xff] }
 0x2df   :  { %v879_v30 = vld [vmem:[#allocation8 + $0xdf8] sm:$0xff]  ;;  %v6450_v31 = vcombine.low %v887_v4, %v895_v24 }
 0x2e1   :  { %4176 = vmatpush2.bf16.msra.mxu1 %v6400_v49  ;;  %4203 = vmatpush1.bf16.msra.mxu0 %v6018_v56  ;;  %v6162_v49 = vcombine.low %v599_v38, %v607_v39  ;;  %v6290_v56 = vcombine.low %v727_v40, %v735_v41  ;;  %v7166_v38 = vld [vmem:[#allocation11 + $0x18] sm:$0xff]   ;;  %v7167_v40 = vld [vmem:[#allocation11 + $0x50] sm:$0xff]   ;;  %v839_v41 = vld [vmem:[#allocation8 + $0xcb8] sm:$0xff] }
 0x2e2   :  { %4177 = vmatprep.subr.bf16.mxu1 %v6385_v57  ;;  %4204 = vmatprep.subr.bf16.mxu0 %v6003_v58  ;;  %v6147_v57 = vcombine.high %v583_v52, %v591_v53  ;;  %v6275_v58 = vcombine.high %v711_v54, %v719_v55 }
 0x2e5   :  { %4178 = vmatpush2.bf16.msra.mxu1 %v6384_v2  ;;  %4205 = vmatpush1.bf16.msra.mxu0 %v6002_v3  ;;  %v6146_v2 = vcombine.low %v583_v52, %v591_v53  ;;  %v6274_v3 = vcombine.low %v711_v54, %v719_v55  ;;  %v7169_v52 = vld [vmem:[#allocation11 + $0x48] sm:$0xff]  }
 0x2e6   :  { %4206 = vmatprep.subr.bf16.mxu0 %v6243_v6  ;;  %4233 = vmatprep.subr.bf16.mxu1 %v6371_v7  ;;  %v6131_v6 = vcombine.high %v567_v59, %v575_v60  ;;  %v6259_v7 = vcombine.high %v695_v62, %v703_v1  ;;  %v823_v53 = vld [vmem:[#allocation8 + $0xc38] sm:$0xff]  ;;  %v7172_v59 = vld [vmem:[#allocation11] sm:$0xff]   ;;  %v7173_v60 = vld [vmem:[#allocation11 + $0xf8] sm:$0xff]  }
 0x2e7   :  { %v831_v54 = vld [vmem:[#allocation8 + $0xc78] sm:$0xff]  ;;  %v7185_v62 = vld [vmem:[#allocation11 + $0x178] sm:$0xff]  }
 0x2e8   :  { %4180 = vmatmul.mubr.bf16.vlgmr.msra.gmra.mxu1 %v7659_v63  ;;  %v7174_v1 = vld [vmem:[#allocation11 + $0xb8] sm:$0xff]  }
 0x2e9   :  { %4207 = vmatpush2.bf16.msra.mxu0 %v6242_v15  ;;  %4234 = vmatpush1.bf16.msra.mxu1 %v6370_v16  ;;  %v6499_v15 = vcombine.high %v935_v9, %v943_v11  ;;  %v7157_v16 = vld [vmem:[#allocation11 + $0x78] sm:$0xff]  }
 0x2ea   :  { %4265 = vmatprep.mubr.bf16.mxu1 %v7657_v61  ;;  %4208 = vmatprep.subr.bf16.mxu0 %v6227_v17  ;;  %v751_v61 = vld [vmem:[#allocation8 + $0x9f8] sm:$0xff] }
 0x2eb   :  { %4235 = vmatprep.subr.bf16.mxu1 %v6355_v19  ;;  %v6307_v37 = vcombine.high %v743_v32, %v751_v61  ;;  %v6306_v45 = vcombine.low %v743_v32, %v751_v61  ;;  %v919_v17 = vld [vmem:[#allocation8 + $0xf38] sm:$0xff]  ;;  %v6498_v19 = vcombine.low %v935_v9, %v943_v11  ;;  %v7164_v32 = vld [vmem:[#allocation11 + $0x20] sm:$0xff]   ;;  %v3622_v9 = vpop.f32.mrf.mxu0 }
 0x2ec   :  { %v6483_v21 = vcombine.high %v919_v17, %v927_v18  ;;  %v7177_v11 = vld [vmem:[#allocation11 + $0xe8] sm:$0xff]  }
 0x2ed   :  { %4209 = vmatpush2.bf16.msra.mxu0 %v6226_v43  ;;  %4236 = vmatpush1.bf16.msra.mxu1 %v6354_v44  ;;  %v903_v43 = vld [vmem:[#allocation8 + $0xeb8] sm:$0xff] }
 0x2ee   :  { %4210 = vmatprep.subr.bf16.mxu0 %v6211_v22  ;;  %4237 = vmatprep.subr.bf16.mxu1 %v6339_v8  ;;  %v911_v44 = vld [vmem:[#allocation8 + $0xef8] sm:$0xff]  ;;  %v6482_v22 = vcombine.low %v919_v17, %v927_v18  ;;  %v7160_v8 = vld [vmem:[#allocation11 + $0x30] sm:$0xff]   ;;  %v3624_v17 = vpop.f32.mrf.mxu0 }
 0x2ef   :  { %v6467_v10 = vcombine.high %v903_v43, %v911_v44  ;;  %v7194_v18 = vld [vmem:[#allocation11 + $0x128] sm:$0xff]  }
 0x2f1   :  { %4211 = vmatpush2.bf16.msra.mxu0 %v6210_v25  ;;  %4238 = vmatpush1.bf16.msra.mxu1 %v6338_v27  ;;  %v6466_v25 = vcombine.low %v903_v43, %v911_v44  ;;  %v7162_v27 = vld [vmem:[#allocation11 + $0x28] sm:$0xff]   ;;  %v3626_v43 = vpop.f32.mrf.mxu0  ;;  %v7181_v44 = vld [vmem:[#allocation11 + $0xd8] sm:$0xff]  }
 0x2f2   :  { %4212 = vmatprep.subr.bf16.mxu0 %v6195_v28  ;;  %4239 = vmatprep.subr.bf16.mxu1 %v6323_v29  ;;  %v6451_v28 = vcombine.high %v887_v4, %v895_v24  ;;  %v871_v29 = vld [vmem:[#allocation8 + $0xdb8] sm:$0xff]  ;;  %v7182_v24 = vld [vmem:[#allocation11 + $0x98] sm:$0xff]  }
 0x2f3   :  { %v6435_v61 = vcombine.high %v871_v29, %v879_v30 }
 0x2f5   :  { %4213 = vmatpush2.bf16.msra.mxu0 %v6194_v34  ;;  %4240 = vmatpush1.bf16.msra.mxu1 %v6322_v35  ;;  %v7165_v34 = vld [vmem:[#allocation11 + $0x58] sm:$0xff]   ;;  %v855_v35 = vld [vmem:[#allocation8 + $0xd38] sm:$0xff] }
 0x2f6   :  { %4214 = vmatprep.subr.bf16.mxu0 %v6179_v36  ;;  %4241 = vmatprep.subr.bf16.mxu1 %v6307_v37  ;;  %v863_v36 = vld [vmem:[#allocation8 + $0xd78] sm:$0xff]  ;;  %v6434_v37 = vcombine.low %v871_v29, %v879_v30  ;;  %v7203_v29 = vld [vmem:[#allocation11 + $0x150] sm:$0xff]   ;;  %v3628_v30 = vpop.f32.mrf.mxu0 }
 0x2f7   :  { %v6419_v39 = vcombine.high %v855_v35, %v863_v36 }
 0x2f9   :  { %4215 = vmatpush2.bf16.msra.mxu0 %v6178_v42  ;;  %4242 = vmatpush1.bf16.msra.mxu1 %v6306_v45  ;;  %v847_v42 = vld [vmem:[#allocation8 + $0xcf8] sm:$0xff]  ;;  %v6418_v45 = vcombine.low %v855_v35, %v863_v36  ;;  %v7204_v36 = vld [vmem:[#allocation11 + $0x110] sm:$0xff]  }
 0x2fa   :  { %4216 = vmatprep.subr.bf16.mxu0 %v6163_v46  ;;  %4243 = vmatprep.subr.bf16.mxu1 %v6291_v51  ;;  %v7168_v46 = vld [vmem:[#allocation11 + $0x10] sm:$0xff]   ;;  %v6403_v51 = vcombine.high %v839_v41, %v847_v42  ;;  %v6402_v55 = vcombine.low %v839_v41, %v847_v42  ;;  %v7186_v35 = vld [vmem:[#allocation11 + $0xc8] sm:$0xff]  }
 0x2fd   :  { %4217 = vmatpush2.bf16.msra.mxu0 %v6162_v49  ;;  %4244 = vmatpush1.bf16.msra.mxu1 %v6290_v56  ;;  %v7170_v49 = vld [vmem:[#allocation11 + $0x8] sm:$0xff]   ;;  %v6387_v56 = vcombine.high %v823_v53, %v831_v54 }
 0x2fe   :  { %4218 = vmatprep.subr.bf16.mxu0 %v6147_v57  ;;  %4245 = vmatprep.subr.bf16.mxu1 %v6275_v58  ;;  %v7171_v57 = vld [vmem:[#allocation11 + $0x40] sm:$0xff]   ;;  %v6386_v58 = vcombine.low %v823_v53, %v831_v54 }
 0x301   :  { %4219 = vmatpush2.bf16.msra.mxu0 %v6146_v2  ;;  %4246 = vmatpush1.bf16.msra.mxu1 %v6274_v3  ;;  %v7175_v2 = vld [vmem:[#allocation11 + $0xf0] sm:$0xff]   ;;  %v7187_v3 = vld [vmem:[#allocation11 + $0x138] sm:$0xff]  }
 0x302   :  { %4220 = vmatprep.subr.bf16.mxu0 %v6131_v6  ;;  %4247 = vmatprep.subr.bf16.mxu1 %v6259_v7  ;;  %v7191_v6 = vld [vmem:[#allocation11 + $0x170] sm:$0xff]  }
 0x303   :  { %v7176_v7 = vld [vmem:[#allocation11 + $0xb0] sm:$0xff]  }
 0x305   :  { %4221 = vmatpush2.bf16.msra.mxu0 %v6130_v13  ;;  %4248 = vmatpush1.bf16.msra.mxu1 %v6258_v14  ;;  %v7192_v13 = vld [vmem:[#allocation11 + $0x130] sm:$0xff]   ;;  %v7193_v14 = vld [vmem:[#allocation11 + $0x168] sm:$0xff]  }
 0x306   :  { %4249 = vmatprep.subr.bf16.mxu1 %v6499_v15  ;;  %6573 = vmatprep.subr.bf16.mxu0 %v7157_v16  ;;  %v3665_v15 = vpop.f32.mrf.mxu1  ;;  %v7178_v16 = vld [vmem:[#allocation11 + $0xa8] sm:$0xff]  }
 0x308   :  { %4223 = vmatmul.mubr.bf16.vlgmr.msra.gmra.mxu0 %v7641_v5  ;;  %v7163_v5 = vld [vmem:[#allocation11 + $0x60] sm:$0xff]  }
 0x309   :  { %4250 = vmatpush2.bf16.msra.mxu1 %v6498_v19  ;;  %6574 = vmatpush3.bf16.msra.mxu0 %v7158_v20  ;;  %v7195_v19 = vld [vmem:[#allocation11 + $0x160] sm:$0xff]   ;;  %v7697_v20 = vld [vmem:[#allocation10] sm:$0xff] }
 0x30a   :  { %4251 = vmatprep.subr.bf16.mxu1 %v6483_v21  ;;  %6575 = vmatprep.subr.bf16.mxu0 %v7159_v33  ;;  %v3667_v21 = vpop.f32.mrf.mxu1  ;;  %v7180_v33 = vld [vmem:[#allocation11 + $0xa0] sm:$0xff]  }
 0x30b   :  { %4939 = vmatprep.mubr.bf16.mxu0 %v7541_v0 }
 0x30d   :  { %4252 = vmatpush2.bf16.msra.mxu1 %v6482_v22  ;;  %6576 = vmatpush3.bf16.msra.mxu0 %v7160_v8  ;;  %v7196_v22 = vld [vmem:[#allocation11 + $0x120] sm:$0xff]   ;;  %v951_v8 = vrot.slane %v7697_v20, %v7635_v50 }
 0x30e   :  { %4253 = vmatprep.subr.bf16.mxu1 %v6467_v10  ;;  %6577 = vmatprep.subr.bf16.mxu0 %v7161_v12  ;;  %v7199_v10 = vld [vmem:[#allocation11 + $0x158] sm:$0xff]   ;;  %v3669_v12 = vpop.f32.mrf.mxu1 }
 0x30f   :  { %v3627_v4 = vadd.f32 %v3626_v43, %v951_v8 }
 0x311   :  { %4254 = vmatpush2.bf16.msra.mxu1 %v6466_v25  ;;  %6578 = vmatpush3.bf16.msra.mxu0 %v7162_v27  ;;  %v7183_v25 = vld [vmem:[#allocation11 + $0xd0] sm:$0xff]   ;;  %v7200_v27 = vld [vmem:[#allocation11 + $0x118] sm:$0xff]  }
 0x312   :  { %4255 = vmatprep.subr.bf16.mxu1 %v6451_v28  ;;  %6579 = vmatprep.subr.bf16.mxu0 %v7163_v5  ;;  %v3623_v28 = vadd.f32 %v3622_v9, %v951_v8  ;;  %v3670_v5 = vadd.f32 %v3669_v12, %v3627_v4  ;;  %v7206_v4 = vld [vmem:[#allocation11 + $0x1a8] sm:$0xff]  }
 0x315   :  { %4256 = vmatpush2.bf16.msra.mxu1 %v6450_v31  ;;  %6580 = vmatpush3.bf16.msra.mxu0 %v7164_v32  ;;  %v3666_v31 = vadd.f32 %v3665_v15, %v3623_v28  ;;  %v7184_v32 = vld [vmem:[#allocation11 + $0x90] sm:$0xff]   ;;  %v966_v28 = vsub.s32 4, %v7629_v47 }
 0x316   :  { %4257 = vmatprep.subr.bf16.mxu1 %v6435_v61  ;;  %6581 = vmatprep.subr.bf16.mxu0 %v7165_v34  ;;  %v3671_v61 = vpop.f32.mrf.mxu1  ;;  %v3708_v34 = vpop.f32.mrf.mxu0 }
 0x317   :  { %v4276_v42 = vmax.f32 %v3666_v31, 0.0 }
 0x319   :  { %4258 = vmatpush2.bf16.msra.mxu1 %v6434_v37  ;;  %6582 = vmatpush3.bf16.msra.mxu0 %v7166_v38  ;;  %v955_v37 = vrot.slane %v7697_v20, %v7632_v48  ;;  %v4292_v38 = vmax.f32 %v3670_v5, 0.0  ;;  %v7211_v5 = vld [vmem:[#allocation11 + $0x1e0] sm:$0xff]  }
 0x31a   :  { %4259 = vmatprep.subr.bf16.mxu1 %v6419_v39  ;;  %6583 = vmatprep.subr.bf16.mxu0 %v7167_v40  ;;  %v7207_v39 = vld [vmem:[#allocation11 + $0x148] sm:$0xff]   ;;  %v3751_v40 = vpop.f32.mrf.mxu1 }
 0x31b   :  { %v3629_v41 = vadd.f32 %v3628_v30, %v955_v37  ;;  %v3625_v53 = vadd.f32 %v3624_v17, %v955_v37  ;;  %v7707_v54 = vpack.c.bf16 %v4292_v38, %v4276_v42  ;;  %v970_v42 = vsub.s32 5, %v7629_v47 }
 0x31d   :  { %4260 = vmatpush2.bf16.msra.mxu1 %v6418_v45  ;;  %6584 = vmatpush3.bf16.msra.mxu0 %v7168_v46  ;;  %v7188_v45 = vld [vmem:[#allocation11 + $0x88] sm:$0xff]   ;;  %v3710_v46 = vpop.f32.mrf.mxu0 }
 0x31e   :  { %4261 = vmatprep.subr.bf16.mxu1 %v6403_v51  ;;  %6585 = vmatprep.subr.bf16.mxu0 %v7169_v52  ;;  %v7189_v51 = vld [vmem:[#allocation11 + $0xc0] sm:$0xff]   ;;  %v7208_v52 = vld [vmem:[#allocation11 + $0x108] sm:$0xff]  }
 0x321   :  { %4262 = vmatpush2.bf16.msra.mxu1 %v6402_v55  ;;  %6586 = vmatpush3.bf16.msra.mxu0 %v7170_v49  ;;  %v3672_v55 = vadd.f32 %v3671_v61, %v3629_v41  ;;  %v7209_v49 = vld [vmem:[#allocation11 + $0x140] sm:$0xff]  }
 0x322   :  { %4263 = vmatprep.subr.bf16.mxu1 %v6387_v56  ;;  %6587 = vmatprep.subr.bf16.mxu0 %v7171_v57  ;;  %v3753_v56 = vpop.f32.mrf.mxu1  ;;  %v3668_v57 = vadd.f32 %v3667_v21, %v3625_v53  ;;  %v7202_v21 = vld [vmem:[#allocation11 + $0x1b0] sm:$0xff]  }
 0x325   :  { %4264 = vmatpush2.bf16.msra.mxu1 %v6386_v58  ;;  %6588 = vmatpush3.bf16.msra.mxu0 %v7172_v59  ;;  %v7190_v58 = vld [vmem:[#allocation11 + $0x80] sm:$0xff]   ;;  %v3712_v59 = vpop.f32.mrf.mxu0 }
 0x326   :  { %6685 = vmatprep.subr.bf16.mxu1 %v7173_v60  ;;  %6797 = vmatprep.subr.bf16.mxu0 %v7185_v62  ;;  %v7197_v60 = vld [vmem:[#allocation11 + $0x1f8] sm:$0xff]   ;;  %v7210_v62 = vld [vmem:[#allocation11 + $0x100] sm:$0xff]  }
 0x327   :  { %v3714_v17 = vpop.f32.mrf.mxu0 }
 0x328   :  { %4266 = vmatmul.mubr.bf16.vlgmr.msra.gmra.mxu1 %v7659_v63  ;;  %4940 = vmatmul.mubr.bf16.vlgmr.msra.gmra.mxu0 %v7541_v0  ;;  %v7179_v63 = vld [vmem:[#allocation11 + $0xe0] sm:$0xff]  }
 0x329   :  { %6686 = vmatpush3.bf16.msra.mxu1 %v7174_v1  ;;  %4947 = vmatprep.mubr.bf16.mxu0 %v7541_v0  ;;  %v4293_v1 = vmax.f32 %v3672_v55, 0.0 }
 0x32a   :  { %6687 = vmatprep.subr.bf16.mxu1 %v7175_v2  ;;  %6798 = vmatpush3.bf16.msra.mxu0 %v7187_v3  ;;  %v959_v2 = vrot.slane %v7697_v20, %v7653_v26  ;;  %v7713_v3 = vld [vmem:[#allocation11 + $0x238] sm:$0xff]  }
 0x32b   :  { %5100 = vmatprep.mubr.bf16.mxu1 %v7541_v0  ;;  %6799 = vmatprep.subr.bf16.mxu0 %v7191_v6  ;;  %v3755_v6 = vpop.f32.mrf.mxu1 }
 0x32c   :  { %v3713_v9 = vadd.f32 %v3712_v59, %v959_v2 }
 0x32d   :  { %6688 = vmatpush3.bf16.msra.mxu1 %v7176_v7  ;;  %v4277_v7 = vmax.f32 %v3668_v57, 0.0 }
 0x32e   :  { %6689 = vmatprep.subr.bf16.mxu1 %v7177_v11  ;;  %6800 = vmatpush3.bf16.msra.mxu0 %v7192_v13  ;;  %v7198_v11 = vld [vmem:[#allocation11 + $0x1b8] sm:$0xff]   ;;  %v3756_v15 = vadd.f32 %v3755_v6, %v3713_v9 }
 0x32f   :  { %6801 = vmatprep.subr.bf16.mxu0 %v7193_v14  ;;  %v7715_v13 = vpack.c.bf16 %v4293_v1, %v4277_v7  ;;  %v3709_v14 = vadd.f32 %v3708_v34, %v959_v2  ;;  %v967_v34 = vrot.slane %v7697_v20, %v966_v28  ;;  %v7220_v2 = vld [vmem:[#allocation11 + $0x188] sm:$0xff]  }
 0x330   :  { %4948 = vmatmul.mubr.bf16.gmra.mxu0 %v7541_v0  ;;  %v4294_v43 = vmax.f32 %v3756_v15, 0.0 }
 0x331   :  { %6690 = vmatpush3.bf16.msra.mxu1 %v7178_v16  ;;  %4955 = vmatprep.mubr.bf16.mxu0 %v7541_v0  ;;  %v7201_v16 = vld [vmem:[#allocation11 + $0x1f0] sm:$0xff]  }
 0x332   :  { %6691 = vmatprep.subr.bf16.mxu1 %v7179_v63  ;;  %6802 = vmatpush3.bf16.msra.mxu0 %v7194_v18  ;;  %v3752_v63 = vadd.f32 %v3751_v40, %v3709_v14  ;;  %v3757_v18 = vpop.f32.mrf.mxu1 }
 0x333   :  { %6803 = vmatprep.subr.bf16.mxu0 %v7195_v19  ;;  %v3794_v19 = vpop.f32.mrf.mxu0 }
 0x334   :  { %v3795_v41 = vadd.f32 %v3794_v19, %v967_v34 }
 0x335   :  { %6692 = vmatpush3.bf16.msra.mxu1 %v7180_v33  ;;  %v963_v33 = vrot.slane %v7697_v20, %v7650_v23  ;;  %v3796_v12 = vpop.f32.mrf.mxu0 }
 0x336   :  { %6693 = vmatprep.subr.bf16.mxu1 %v7181_v44  ;;  %6804 = vmatpush3.bf16.msra.mxu0 %v7196_v22  ;;  %v7205_v44 = vld [vmem:[#allocation11 + $0x1e8] sm:$0xff]   ;;  %v3837_v22 = vpop.f32.mrf.mxu1 }
 0x337   :  { %6805 = vmatprep.subr.bf16.mxu0 %v7199_v10  ;;  %v3715_v8 = vadd.f32 %v3714_v17, %v963_v33  ;;  %v4278_v10 = vmax.f32 %v3752_v63, 0.0  ;;  %v3798_v31 = vpop.f32.mrf.mxu0 }
 0x338   :  { %4956 = vmatmul.mubr.bf16.gmra.mxu0 %v7541_v0  ;;  %v3799_v38 = vadd.f32 %v3798_v31, %v967_v34  ;;  %v7222_v31 = vld [vmem:[#allocation11 + $0x1c0] sm:$0xff]  }
 0x339   :  { %6694 = vmatpush3.bf16.msra.mxu1 %v7182_v24  ;;  %4963 = vmatprep.mubr.bf16.mxu0 %v7541_v0  ;;  %v3711_v24 = vadd.f32 %v3710_v46, %v963_v33  ;;  %v7216_v46 = vld [vmem:[#allocation11 + $0x1d0] sm:$0xff]  }
 0x33a   :  { %6695 = vmatprep.subr.bf16.mxu1 %v7183_v25  ;;  %6806 = vmatpush3.bf16.msra.mxu0 %v7200_v27  ;;  %v7724_v25 = vpack.c.bf16 %v4294_v43, %v4278_v10  ;;  %v3758_v27 = vadd.f32 %v3757_v18, %v3715_v8 }
 0x33b   :  { %6807 = vmatprep.subr.bf16.mxu0 %v7203_v29  ;;  %v3839_v29 = vpop.f32.mrf.mxu1  ;;  %v3754_v30 = vadd.f32 %v3753_v56, %v3711_v24  ;;  %v971_v56 = vrot.slane %v7697_v20, %v970_v42 }
 0x33c   :  { %v4295_v61 = vmax.f32 %v3758_v27, 0.0 }
 0x33d   :  { %6696 = vmatpush3.bf16.msra.mxu1 %v7184_v32  ;;  %v7212_v32 = vld [vmem:[#allocation11 + $0x1a0] sm:$0xff]   ;;  %v4279_v37 = vmax.f32 %v3754_v30, 0.0  ;;  %v3797_v6 = vadd.f32 %v3796_v12, %v971_v56 }
 0x33e   :  { %6697 = vmatprep.subr.bf16.mxu1 %v7186_v35  ;;  %6808 = vmatpush3.bf16.msra.mxu0 %v7204_v36  ;;  %v7213_v35 = vld [vmem:[#allocation11 + $0x1d8] sm:$0xff]   ;;  %v3841_v36 = vpop.f32.mrf.mxu1 }
 0x33f   :  { %6809 = vmatprep.subr.bf16.mxu0 %v7207_v39  ;;  %v7214_v39 = vld [vmem:[#allocation11 + $0x198] sm:$0xff]   ;;  %v7734_v40 = vpack.c.bf16 %v4295_v61, %v4279_v37  ;;  %v3840_v15 = vadd.f32 %v3839_v29, %v3797_v6 }
 0x340   :  { %4964 = vmatmul.mubr.bf16.gmra.mxu0 %v7541_v0  ;;  %v3843_v53 = vpop.f32.mrf.mxu1 }
 0x341   :  { %4971 = vmatprep.mubr.bf16.mxu0 %v7707_v54  ;;  %6698 = vmatpush3.bf16.msra.mxu1 %v7188_v45  ;;  %v3842_v45 = vadd.f32 %v3841_v36, %v3799_v38  ;;  %v4281_v19 = vmax.f32 %v3840_v15, 0.0  ;;  %v7766_v36 = vld [vmem:[#allocation10 + $0x8] sm:$0xff] }
 0x342   :  { %6699 = vmatprep.subr.bf16.mxu1 %v7189_v51  ;;  %6810 = vmatpush3.bf16.msra.mxu0 %v7208_v52  ;;  %v3800_v51 = vpop.f32.mrf.mxu0  ;;  %v3838_v52 = vadd.f32 %v3837_v22, %v3795_v41  ;;  %v3923_v59 = vpop.f32.mrf.mxu1 }
 0x343   :  { %6811 = vmatprep.subr.bf16.mxu0 %v7209_v49  ;;  %v7217_v49 = vld [vmem:[#allocation11 + $0x190] sm:$0xff]   ;;  %v4296_v57 = vmax.f32 %v3842_v45, 0.0  ;;  %v983_v45 = vrot.slane %v7766_v36, %v7635_v50 }
 0x344   :  { %v3880_v55 = vpop.f32.mrf.mxu0  ;;  %v3925_v14 = vpop.f32.mrf.mxu1 }
 0x345   :  { %6700 = vmatpush3.bf16.msra.mxu1 %v7190_v58  ;;  %v7219_v58 = vld [vmem:[#allocation11 + $0x1c8] sm:$0xff]  }
 0x346   :  { %6909 = vmatprep.subr.bf16.mxu1 %v7197_v60  ;;  %6812 = vmatpush3.bf16.msra.mxu0 %v7210_v62  ;;  %v3801_v60 = vadd.f32 %v3800_v51, %v971_v56  ;;  %v4280_v62 = vmax.f32 %v3838_v52, 0.0  ;;  %v3882_v1 = vpop.f32.mrf.mxu0  ;;  %v3927_v18 = vpop.f32.mrf.mxu1 }
 0x347   :  { %7045 = vmatprep.subr.bf16.mxu0 %v7713_v3 }
 0x348   :  { %4972 = vmatmul.mubr.bf16.gmra.mxu0 %v7541_v0  ;;  %5101 = vmatmul.mubr.bf16.vlgmr.msra.gmra.mxu1 %v7541_v0  ;;  %v7744_v7 = vpack.c.bf16 %v4296_v57, %v4280_v62  ;;  %v3844_v9 = vadd.f32 %v3843_v53, %v3801_v60  ;;  %v3929_v12 = vpop.f32.mrf.mxu1 }
 0x349   :  { %4979 = vmatprep.mubr.bf16.mxu0 %v7715_v13  ;;  %5108 = vmatprep.mubr.bf16.mxu1 %v7707_v54 }
 0x34a   :  { %6910 = vmatpush3.bf16.msra.mxu1 %v7198_v11  ;;  %v974_v11 = vsub.s32 6, %v7629_v47  ;;  %v4297_v17 = vmax.f32 %v3844_v9, 0.0 }
 0x34b   :  { %6911 = vmatprep.subr.bf16.mxu1 %v7201_v16  ;;  %v3884_v16 = vpop.f32.mrf.mxu0 }
 0x34c   :  { %v975_v63 = vrot.slane %v7697_v20, %v974_v11  ;;  %v7754_v33 = vpack.c.bf16 %v4297_v17, %v4281_v19 }
 0x34d   :  { %v3886_v8 = vpop.f32.mrf.mxu0 }
 0x34e   :  { %6912 = vmatpush3.bf16.msra.mxu1 %v7202_v21  ;;  %v3885_v21 = vadd.f32 %v3884_v16, %v975_v63  ;;  %v3881_v43 = vadd.f32 %v3880_v55, %v975_v63 }
 0x34f   :  { %6913 = vmatprep.subr.bf16.mxu1 %v7205_v44  ;;  %v978_v44 = vsub.s32 7, %v7629_v47 }
 0x350   :  { %4980 = vmatmul.mubr.bf16.gmra.mxu0 %v7707_v54  ;;  %5109 = vmatmul.mubr.bf16.gmra.mxu1 %v7541_v0  ;;  %v3928_v22 = vadd.f32 %v3927_v18, %v3885_v21  ;;  %v3924_v10 = vadd.f32 %v3923_v59, %v3881_v43  ;;  %v987_v59 = vrot.slane %v7766_v36, %v7632_v48 }
 0x351   :  { %4987 = vmatprep.mubr.bf16.mxu0 %v7724_v25  ;;  %5116 = vmatprep.mubr.bf16.mxu1 %v7715_v13  ;;  %v979_v24 = vrot.slane %v7697_v20, %v978_v44  ;;  %v7223_v20 = vld [vmem:[#allocation11 + $0x180] sm:$0xff]   ;;  %v991_v18 = vrot.slane %v7766_v36, %v7653_v26  ;;  %v995_v26 = vrot.slane %v7766_v36, %v7650_v23 }
 0x352   :  { %6914 = vmatpush3.bf16.msra.mxu1 %v7206_v4  ;;  %v3966_v4 = vpop.f32.mrf.mxu0  ;;  %v4298_v27 = vmax.f32 %v3928_v22, 0.0  ;;  %v4282_v30 = vmax.f32 %v3924_v10, 0.0 }
 0x353   :  { %6915 = vmatprep.subr.bf16.mxu1 %v7211_v5  ;;  %v4009_v5 = vpop.f32.mrf.mxu1  ;;  %v3887_v29 = vadd.f32 %v3886_v8, %v979_v24  ;;  %v3883_v61 = vadd.f32 %v3882_v1, %v979_v24  ;;  %v3967_v55 = vadd.f32 %v3966_v4, %v983_v45 }
 0x354   :  { %v7764_v34 = vpack.c.bf16 %v4298_v27, %v4282_v30 }
 0x355   :  { %v4011_v37 = vpop.f32.mrf.mxu1  ;;  %v3926_v38 = vadd.f32 %v3925_v14, %v3883_v61  ;;  %v4010_v57 = vadd.f32 %v4009_v5, %v3967_v55 }
 0x356   :  { %6916 = vmatpush3.bf16.msra.mxu1 %v7212_v32  ;;  %v3968_v32 = vpop.f32.mrf.mxu0 }
 0x357   :  { %6917 = vmatprep.subr.bf16.mxu1 %v7213_v35  ;;  %v3930_v35 = vadd.f32 %v3929_v12, %v3887_v29  ;;  %v4283_v51 = vmax.f32 %v3926_v38, 0.0  ;;  %v3969_v9 = vadd.f32 %v3968_v32, %v987_v59 }
 0x358   :  { %4988 = vmatmul.mubr.bf16.gmra.mxu0 %v7715_v13  ;;  %5117 = vmatmul.mubr.bf16.gmra.mxu1 %v7541_v0 }
 0x359   :  { %4995 = vmatprep.mubr.bf16.mxu0 %v7734_v40  ;;  %5124 = vmatprep.mubr.bf16.mxu1 %v7724_v25  ;;  %v4299_v41 = vmax.f32 %v3930_v35, 0.0  ;;  %v4012_v17 = vadd.f32 %v4011_v37, %v3969_v9 }
 0x35a   :  { %6918 = vmatpush3.bf16.msra.mxu1 %v7214_v39  ;;  %v3970_v39 = vpop.f32.mrf.mxu0 }
 0x35b   :  { %6919 = vmatprep.subr.bf16.mxu1 %v7216_v46  ;;  %v4013_v46 = vpop.f32.mrf.mxu1  ;;  %v3971_v52 = vadd.f32 %v3970_v39, %v983_v45  ;;  %v7774_v53 = vpack.c.bf16 %v4299_v41, %v4283_v51  ;;  %v4285_v21 = vmax.f32 %v4012_v17, 0.0  ;;  %v999_v39 = vrot.slane %v7766_v36, %v966_v28  ;;  %v7218_v45 = vld [vmem:[#allocation11 + $0x230] sm:$0xff]   ;;  %v7221_v28 = vld [vmem:[#allocation11 + $0x228] sm:$0xff]  }
 0x35c   :  { %v3972_v56 = vpop.f32.mrf.mxu0 }
 0x35d   :  { %v3973_v1 = vadd.f32 %v3972_v56, %v987_v59 }
 0x35e   :  { %6920 = vmatpush3.bf16.msra.mxu1 %v7217_v49  ;;  %v4014_v49 = vadd.f32 %v4013_v46, %v3971_v52  ;;  %v4052_v50 = vpop.f32.mrf.mxu0  ;;  %v1003_v46 = vrot.slane %v7766_v36, %v970_v42 }
 0x35f   :  { %6921 = vmatprep.subr.bf16.mxu1 %v7219_v58  ;;  %v4015_v58 = vpop.f32.mrf.mxu1  ;;  %v4053_v8 = vadd.f32 %v4052_v50, %v991_v18 }
 0x360   :  { %4996 = vmatmul.mubr.bf16.gmra.mxu0 %v7724_v25  ;;  %5125 = vmatmul.mubr.bf16.gmra.mxu1 %v7541_v0  ;;  %v4300_v60 = vmax.f32 %v4014_v49, 0.0  ;;  %v4054_v6 = vpop.f32.mrf.mxu0  ;;  %v4016_v15 = vadd.f32 %v4015_v58, %v3973_v1 }
 0x361   :  { %5003 = vmatprep.mubr.bf16.mxu0 %v7744_v7  ;;  %5132 = vmatprep.mubr.bf16.mxu1 %v7541_v0  ;;  %v4055_v30 = vadd.f32 %v4054_v6, %v995_v26 }
 0x362   :  { %6922 = vmatpush3.bf16.msra.mxu1 %v7220_v2  ;;  %v4284_v2 = vmax.f32 %v4010_v57, 0.0  ;;  %v4056_v48 = vpop.f32.mrf.mxu0  ;;  %v4301_v63 = vmax.f32 %v4016_v15, 0.0 }
 0x363   :  { %6923 = vmatprep.subr.bf16.mxu1 %v7222_v31  ;;  %v4057_v43 = vadd.f32 %v4056_v48, %v991_v18  ;;  %v7227_v48 = vld [vmem:[#allocation11 + $0x208] sm:$0xff]  }
 0x364   :  { %v7782_v14 = vpack.c.bf16 %v4300_v60, %v4284_v2  ;;  %v7790_v22 = vpack.c.bf16 %v4301_v63, %v4285_v21  ;;  %v4058_v4 = vpop.f32.mrf.mxu0  ;;  %v7228_v63 = vld [vmem:[#allocation11 + $0x200] sm:$0xff]  }
 0x365   :  { %v4059_v5 = vadd.f32 %v4058_v4, %v995_v26 }
 0x366   :  { %6924 = vmatpush3.bf16.msra.mxu1 %v7223_v20 }
 0x368   :  { %5004 = vmatmul.mubr.bf16.gmra.mxu0 %v7541_v0  ;;  %5133 = vmatmul.mubr.bf16.gmra.mxu1 %v7715_v13  ;;  %v4095_v62 = vpop.f32.mrf.mxu1 }
 0x369   :  { %5011 = vmatprep.mubr.bf16.mxu0 %v7754_v33  ;;  %5140 = vmatprep.mubr.bf16.mxu1 %v7744_v7  ;;  %v4096_v12 = vadd.f32 %v4095_v62, %v4053_v8 }
 0x36a   :  { %v4097_v16 = vpop.f32.mrf.mxu1 }
 0x36b   :  { %v4286_v29 = vmax.f32 %v4096_v12, 0.0  ;;  %v4098_v61 = vadd.f32 %v4097_v16, %v4055_v30  ;;  %v7225_v16 = vld [vmem:[#allocation11 + $0x218] sm:$0xff]  }
 0x36c   :  { %v4099_v19 = vpop.f32.mrf.mxu1 }
 0x36d   :  { %v4100_v10 = vadd.f32 %v4099_v19, %v4057_v43  ;;  %v4287_v37 = vmax.f32 %v4098_v61, 0.0  ;;  %v1007_v19 = vrot.slane %v7766_v36, %v974_v11 }
 0x36e   :  { %v4101_v27 = vpop.f32.mrf.mxu1 }
 0x36f   :  { %v4302_v24 = vmax.f32 %v4100_v10, 0.0  ;;  %v4102_v32 = vadd.f32 %v4101_v27, %v4059_v5 }
 0x370   :  { %5012 = vmatmul.mubr.bf16.gmra.mxu0 %v7744_v7  ;;  %5141 = vmatmul.mubr.bf16.gmra.mxu1 %v7724_v25 }
 0x371   :  { %5019 = vmatprep.mubr.bf16.mxu0 %v7764_v34  ;;  %5148 = vmatprep.mubr.bf16.mxu1 %v7754_v33  ;;  %v7798_v31 = vpack.c.bf16 %v4302_v24, %v4286_v29  ;;  %v4303_v35 = vmax.f32 %v4102_v32, 0.0 }
 0x373   :  { %v7804_v23 = vpack.c.bf16 %v4303_v35, %v4287_v37 }
 0x378   :  { %5020 = vmatmul.mubr.bf16.gmra.mxu0 %v7754_v33  ;;  %5149 = vmatmul.mubr.bf16.gmra.mxu1 %v7734_v40 }
 0x379   :  { %5027 = vmatprep.mubr.bf16.mxu0 %v7774_v53  ;;  %5156 = vmatprep.mubr.bf16.mxu1 %v7764_v34 }
 0x380   :  { %5028 = vmatmul.mubr.bf16.gmra.mxu0 %v7764_v34  ;;  %5157 = vmatmul.mubr.bf16.gmra.mxu1 %v7541_v0 }
 0x381   :  { %5035 = vmatprep.mubr.bf16.mxu0 %v7782_v14  ;;  %5164 = vmatprep.mubr.bf16.mxu1 %v7541_v0 }
 0x388   :  { %5036 = vmatmul.mubr.bf16.gmra.mxu0 %v7541_v0  ;;  %5165 = vmatmul.mubr.bf16.gmra.mxu1 %v7754_v33  ;;  %v4138_v38 = vpop.f32.mrf.mxu0 }
 0x389   :  { %5043 = vmatprep.mubr.bf16.mxu0 %v7790_v22  ;;  %5172 = vmatprep.mubr.bf16.mxu1 %v7782_v14  ;;  %v4139_v52 = vadd.f32 %v4138_v38, %v999_v39 }
 0x38a   :  { %v4140_v20 = vpop.f32.mrf.mxu0 }
 0x38b   :  { %v4141_v56 = vadd.f32 %v4140_v20, %v1003_v46 }
 0x38c   :  { %v4142_v41 = vpop.f32.mrf.mxu0 }
 0x38d   :  { %v4143_v57 = vadd.f32 %v4142_v41, %v999_v39 }
 0x38e   :  { %v4144_v55 = vpop.f32.mrf.mxu0 }
 0x38f   :  { %v4145_v59 = vadd.f32 %v4144_v55, %v1003_v46 }
 0x390   :  { %5044 = vmatmul.mubr.bf16.gmra.mxu0 %v7782_v14  ;;  %5173 = vmatmul.mubr.bf16.gmra.mxu1 %v7764_v34 }
 0x391   :  { %5051 = vmatprep.mubr.bf16.mxu0 %v7798_v31  ;;  %5180 = vmatprep.mubr.bf16.mxu1 %v7790_v22 }
 0x398   :  { %5052 = vmatmul.mubr.bf16.gmra.mxu0 %v7790_v22  ;;  %5181 = vmatmul.mubr.bf16.gmra.mxu1 %v7774_v53 }
 0x399   :  { %5059 = vmatprep.mubr.bf16.mxu0 %v7804_v23  ;;  %5188 = vmatprep.mubr.bf16.mxu1 %v7798_v31 }
 0x3a0   :  { %5060 = vmatmul.mubr.bf16.gmra.mxu0 %v7798_v31  ;;  %5189 = vmatmul.mubr.bf16.gmra.mxu1 %v7541_v0 }
 0x3a1   :  { %5261 = vmatprep.mubr.bf16.mxu0 %v7715_v13  ;;  %5196 = vmatprep.mubr.bf16.mxu1 %v7541_v0 }
 0x3a8   :  { %v4181_v51 = vpop.f32.mrf.mxu1  ;;  %5197 = vmatmul.mubr.bf16.gmra.mxu1 %v7790_v22  ;;  %5262 = vmatmul.mubr.bf16.vlgmr.msra.gmra.mxu0 %v7707_v54  ;;  %v7224_v54 = vld [vmem:[#allocation11 + $0x220] sm:$0xff]  }
 0x3a9   :  { %5269 = vmatprep.mubr.bf16.mxu0 %v7724_v25  ;;  %7046 = vmatpush3.bf16.msra.mxu0 %v7713_v3  ;;  %v4182_v58 = vadd.f32 %v4181_v51, %v4139_v52 }
 0x3aa   :  { %v4183_v49 = vpop.f32.mrf.mxu1  ;;  %7047 = vmatprep.subr.bf16.mxu0 %v7218_v45 }
 0x3ab   :  { %v4184_v42 = vadd.f32 %v4183_v49, %v4141_v56  ;;  %v4288_v1 = vmax.f32 %v4182_v58, 0.0 }
 0x3ac   :  { %v4185_v50 = vpop.f32.mrf.mxu1 }
 0x3ad   :  { %v4186_v60 = vadd.f32 %v4185_v50, %v4143_v57  ;;  %7048 = vmatpush3.bf16.msra.mxu0 %v7218_v45  ;;  %v4289_v3 = vmax.f32 %v4184_v42, 0.0  ;;  %v1011_v50 = vrot.slane %v7766_v36, %v978_v44 }
 0x3ae   :  { %v4187_v62 = vpop.f32.mrf.mxu1  ;;  %7049 = vmatprep.subr.bf16.mxu0 %v7221_v28 }
 0x3af   :  { %v4304_v2 = vmax.f32 %v4186_v60, 0.0  ;;  %v4188_v6 = vadd.f32 %v4187_v62, %v4145_v59 }
 0x3b0   :  { %5270 = vmatmul.mubr.bf16.gmra.mxu0 %v7715_v13  ;;  %v7226_v13 = vld [vmem:[#allocation11 + $0x210] sm:$0xff]  }
 0x3b1   :  { %v7825_v9 = vpack.c.bf16 %v4304_v2, %v4288_v1  ;;  %v4305_v15 = vmax.f32 %v4188_v6, 0.0  ;;  %5277 = vmatprep.mubr.bf16.mxu0 %v7734_v40  ;;  %7050 = vmatpush3.bf16.msra.mxu0 %v7221_v28 }
 0x3b2   :  { %7051 = vmatprep.subr.bf16.mxu0 %v7224_v54 }
 0x3b3   :  { %v7828_v17 = vpack.c.bf16 %v4305_v15, %v4289_v3  ;;  %5204 = vmatprep.mubr.bf16.mxu1 %v7825_v9  ;;  %v7881_v3 = vld [vmem:[#allocation13] ss:$0 sm:$0xff] }
 0x3b4   :  { %5205 = vmatmul.mubr.bf16.gmra.mxu1 %v7798_v31 }
 0x3b5   :  { %5212 = vmatprep.mubr.bf16.mxu1 %v7828_v17  ;;  %7052 = vmatpush3.bf16.msra.mxu0 %v7224_v54 }
 0x3b6   :  { %7053 = vmatprep.subr.bf16.mxu0 %v7225_v16 }
 0x3b8   :  { %5278 = vmatmul.mubr.bf16.gmra.mxu0 %v7724_v25 }
 0x3b9   :  { %5285 = vmatprep.mubr.bf16.mxu0 %v7541_v0  ;;  %7054 = vmatpush3.bf16.msra.mxu0 %v7225_v16 }
 0x3ba   :  { %7055 = vmatprep.subr.bf16.mxu0 %v7226_v13 }
 0x3bc   :  { %5213 = vmatmul.mubr.bf16.gmra.mxu1 %v7804_v23 }
 0x3bd   :  { %7056 = vmatpush3.bf16.msra.mxu0 %v7226_v13 }
 0x3be   :  { %7057 = vmatprep.subr.bf16.mxu0 %v7227_v48 }
 0x3c0   :  { %5286 = vmatmul.mubr.bf16.gmra.mxu0 %v7734_v40 }
 0x3c1   :  { %5293 = vmatprep.mubr.bf16.mxu0 %v7754_v33  ;;  %7058 = vmatpush3.bf16.msra.mxu0 %v7227_v48 }
 0x3c2   :  { %7059 = vmatprep.subr.bf16.mxu0 %v7228_v63 }
 0x3c5   :  { %7060 = vmatpush3.bf16.msra.mxu0 %v7228_v63 }
 0x3c8   :  { %5294 = vmatmul.mubr.bf16.gmra.mxu0 %v7744_v7  ;;  %v4224_v25 = vpop.f32.mrf.mxu0 }
 0x3c9   :  { %5301 = vmatprep.mubr.bf16.mxu0 %v7764_v34  ;;  %v4225_v10 = vadd.f32 %v4224_v25, %v1007_v19 }
 0x3ca   :  { %v4226_v18 = vpop.f32.mrf.mxu0 }
 0x3cb   :  { %v4227_v1 = vadd.f32 %v4226_v18, %v1011_v50 }
 0x3cc   :  { %v4228_v40 = vpop.f32.mrf.mxu0 }
 0x3cd   :  { %v4229_v26 = vadd.f32 %v4228_v40, %v1007_v19 }
 0x3ce   :  { %v4230_v21 = vpop.f32.mrf.mxu0 }
 0x3cf   :  { %v4231_v62 = vadd.f32 %v4230_v21, %v1011_v50 }
 0x3d0   :  { %5302 = vmatmul.mubr.bf16.gmra.mxu0 %v7754_v33 }
 0x3d1   :  { %5309 = vmatprep.mubr.bf16.mxu0 %v7774_v53 }
 0x3d8   :  { %5310 = vmatmul.mubr.bf16.gmra.mxu0 %v7764_v34 }
 0x3d9   :  { %5317 = vmatprep.mubr.bf16.mxu0 %v7541_v0 }
 0x3e0   :  { %5318 = vmatmul.mubr.bf16.gmra.mxu0 %v7774_v53 }
 0x3e1   :  { %5325 = vmatprep.mubr.bf16.mxu0 %v7790_v22 }
 0x3e8   :  { %v4267_v43 = vpop.f32.mrf.mxu1  ;;  %v6589_v8 = vpop.f32.mrf.mxu0  ;;  %5326 = vmatmul.mubr.bf16.gmra.mxu0 %v7782_v14 }
 0x3e9   :  { %5333 = vmatprep.mubr.bf16.mxu0 %v7798_v31  ;;  %v4268_v24 = vadd.f32 %v4267_v43, %v4225_v10 }
 0x3ea   :  { %v4269_v12 = vpop.f32.mrf.mxu1  ;;  %v6590_v4 = vpop.f32.mrf.mxu0 }
 0x3eb   :  { %v6591_v27 = vadd.f32 %v6590_v4, %v6589_v8  ;;  %v4290_v61 = vmax.f32 %v4268_v24, 0.0  ;;  %v4270_v44 = vadd.f32 %v4269_v12, %v4227_v1 }
 0x3ec   :  { %v4271_v5 = vpop.f32.mrf.mxu1  ;;  %v6592_v29 = vpop.f32.mrf.mxu0 }
 0x3ed   :  { %v4272_v30 = vadd.f32 %v4271_v5, %v4229_v26  ;;  %v4291_v40 = vmax.f32 %v4270_v44, 0.0 }
 0x3ee   :  { %v6593_v32 = vpop.f32.mrf.mxu0  ;;  %v4273_v42 = vpop.f32.mrf.mxu1 }
 0x3ef   :  { %v4306_v35 = vmax.f32 %v4272_v30, 0.0  ;;  %v6594_v11 = vadd.f32 %v6593_v32, %v6592_v29  ;;  %v4274_v2 = vadd.f32 %v4273_v42, %v4231_v62 }
 0x3f0   :  { %v6595_v37 = vpop.f32.mrf.mxu0  ;;  %5334 = vmatmul.mubr.bf16.gmra.mxu0 %v7790_v22 }
 0x3f1   :  { %v7852_v38 = vpack.c.bf16 %v4306_v35, %v4290_v61  ;;  %5341 = vmatprep.mubr.bf16.mxu0 %v7804_v23  ;;  %v4307_v13 = vmax.f32 %v4274_v2, 0.0  ;;  %v4945_v10 = vadd.f32 %v6594_v11, %v7881_v3 }
 0x3f2   :  { %v6596_v20 = vpop.f32.mrf.mxu0 }
 0x3f3   :  { %v7855_v39 = vadd.f32 %v6596_v20, %v6595_v37  ;;  %5220 = vmatprep.mubr.bf16.mxu1 %v7852_v38  ;;  %v7892_v8 = vpack.c.bf16 %v4307_v13, %v4291_v40 }
 0x3f4   :  { %v6598_v41 = vpop.f32.mrf.mxu0  ;;  %5221 = vmatmul.mubr.bf16.gmra.mxu1 %v7541_v0 }
 0x3f5   :  { %5422 = vmatprep.mubr.bf16.mxu1 %v7744_v7  ;;  %v4950_v30 = vadd.f32 %v7855_v39, %v7881_v3 }
 0x3f6   :  { %v6599_v45 = vpop.f32.mrf.mxu0 }
 0x3f7   :  { %v7860_v46 = vadd.f32 %v6599_v45, %v6598_v41 }
 0x3f8   :  { %v6601_v51 = vpop.f32.mrf.mxu0  ;;  %5342 = vmatmul.mubr.bf16.gmra.mxu0 %v7798_v31 }
 0x3f9   :  { %5349 = vmatprep.mubr.bf16.mxu0 %v7541_v0  ;;  %v4953_v45 = vadd.f32 %v7860_v46, %v7881_v3 }
 0x3fa   :  { %v6602_v52 = vpop.f32.mrf.mxu0 }
 0x3fb   :  { %v7864_v55 = vadd.f32 %v6602_v52, %v6601_v51 }
 0x3fc   :  { %v6604_v49 = vpop.f32.mrf.mxu0  ;;  %5423 = vmatmul.mubr.bf16.vlgmr.msra.gmra.mxu1 %v7541_v0 }
 0x3fd   :  { %5430 = vmatprep.mubr.bf16.mxu1 %v7754_v33  ;;  %v4958_v50 = vadd.f32 %v7864_v55, %v7881_v3 }
 0x3fe   :  { %v6605_v28 = vpop.f32.mrf.mxu0 }
 0x3ff   :  { %v7868_v56 = vadd.f32 %v6605_v28, %v6604_v49 }
 0x400   :  { %v6607_v57 = vpop.f32.mrf.mxu0  ;;  %5350 = vmatmul.mubr.bf16.gmra.mxu0 %v7804_v23 }
 0x401   :  { %5357 = vmatprep.mubr.bf16.mxu0 %v7828_v17 }
 0x402   :  { %v6608_v58 = vpop.f32.mrf.mxu0 }
 0x403   :  { %v7875_v59 = vadd.f32 %v6608_v58, %v6607_v57 }
 0x404   :  { %v6610_v60 = vpop.f32.mrf.mxu0  ;;  %5431 = vmatmul.mubr.bf16.gmra.mxu1 %v7744_v7  ;;  %v4942_v7 = vadd.f32 %v6591_v27, %v7881_v3 }
 0x405   :  { %5438 = vmatprep.mubr.bf16.mxu1 %v7764_v34 }
 0x406   :  { %v6611_v54 = vpop.f32.mrf.mxu0 }
 0x407   :  { %v7879_v6 = vadd.f32 %v6611_v54, %v6610_v60 }
 0x408   :  { %v6613_v15 = vpop.f32.mrf.mxu0  ;;  %v6701_v47 = vpop.f32.mrf.mxu1  ;;  %5358 = vmatmul.mubr.bf16.gmra.mxu0 %v7825_v9 }
 0x409   :  { %5365 = vmatprep.mubr.bf16.mxu0 %v7852_v38 }
 0x40a   :  { %v6614_v36 = vpop.f32.mrf.mxu0  ;;  %v6702_v16 = vpop.f32.mrf.mxu1 }
 0x40b   :  { %v7886_v48 = vadd.f32 %v6614_v36, %v6613_v15  ;;  %v6703_v63 = vadd.f32 %v6702_v16, %v6701_v47  ;;  %v4961_v15 = vadd.f32 %v7868_v56, %v7881_v3 }
 0x40c   :  { %v6616_v25 = vpop.f32.mrf.mxu0  ;;  %v6704_v18 = vpop.f32.mrf.mxu1  ;;  %5439 = vmatmul.mubr.bf16.gmra.mxu1 %v7754_v33 }
 0x40d   :  { %v7889_v19 = vadd.f32 %v6703_v63, %v4942_v7  ;;  %5446 = vmatprep.mubr.bf16.mxu1 %v7774_v53  ;;  %v4966_v63 = vadd.f32 %v7875_v59, %v7881_v3 }
 0x40e   :  { %v6617_v21 = vpop.f32.mrf.mxu0  ;;  %v6705_v43 = vpop.f32.mrf.mxu1 }
 0x40f   :  { %v7895_v12 = vadd.f32 %v6617_v21, %v6616_v25  ;;  %v6706_v4 = vadd.f32 %v6705_v43, %v6704_v18 }
 0x410   :  { %v6619_v26 = vpop.f32.mrf.mxu0  ;;  %v6707_v24 = vpop.f32.mrf.mxu1  ;;  %5366 = vmatmul.mubr.bf16.gmra.mxu0 %v7828_v17 }
 0x411   :  { %v7898_v27 = vadd.f32 %v6706_v4, %v4945_v10  ;;  %5373 = vmatprep.mubr.bf16.mxu0 %v7892_v8 }
 0x412   :  { %v6620_v5 = vpop.f32.mrf.mxu0  ;;  %v6708_v29 = vpop.f32.mrf.mxu1 }
 0x413   :  { %v7903_v32 = vadd.f32 %v6620_v5, %v6619_v26  ;;  %v6709_v61 = vadd.f32 %v6708_v29, %v6707_v24 }
 0x414   :  { %v6622_v35 = vpop.f32.mrf.mxu0  ;;  %v6710_v11 = vpop.f32.mrf.mxu1  ;;  %5447 = vmatmul.mubr.bf16.gmra.mxu1 %v7764_v34 }
 0x415   :  { %v7906_v37 = vadd.f32 %v6709_v61, %v4950_v30  ;;  %5454 = vmatprep.mubr.bf16.mxu1 %v7782_v14  ;;  %v4974_v30 = vadd.f32 %v7886_v48, %v7881_v3 }
 0x416   :  { %v6623_v20 = vpop.f32.mrf.mxu0  ;;  %v6711_v41 = vpop.f32.mrf.mxu1 }
 0x417   :  { %v7911_v51 = vadd.f32 %v6623_v20, %v6622_v35  ;;  %v6712_v52 = vadd.f32 %v6711_v41, %v6710_v11 }
 0x418   :  { %v6625_v39 = vpop.f32.mrf.mxu0  ;;  %v6713_v49 = vpop.f32.mrf.mxu1  ;;  %5374 = vmatmul.mubr.bf16.gmra.mxu0 %v7852_v38 }
 0x419   :  { %v7914_v28 = vadd.f32 %v6712_v52, %v4953_v45  ;;  %5381 = vmatprep.mubr.bf16.mxu0 %v7541_v0 }
 0x41a   :  { %v6626_v57 = vpop.f32.mrf.mxu0  ;;  %v6714_v58 = vpop.f32.mrf.mxu1 }
 0x41b   :  { %v7919_v42 = vadd.f32 %v6626_v57, %v6625_v39  ;;  %v6715_v60 = vadd.f32 %v6714_v58, %v6713_v49 }
 0x41c   :  { %v6628_v46 = vpop.f32.mrf.mxu0  ;;  %v6716_v62 = vpop.f32.mrf.mxu1  ;;  %5455 = vmatmul.mubr.bf16.gmra.mxu1 %v7541_v0 }
 0x41d   :  { %v7922_v54 = vadd.f32 %v6715_v60, %v4958_v50  ;;  %5462 = vmatprep.mubr.bf16.mxu1 %v7790_v22  ;;  %v4982_v50 = vadd.f32 %v7903_v32, %v7881_v3 }
 0x41e   :  { %v6629_v1 = vpop.f32.mrf.mxu0  ;;  %v6717_v2 = vpop.f32.mrf.mxu1 }
 0x41f   :  { %v7927_v47 = vadd.f32 %v6629_v1, %v6628_v46  ;;  %v6718_v44 = vadd.f32 %v6717_v2, %v6716_v62 }
 0x420   :  { %v6631_v55 = vpop.f32.mrf.mxu0  ;;  %v6719_v36 = vpop.f32.mrf.mxu1  ;;  %5382 = vmatmul.mubr.bf16.gmra.mxu0 %v7892_v8 }
 0x421   :  { %v7930_v16 = vadd.f32 %v6718_v44, %v4961_v15  ;;  %7061 = vmatprep.mubr.bf16.mxu0 %v7754_v33  ;;  %v4969_v33 = vadd.f32 %v7879_v6, %v7881_v3 }
 0x422   :  { %v6632_v7 = vpop.f32.mrf.mxu0  ;;  %v6720_v13 = vpop.f32.mrf.mxu1 }
 0x423   :  { %v7935_v25 = vadd.f32 %v6632_v7, %v6631_v55  ;;  %v6721_v18 = vadd.f32 %v6720_v13, %v6719_v36 }
 0x424   :  { %v6634_v56 = vpop.f32.mrf.mxu0  ;;  %v6722_v40 = vpop.f32.mrf.mxu1  ;;  %5463 = vmatmul.mubr.bf16.gmra.mxu1 %v7782_v14 }
 0x425   :  { %v7938_v21 = vadd.f32 %v6721_v18, %v4966_v63  ;;  %5470 = vmatprep.mubr.bf16.mxu1 %v7798_v31  ;;  %v4990_v18 = vadd.f32 %v7919_v42, %v7881_v3 }
 0x426   :  { %v6635_v43 = vpop.f32.mrf.mxu0  ;;  %v6723_v10 = vpop.f32.mrf.mxu1 }
 0x427   :  { %v7943_v4 = vadd.f32 %v6635_v43, %v6634_v56  ;;  %v6724_v26 = vadd.f32 %v6723_v10, %v6722_v40 }
 0x428   :  { %v6637_v59 = vpop.f32.mrf.mxu0  ;;  %v6725_v24 = vpop.f32.mrf.mxu1  ;;  %7062 = vmatmul.mubr.bf16.vlgmr.msra.gmra.mxu0 %v7764_v34 }
 0x429   :  { %v7946_v5 = vadd.f32 %v6724_v26, %v4969_v33  ;;  %7065 = vmatprep.mubr.bf16.mxu0 %v7774_v53  ;;  %v4977_v53 = vadd.f32 %v7895_v12, %v7881_v3 }
 0x42a   :  { %v6638_v14 = vpop.f32.mrf.mxu0  ;;  %v6726_v29 = vpop.f32.mrf.mxu1 }
 0x42b   :  { %v7951_v61 = vadd.f32 %v6638_v14, %v6637_v59  ;;  %v6727_v35 = vadd.f32 %v6726_v29, %v6725_v24 }
 0x42c   :  { %v6640_v6 = vpop.f32.mrf.mxu0  ;;  %v6728_v11 = vpop.f32.mrf.mxu1  ;;  %5471 = vmatmul.mubr.bf16.gmra.mxu1 %v7790_v22 }
 0x42d   :  { %v7954_v20 = vadd.f32 %v6727_v35, %v4974_v30  ;;  %5478 = vmatprep.mubr.bf16.mxu1 %v7804_v23  ;;  %v4998_v35 = vadd.f32 %v7935_v25, %v7881_v3 }
 0x42e   :  { %v6641_v34 = vpop.f32.mrf.mxu0  ;;  %v6729_v41 = vpop.f32.mrf.mxu1 }
 0x42f   :  { %v7959_v45 = vadd.f32 %v6641_v34, %v6640_v6  ;;  %v6730_v52 = vadd.f32 %v6729_v41, %v6728_v11 }
 0x430   :  { %v6643_v48 = vpop.f32.mrf.mxu0  ;;  %v6731_v39 = vpop.f32.mrf.mxu1  ;;  %7066 = vmatmul.mubr.bf16.gmra.mxu0 %v7541_v0 }
 0x431   :  { %v7962_v49 = vadd.f32 %v6730_v52, %v4977_v53  ;;  %7069 = vmatprep.mubr.bf16.mxu0 %v7790_v22  ;;  %v4985_v22 = vadd.f32 %v7911_v51, %v7881_v3 }
 0x432   :  { %v6644_v57 = vpop.f32.mrf.mxu0  ;;  %v6732_v58 = vpop.f32.mrf.mxu1 }
 0x433   :  { %v7967_v60 = vadd.f32 %v6644_v57, %v6643_v48  ;;  %v6733_v46 = vadd.f32 %v6732_v58, %v6731_v39  ;;  %v5001_v48 = vadd.f32 %v7943_v4, %v7881_v3 }
 0x434   :  { %v6646_v12 = vpop.f32.mrf.mxu0  ;;  %v6734_v62 = vpop.f32.mrf.mxu1  ;;  %5479 = vmatmul.mubr.bf16.gmra.mxu1 %v7798_v31 }
 0x435   :  { %v7970_v1 = vadd.f32 %v6733_v46, %v4982_v50  ;;  %5486 = vmatprep.mubr.bf16.mxu1 %v7825_v9 }
 0x436   :  { %v6647_v2 = vpop.f32.mrf.mxu0  ;;  %v6735_v15 = vpop.f32.mrf.mxu1 }
 0x437   :  { %v7975_v44 = vadd.f32 %v6647_v2, %v6646_v12  ;;  %v6736_v55 = vadd.f32 %v6735_v15, %v6734_v62  ;;  %v5006_v12 = vadd.f32 %v7951_v61, %v7881_v3 }
 0x438   :  { %v6649_v32 = vpop.f32.mrf.mxu0  ;;  %v6737_v36 = vpop.f32.mrf.mxu1  ;;  %7070 = vmatmul.mubr.bf16.gmra.mxu0 %v7798_v31 }
 0x439   :  { %v7978_v7 = vadd.f32 %v6736_v55, %v4985_v22  ;;  %7073 = vmatprep.mubr.bf16.mxu0 %v7804_v23  ;;  %v4993_v23 = vadd.f32 %v7927_v47, %v7881_v3 }
 0x43a   :  { %v6650_v13 = vpop.f32.mrf.mxu0  ;;  %v6738_v63 = vpop.f32.mrf.mxu1 }
 0x43b   :  { %v7983_v56 = vadd.f32 %v6650_v13, %v6649_v32  ;;  %v6739_v40 = vadd.f32 %v6738_v63, %v6737_v36  ;;  %v5009_v36 = vadd.f32 %v7959_v45, %v7881_v3 }
 0x43c   :  { %v6652_v51 = vpop.f32.mrf.mxu0  ;;  %v6740_v43 = vpop.f32.mrf.mxu1  ;;  %5487 = vmatmul.mubr.bf16.gmra.mxu1 %v7541_v0 }
 0x43d   :  { %v7986_v10 = vadd.f32 %v6739_v40, %v4990_v18  ;;  %5494 = vmatprep.mubr.bf16.mxu1 %v7828_v17 }
 0x43e   :  { %v6653_v31 = vpop.f32.mrf.mxu0  ;;  %v6741_v33 = vpop.f32.mrf.mxu1 }
 0x43f   :  { %v7991_v26 = vadd.f32 %v6653_v31, %v6652_v51  ;;  %v6742_v59 = vadd.f32 %v6741_v33, %v6740_v43 }
 0x440   :  { %v6655_v42 = vpop.f32.mrf.mxu0  ;;  %v6743_v24 = vpop.f32.mrf.mxu1  ;;  %7074 = vmatmul.mubr.bf16.gmra.mxu0 %v7541_v0 }
 0x441   :  { %v7994_v14 = vadd.f32 %v6742_v59, %v4993_v23  ;;  %7077 = vmatprep.mubr.bf16.mxu0 %v7828_v17 }
 0x442   :  { %v6656_v29 = vpop.f32.mrf.mxu0  ;;  %v6744_v30 = vpop.f32.mrf.mxu1 }
 0x443   :  { %v7999_v6 = vadd.f32 %v6656_v29, %v6655_v42  ;;  %v6745_v11 = vadd.f32 %v6744_v30, %v6743_v24  ;;  %v5017_v24 = vadd.f32 %v7975_v44, %v7881_v3 }
 0x444   :  { %v6658_v47 = vpop.f32.mrf.mxu0  ;;  %v6746_v34 = vpop.f32.mrf.mxu1  ;;  %5495 = vmatmul.mubr.bf16.gmra.mxu1 %v7825_v9 }
 0x445   :  { %v8002_v41 = vadd.f32 %v6745_v11, %v4998_v35  ;;  %5502 = vmatprep.mubr.bf16.mxu1 %v7852_v38 }
 0x446   :  { %v6659_v53 = vpop.f32.mrf.mxu0  ;;  %v6747_v52 = vpop.f32.mrf.mxu1 }
 0x447   :  { %v8007_v39 = vadd.f32 %v6659_v53, %v6658_v47  ;;  %v6748_v57 = vadd.f32 %v6747_v52, %v6746_v34  ;;  %v5022_v34 = vadd.f32 %v7983_v56, %v7881_v3 }
 0x448   :  { %v6661_v25 = vpop.f32.mrf.mxu0  ;;  %v6749_v58 = vpop.f32.mrf.mxu1  ;;  %7078 = vmatmul.mubr.bf16.gmra.mxu0 %v7852_v38 }
 0x449   :  { %v8010_v50 = vadd.f32 %v6748_v57, %v5001_v48  ;;  %7081 = vmatprep.mubr.bf16.mxu0 %v7892_v8 }
 0x44a   :  { %v6662_v9 = vpop.f32.mrf.mxu0  ;;  %v6750_v46 = vpop.f32.mrf.mxu1 }
 0x44b   :  { %v8015_v62 = vadd.f32 %v6662_v9, %v6661_v25  ;;  %v6751_v2 = vadd.f32 %v6750_v46, %v6749_v58  ;;  %v5025_v9 = vadd.f32 %v7991_v26, %v7881_v3 }
 0x44c   :  { %v6664_v4 = vpop.f32.mrf.mxu0  ;;  %v6752_v15 = vpop.f32.mrf.mxu1  ;;  %5503 = vmatmul.mubr.bf16.gmra.mxu1 %v7828_v17 }
 0x44d   :  { %v8018_v22 = vadd.f32 %v6751_v2, %v5006_v12  ;;  %5510 = vmatprep.mubr.bf16.mxu1 %v7892_v8  ;;  %v5014_v8 = vadd.f32 %v7967_v60, %v7881_v3 }
 0x44e   :  { %v6665_v55 = vpop.f32.mrf.mxu0  ;;  %v6753_v32 = vpop.f32.mrf.mxu1 }
 0x44f   :  { %v8023_v13 = vadd.f32 %v6665_v55, %v6664_v4  ;;  %v6754_v63 = vadd.f32 %v6753_v32, %v6752_v15  ;;  %v5030_v32 = vadd.f32 %v7999_v6, %v7881_v3 }
 0x450   :  { %v6667_v61 = vpop.f32.mrf.mxu0  ;;  %v6755_v18 = vpop.f32.mrf.mxu1  ;;  %7082 = vmatmul.mubr.bf16.gmra.mxu0 %v7541_v0 }
 0x451   :  { %v8026_v40 = vadd.f32 %v6754_v63, %v5009_v36  ;;  %7085 = vmatprep.mubr.bf16.mxu0 %v7541_v0 }
 0x452   :  { %v6668_v17 = vpop.f32.mrf.mxu0  ;;  %v6756_v51 = vpop.f32.mrf.mxu1 }
 0x453   :  { %v8031_v43 = vadd.f32 %v6668_v17, %v6667_v61  ;;  %v6757_v31 = vadd.f32 %v6756_v51, %v6755_v18 }
 0x454   :  { %v6670_v45 = vpop.f32.mrf.mxu0  ;;  %v6758_v33 = vpop.f32.mrf.mxu1  ;;  %5511 = vmatmul.mubr.bf16.gmra.mxu1 %v7852_v38 }
 0x455   :  { %v8034_v23 = vadd.f32 %v6757_v31, %v5014_v8  ;;  %5518 = vmatprep.mubr.bf16.mxu1 %v7541_v0  ;;  %v5033_v8 = vadd.f32 %v8007_v39, %v7881_v3 }
 0x456   :  { %v6671_v59 = vpop.f32.mrf.mxu0  ;;  %v6759_v42 = vpop.f32.mrf.mxu1 }
 0x457   :  { %v8039_v29 = vadd.f32 %v6671_v59, %v6670_v45  ;;  %v6760_v30 = vadd.f32 %v6759_v42, %v6758_v33 }
 0x458   :  { %v6673_v60 = vpop.f32.mrf.mxu0  ;;  %v6761_v35 = vpop.f32.mrf.mxu1  ;;  %7086 = vmatmul.mubr.bf16.gmra.mxu0 %v7541_v0 }
 0x459   :  { %v8042_v11 = vadd.f32 %v6760_v30, %v5017_v24  ;;  %7089 = vmatprep.mubr.bf16.mxu0 %v7541_v0  ;;  %v5038_v30 = vadd.f32 %v8015_v62, %v7881_v3 }
 0x45a   :  { %v6674_v38 = vpop.f32.mrf.mxu0  ;;  %v6762_v47 = vpop.f32.mrf.mxu1 }
 0x45b   :  { %v8047_v53 = vadd.f32 %v6674_v38, %v6673_v60  ;;  %v6763_v52 = vadd.f32 %v6762_v47, %v6761_v35 }
 0x45c   :  { %v6676_v44 = vpop.f32.mrf.mxu0  ;;  %v6764_v48 = vpop.f32.mrf.mxu1  ;;  %5519 = vmatmul.mubr.bf16.gmra.mxu1 %v7541_v0 }
 0x45d   :  { %v8050_v57 = vadd.f32 %v6763_v52, %v5022_v34  ;;  %5526 = vmatprep.mubr.bf16.mxu1 %v7541_v0 }
 0x45e   :  { %v6677_v25 = vpop.f32.mrf.mxu0  ;;  %v6765_v58 = vpop.f32.mrf.mxu1 }
 0x45f   :  { %v8055_v46 = vadd.f32 %v6677_v25, %v6676_v44  ;;  %v6766_v12 = vadd.f32 %v6765_v58, %v6764_v48  ;;  %v5041_v48 = vadd.f32 %v8023_v13, %v7881_v3  ;;  %v5046_v13 = vadd.f32 %v8031_v43, %v7881_v3 }
 0x460   :  { %v6679_v56 = vpop.f32.mrf.mxu0  ;;  %v6767_v2 = vpop.f32.mrf.mxu1  ;;  %7090 = vmatmul.mubr.bf16.gmra.mxu0 %v7541_v0 }
 0x461   :  { %v8058_v4 = vadd.f32 %v6766_v12, %v5025_v9 }
 0x462   :  { %v6680_v15 = vpop.f32.mrf.mxu0  ;;  %v6768_v55 = vpop.f32.mrf.mxu1 }
 0x463   :  { %v8062_v36 = vadd.f32 %v6680_v15, %v6679_v56  ;;  %v6769_v63 = vadd.f32 %v6768_v55, %v6767_v2 }
 0x464   :  { %v6682_v61 = vpop.f32.mrf.mxu0  ;;  %v6770_v18 = vpop.f32.mrf.mxu1  ;;  %5527 = vmatmul.mubr.bf16.gmra.mxu1 %v7541_v0 }
 0x465   :  { %v8065_v26 = vadd.f32 %v6769_v63, %v5030_v32  ;;  %5534 = vmatprep.mubr.bf16.mxu1 %v7541_v0 }
 0x466   :  { %v6683_v17 = vpop.f32.mrf.mxu0  ;;  %v6771_v51 = vpop.f32.mrf.mxu1 }
 0x467   :  { %v8070_v31 = vadd.f32 %v6683_v17, %v6682_v61  ;;  %v6772_v45 = vadd.f32 %v6771_v51, %v6770_v18 }
 0x468   :  { %v6773_v6 = vpop.f32.mrf.mxu1  ;;  %v6813_v33 = vpop.f32.mrf.mxu0 }
 0x469   :  { %v8072_v59 = vadd.f32 %v6772_v45, %v5033_v8 }
 0x46a   :  { %v6774_v42 = vpop.f32.mrf.mxu1  ;;  %v6814_v24 = vpop.f32.mrf.mxu0 }
 0x46b   :  { %v6775_v60 = vadd.f32 %v6774_v42, %v6773_v6  ;;  %v6815_v35 = vadd.f32 %v6814_v24, %v6813_v33 }
 0x46c   :  { %v6776_v38 = vpop.f32.mrf.mxu1  ;;  %v6816_v47 = vpop.f32.mrf.mxu0  ;;  %5535 = vmatmul.mubr.bf16.gmra.mxu1 %v7541_v0 }
 0x46d   :  { %v8077_v34 = vadd.f32 %v6775_v60, %v5038_v30  ;;  %v8080_v39 = vadd.f32 %v6815_v35, %v7889_v19  ;;  %5542 = vmatprep.mubr.bf16.mxu1 %v7541_v0 }
 0x46e   :  { %v6777_v52 = vpop.f32.mrf.mxu1  ;;  %v6817_v44 = vpop.f32.mrf.mxu0 }
 0x46f   :  { %v6778_v25 = vadd.f32 %v6777_v52, %v6776_v38  ;;  %v6818_v62 = vadd.f32 %v6817_v44, %v6816_v47 }
 0x470   :  { %v6819_v58 = vpop.f32.mrf.mxu0 }
 0x471   :  { %v8085_v9 = vadd.f32 %v6778_v25, %v5041_v48  ;;  %v8088_v12 = vadd.f32 %v6818_v62, %v7898_v27 }
 0x472   :  { %v6820_v56 = vpop.f32.mrf.mxu0 }
 0x473   :  { %v6821_v2 = vadd.f32 %v6820_v56, %v6819_v58 }
 0x474   :  { %v6779_v15 = vpop.f32.mrf.mxu1  ;;  %v6822_v19 = vpop.f32.mrf.mxu0  ;;  %5543 = vmatmul.mubr.bf16.gmra.mxu1 %v7541_v0  ;;  %v5049_v0 = vadd.f32 %v8039_v29, %v7881_v3 }
 0x475   :  { %v8092_v55 = vadd.f32 %v6821_v2, %v7906_v37 }
 0x476   :  { %v6780_v32 = vpop.f32.mrf.mxu1  ;;  %v6823_v63 = vpop.f32.mrf.mxu0 }
 0x477   :  { %v6781_v61 = vadd.f32 %v6780_v32, %v6779_v15  ;;  %v6824_v18 = vadd.f32 %v6823_v63, %v6822_v19 }
 0x478   :  { %v6782_v17 = vpop.f32.mrf.mxu1  ;;  %v6825_v51 = vpop.f32.mrf.mxu0 }
 0x479   :  { %v8096_v27 = vadd.f32 %v6781_v61, %v5046_v13  ;;  %v8099_v8 = vadd.f32 %v6824_v18, %v7914_v28  ;;  %v5054_v28 = vadd.f32 %v8047_v53, %v7881_v3 }
 0x47a   :  { %v6783_v45 = vpop.f32.mrf.mxu1  ;;  %v6826_v6 = vpop.f32.mrf.mxu0 }
 0x47b   :  { %v6784_v37 = vadd.f32 %v6783_v45, %v6782_v17  ;;  %v6827_v33 = vadd.f32 %v6826_v6, %v6825_v51 }
 0x47c   :  { %v6785_v42 = vpop.f32.mrf.mxu1  ;;  %v6828_v24 = vpop.f32.mrf.mxu0 }
 0x47d   :  { %v8103_v30 = vadd.f32 %v6784_v37, %v5049_v0  ;;  %v8106_v43 = vadd.f32 %v6827_v33, %v7922_v54  ;;  %v5057_v54 = vadd.f32 %v8055_v46, %v7881_v3 }
 0x47e   :  { %v6786_v60 = vpop.f32.mrf.mxu1  ;;  %v6829_v35 = vpop.f32.mrf.mxu0 }
 0x47f   :  { %v6787_v38 = vadd.f32 %v6786_v60, %v6785_v42  ;;  %v6830_v47 = vadd.f32 %v6829_v35, %v6828_v24 }
 0x480   :  { %v6788_v52 = vpop.f32.mrf.mxu1  ;;  %v6831_v44 = vpop.f32.mrf.mxu0 }
 0x481   :  { %v8110_v48 = vadd.f32 %v6787_v38, %v5054_v28  ;;  %v8113_v29 = vadd.f32 %v6830_v47, %v7930_v16 }
 0x482   :  { %v6789_v25 = vpop.f32.mrf.mxu1  ;;  %v6832_v62 = vpop.f32.mrf.mxu0 }
 0x483   :  { %v6790_v58 = vadd.f32 %v6789_v25, %v6788_v52  ;;  %v6833_v56 = vadd.f32 %v6832_v62, %v6831_v44 }
 0x484   :  { %v6834_v2 = vpop.f32.mrf.mxu0 }
 0x485   :  { %v8117_v15 = vadd.f32 %v6790_v58, %v5057_v54  ;;  %v8120_v53 = vadd.f32 %v6833_v56, %v7938_v21 }
 0x486   :  { %v6835_v19 = vpop.f32.mrf.mxu0 }
 0x487   :  { %v6836_v32 = vadd.f32 %v6835_v19, %v6834_v2 }
 0x488   :  { %v6837_v63 = vpop.f32.mrf.mxu0 }
 0x489   :  { %v8123_v13 = vadd.f32 %v6836_v32, %v7946_v5 }
 0x48a   :  { %v6838_v16 = vpop.f32.mrf.mxu0 }
 0x48b   :  { %v6839_v61 = vadd.f32 %v6838_v16, %v6837_v63 }
 0x48c   :  { %v6840_v18 = vpop.f32.mrf.mxu0 }
 0x48d   :  { %v8126_v17 = vadd.f32 %v6839_v61, %v7954_v20 }
 0x48e   :  { %v6841_v46 = vpop.f32.mrf.mxu0 }
 0x48f   :  { %v6842_v51 = vadd.f32 %v6841_v46, %v6840_v18 }
 0x490   :  { %v6843_v45 = vpop.f32.mrf.mxu0 }
 0x491   :  { %v8129_v6 = vadd.f32 %v6842_v51, %v7962_v49 }
 0x492   :  { %v6844_v21 = vpop.f32.mrf.mxu0 }
 0x493   :  { %v6845_v0 = vadd.f32 %v6844_v21, %v6843_v45 }
 0x494   :  { %v6846_v37 = vpop.f32.mrf.mxu0 }
 0x495   :  { %v8132_v33 = vadd.f32 %v6845_v0, %v7970_v1 }
 0x496   :  { %v6847_v5 = vpop.f32.mrf.mxu0 }
 0x497   :  { %v6848_v42 = vadd.f32 %v6847_v5, %v6846_v37  ;;  %v5062_v37 = vadd.f32 %v8062_v36, %v7881_v3 }
 0x498   :  { %v6849_v24 = vpop.f32.mrf.mxu0 }
 0x499   :  { %v8135_v60 = vadd.f32 %v6848_v42, %v7978_v7 }
 0x49a   :  { %v6850_v20 = vpop.f32.mrf.mxu0 }
 0x49b   :  { %v6851_v35 = vadd.f32 %v6850_v20, %v6849_v24 }
 0x49c   :  { %v6852_v28 = vpop.f32.mrf.mxu0 }
 0x49d   :  { %v8138_v38 = vadd.f32 %v6851_v35, %v7986_v10 }
 0x49e   :  { %v6853_v49 = vpop.f32.mrf.mxu0 }
 0x49f   :  { %v6854_v47 = vadd.f32 %v6853_v49, %v6852_v28 }
 0x4a0   :  { %v6855_v52 = vpop.f32.mrf.mxu0 }
 0x4a1   :  { %v8141_v44 = vadd.f32 %v6854_v47, %v7994_v14 }
 0x4a2   :  { %v6856_v1 = vpop.f32.mrf.mxu0 }
 0x4a3   :  { %v6857_v25 = vadd.f32 %v6856_v1, %v6855_v52 }
 0x4a4   :  { %v6858_v62 = vpop.f32.mrf.mxu0 }
 0x4a5   :  { %v8144_v54 = vadd.f32 %v6857_v25, %v8002_v41 }
 0x4a6   :  { %v6859_v7 = vpop.f32.mrf.mxu0 }
 0x4a7   :  { %v6860_v58 = vadd.f32 %v6859_v7, %v6858_v62 }
 0x4a8   :  { %v6861_v56 = vpop.f32.mrf.mxu0 }
 0x4a9   :  { %v8147_v2 = vadd.f32 %v6860_v58, %v8010_v50 }
 0x4aa   :  { %v6862_v10 = vpop.f32.mrf.mxu0 }
 0x4ab   :  { %v6863_v19 = vadd.f32 %v6862_v10, %v6861_v56 }
 0x4ac   :  { %v6864_v32 = vpop.f32.mrf.mxu0 }
 0x4ad   :  { %v8150_v63 = vadd.f32 %v6863_v19, %v8018_v22 }
 0x4ae   :  { %v6865_v14 = vpop.f32.mrf.mxu0 }
 0x4af   :  { %v6866_v16 = vadd.f32 %v6865_v14, %v6864_v32 }
 0x4b0   :  { %v6867_v61 = vpop.f32.mrf.mxu0 }
 0x4b1   :  { %v8153_v18 = vadd.f32 %v6866_v16, %v8026_v40 }
 0x4b2   :  { %v6868_v41 = vpop.f32.mrf.mxu0 }
 0x4b3   :  { %v6869_v46 = vadd.f32 %v6868_v41, %v6867_v61 }
 0x4b4   :  { %v6791_v51 = vpop.f32.mrf.mxu1  ;;  %v6870_v45 = vpop.f32.mrf.mxu0 }
 0x4b5   :  { %v8156_v21 = vadd.f32 %v6869_v46, %v8034_v23  ;;  %v5065_v23 = vadd.f32 %v8070_v31, %v7881_v3 }
 0x4b6   :  { %v6792_v50 = vpop.f32.mrf.mxu1  ;;  %v6871_v0 = vpop.f32.mrf.mxu0 }
 0x4b7   :  { %v6793_v22 = vadd.f32 %v6792_v50, %v6791_v51  ;;  %v6872_v5 = vadd.f32 %v6871_v0, %v6870_v45 }
 0x4b8   :  { %v6794_v42 = vpop.f32.mrf.mxu1  ;;  %v6873_v24 = vpop.f32.mrf.mxu0 }
 0x4b9   :  { %v8160_v20 = vadd.f32 %v6793_v22, %v5062_v37  ;;  %v8163_v40 = vadd.f32 %v6872_v5, %v8042_v11 }
 0x4ba   :  { %v6795_v35 = vpop.f32.mrf.mxu1  ;;  %v6874_v28 = vpop.f32.mrf.mxu0 }
 0x4bb   :  { %v6796_v49 = vadd.f32 %v6795_v35, %v6794_v42  ;;  %v6875_v47 = vadd.f32 %v6874_v28, %v6873_v24 }
 0x4bc   :  { %v6876_v52 = vpop.f32.mrf.mxu0  ;;  %v8167_v1 = vpop.f32.mrf.mxu1 }
 0x4bd   :  { %v8169_v36 = vadd.f32 %v6796_v49, %v5065_v23  ;;  %v8172_v25 = vadd.f32 %v6875_v47, %v8050_v57 }
 0x4be   :  { %v6877_v62 = vpop.f32.mrf.mxu0  ;;  %v6926_v7 = vpop.f32.mrf.mxu1 }
 0x4bf   :  { %v6878_v58 = vadd.f32 %v6877_v62, %v6876_v52 }
 0x4c0   :  { %v6879_v11 = vpop.f32.mrf.mxu0  ;;  %v8174_v56 = vpop.f32.mrf.mxu1 }
 0x4c1   :  { %v8177_v10 = vadd.f32 %v6878_v58, %v8058_v4 }
 0x4c2   :  { %v6880_v3 = vpop.f32.mrf.mxu0  ;;  %v8179_v31 = vpop.f32.mrf.mxu1 }
 0x4c3   :  { %v6881_v19 = vadd.f32 %v6880_v3, %v6879_v11 }
 0x4c4   :  { %v6882_v32 = vpop.f32.mrf.mxu0  ;;  %v6931_v14 = vpop.f32.mrf.mxu1 }
 0x4c5   :  { %v8182_v16 = vadd.f32 %v6881_v19, %v8065_v26 }
 0x4c6   :  { %v6883_v57 = vpop.f32.mrf.mxu0  ;;  %v6932_v61 = vpop.f32.mrf.mxu1 }
 0x4c7   :  { %v6884_v41 = vadd.f32 %v6883_v57, %v6882_v32 }
 0x4c8   :  { %v6885_v46 = vpop.f32.mrf.mxu0  ;;  %v6934_v51 = vpop.f32.mrf.mxu1 }
 0x4c9   :  { %v8185_v45 = vadd.f32 %v6884_v41, %v8072_v59 }
 0x4ca   :  { %v6886_v50 = vpop.f32.mrf.mxu0  ;;  %v6935_v4 = vpop.f32.mrf.mxu1 }
 0x4cb   :  { %v6887_v0 = vadd.f32 %v6886_v50, %v6885_v46 }
 0x4cc   :  { %v6888_v37 = vpop.f32.mrf.mxu0  ;;  %v6937_v22 = vpop.f32.mrf.mxu1 }
 0x4cd   :  { %v8188_v5 = vadd.f32 %v6887_v0, %v8077_v34 }
 0x4ce   :  { %v6889_v42 = vpop.f32.mrf.mxu0  ;;  %v6938_v24 = vpop.f32.mrf.mxu1 }
 0x4cf   :  { %v6890_v26 = vadd.f32 %v6889_v42, %v6888_v37 }
 0x4d0   :  { %v6891_v35 = vpop.f32.mrf.mxu0  ;;  %v8190_v28 = vpop.f32.mrf.mxu1 }
 0x4d1   :  { %v8193_v23 = vadd.f32 %v6890_v26, %v8085_v9 }
 0x4d2   :  { %v6892_v49 = vpop.f32.mrf.mxu0  ;;  %v8195_v59 = vpop.f32.mrf.mxu1 }
 0x4d3   :  { %v6893_v47 = vadd.f32 %v6892_v49, %v6891_v35 }
 0x4d4   :  { %v6894_v52 = vpop.f32.mrf.mxu0  ;;  %v6943_v62 = vpop.f32.mrf.mxu1 }
 0x4d5   :  { %v8198_v58 = vadd.f32 %v6893_v47, %v8096_v27 }
 0x4d6   :  { %v6895_v34 = vpop.f32.mrf.mxu0  ;;  %v6944_v11 = vpop.f32.mrf.mxu1 }
 0x4d7   :  { %8419 = vst [vmem:[#allocation20_spill] sm:$0xff] %v8198_v58  ;;  %v6896_v3 = vadd.f32 %v6895_v34, %v6894_v52  ;;  %v6933_v34 = vadd.f32 %v6932_v61, %v6931_v14 }
 0x4d8   :  { %v6897_v19 = vpop.f32.mrf.mxu0  ;;  %v6946_v32 = vpop.f32.mrf.mxu1 }
 0x4d9   :  { %v8201_v57 = vadd.f32 %v6896_v3, %v8103_v30  ;;  %v5433_v58 = vadd.f32 %v6933_v34, %v8092_v55 }
 0x4da   :  { %v6898_v41 = vpop.f32.mrf.mxu0  ;;  %v6947_v9 = vpop.f32.mrf.mxu1 }
 0x4db   :  { %8420 = vst [vmem:[#allocation21_spill] sm:$0xff] %v8201_v57  ;;  %v6899_v46 = vadd.f32 %v6898_v41, %v6897_v19 }
 0x4dc   :  { %v6900_v50 = vpop.f32.mrf.mxu0  ;;  %v8203_v0 = vpop.f32.mrf.mxu1 }
 0x4dd   :  { %v8206_v37 = vadd.f32 %v6899_v46, %v8110_v48  ;;  %v6927_v48 = vadd.f32 %v6926_v7, %v8167_v1  ;;  %v6930_v1 = vadd.f32 %v8179_v31, %v8174_v56 }
 0x4de   :  { %v6901_v42 = vpop.f32.mrf.mxu0  ;;  %v8208_v27 = vpop.f32.mrf.mxu1 }
 0x4df   :  { %8421 = vst [vmem:[#allocation22_spill] sm:$0xff] %v8206_v37  ;;  %v6902_v26 = vadd.f32 %v6901_v42, %v6900_v50  ;;  %v6936_v42 = vadd.f32 %v6935_v4, %v6934_v51  ;;  %v5425_v61 = vadd.f32 %v6927_v48, %v8080_v39  ;;  %v5428_v56 = vadd.f32 %v6930_v1, %v8088_v12 }
 0x4e0   :  { %v6903_v35 = vpop.f32.mrf.mxu0  ;;  %v8210_v49 = vpop.f32.mrf.mxu1  ;;  %v6942_v12 = vadd.f32 %v8195_v59, %v8190_v28 }
 0x4e1   :  { %v8213_v47 = vadd.f32 %v6902_v26, %v8117_v15  ;;  %v5436_v55 = vadd.f32 %v6936_v42, %v8099_v8 }
 0x4e2   :  { %v6904_v30 = vpop.f32.mrf.mxu0  ;;  %v8215_v52 = vpop.f32.mrf.mxu1 }
 0x4e3   :  { %8422 = vst [vmem:[#allocation23_spill] sm:$0xff] %v8213_v47  ;;  %v6905_v3 = vadd.f32 %v6904_v30, %v6903_v35 }
 0x4e4   :  { %v6906_v19 = vpop.f32.mrf.mxu0  ;;  %v6955_v41 = vpop.f32.mrf.mxu1 }
 0x4e5   :  { %v8219_v46 = vadd.f32 %v6905_v3, %v8160_v20  ;;  %v6945_v20 = vadd.f32 %v6944_v11, %v6943_v62  ;;  %v6948_v11 = vadd.f32 %v6947_v9, %v6946_v32 }
 0x4e6   :  { %v6907_v37 = vpop.f32.mrf.mxu0  ;;  %v6956_v50 = vpop.f32.mrf.mxu1 }
 0x4e7   :  { %v6908_v57 = vadd.f32 %v6907_v37, %v6906_v19  ;;  %v5449_v62 = vadd.f32 %v6945_v20, %v8120_v53  ;;  %v6957_v53 = vadd.f32 %v6956_v50, %v6955_v41 }
 0x4e8   :  { %v6958_v15 = vpop.f32.mrf.mxu1  ;;  %v7063_v26 = vpop.f32.mrf.mxu0 }
 0x4e9   :  { %v8223_v47 = vadd.f32 %v6908_v57, %v8169_v36  ;;  %v8225_v14 = vadd.f32 %v7063_v26, %v5433_v58  ;;  %v6939_v57 = vadd.f32 %v6938_v24, %v6937_v22 }
 0x4ea   :  { %v6959_v7 = vpop.f32.mrf.mxu1  ;;  %v5585_v35 = vpop.f32.mrf.mxu0 }
 0x4eb   :  { %v5714_v51 = vsub.f32 0.0, %v8225_v14  ;;  %v8231_v4 = vadd.f32 %v5585_v35, %v5425_v61  ;;  %v5441_v26 = vadd.f32 %v6939_v57, %v8106_v43  ;;  %v5452_v35 = vadd.f32 %v6948_v11, %v8123_v13 }
 0x4ec   :  { %v8234_v37 = vpop.f32.mrf.mxu1  ;;  %v7064_v36 = vpop.f32.mrf.mxu0  ;;  %v6951_v43 = vadd.f32 %v8208_v27, %v8203_v0  ;;  %v5444_v57 = vadd.f32 %v6942_v12, %v8113_v29  ;;  %v6954_v29 = vadd.f32 %v8215_v52, %v8210_v49 }
 0x4ed   :  { %v5748_v58 = vmul.f32 1.442695, %v5714_v51  ;;  %v5712_v30 = vsub.f32 0.0, %v8231_v4  ;;  %v8237_v39 = vadd.f32 %v7064_v36, %v5436_v55 }
 0x4ee   :  { %v6962_v34 = vpop.f32.mrf.mxu1  ;;  %v5588_v31 = vpop.f32.mrf.mxu0 }
 0x4ef   :  { %7229 = vpow2.f32 %v5748_v58  ;;  %v5744_v3 = vmul.f32 1.442695, %v5712_v30  ;;  %v5715_v8 = vsub.f32 0.0, %v8237_v39  ;;  %v8242_v19 = vadd.f32 %v5588_v31, %v5428_v56 }
 0x4f0   :  { %v8244_v48 = vpop.f32.mrf.mxu1  ;;  %v7067_v22 = vpop.f32.mrf.mxu0  ;;  %v5465_v30 = vadd.f32 %v6957_v53, %v8132_v33  ;;  %v6960_v56 = vadd.f32 %v6959_v7, %v6958_v15 }
 0x4f1   :  { %7231 = vpow2.f32 %v5744_v3  ;;  %v5750_v24 = vmul.f32 1.442695, %v5715_v8  ;;  %v8246_v42 = vadd.f32 %v7067_v22, %v5449_v62  ;;  %v5713_v32 = vsub.f32 0.0, %v8242_v19 }
 0x4f2   :  { %v8252_v9 = vpop.f32.mrf.mxu1  ;;  %v5601_v61 = vpop.f32.mrf.mxu0  ;;  %v5457_v8 = vadd.f32 %v6951_v43, %v8126_v17  ;;  %v5468_v12 = vadd.f32 %v6960_v56, %v8135_v60 }
 0x4f3   :  { %7233 = vpow2.f32 %v5750_v24  ;;  %v5718_v1 = vsub.f32 0.0, %v8246_v42  ;;  %v8255_v20 = vadd.f32 %v5601_v61, %v5441_v26  ;;  %v5746_v51 = vmul.f32 1.442695, %v5713_v32 }
 0x4f4   :  { %v6967_v55 = vpop.f32.mrf.mxu1  ;;  %v7068_v36 = vpop.f32.mrf.mxu0  ;;  %v6963_v32 = vadd.f32 %v6962_v34, %v8234_v37 }
 0x4f5   :  { %v5756_v28 = vmul.f32 1.442695, %v5718_v1  ;;  %v5716_v59 = vsub.f32 0.0, %v8255_v20  ;;  %v8261_v41 = vadd.f32 %v7068_v36, %v5452_v35  ;;  %7235 = vpow2.f32 %v5746_v51 }
 0x4f6   :  { %v6968_v50 = vpop.f32.mrf.mxu1  ;;  %v5604_v58 = vpop.f32.mrf.mxu0 }
 0x4f7   :  { %7237 = vpow2.f32 %v5756_v28  ;;  %v5752_v13 = vmul.f32 1.442695, %v5716_v59  ;;  %v5719_v31 = vsub.f32 0.0, %v8261_v41  ;;  %v8266_v62 = vadd.f32 %v5604_v58, %v5444_v57 }
 0x4f8   :  { %v6970_v0 = vpop.f32.mrf.mxu1  ;;  %v7071_v27 = vpop.f32.mrf.mxu0  ;;  %v6969_v22 = vadd.f32 %v6968_v50, %v6967_v55  ;;  %v5460_v28 = vadd.f32 %v6954_v29, %v8129_v6 }
 0x4f9   :  { %7239 = vpow2.f32 %v5752_v13  ;;  %v5758_v11 = vmul.f32 1.442695, %v5719_v31  ;;  %v8268_v3 = vadd.f32 %v7071_v27, %v5465_v30  ;;  %v5717_v33 = vsub.f32 0.0, %v8266_v62 }
 0x4fa   :  { %v6971_v15 = vpop.f32.mrf.mxu1  ;;  %v5617_v7 = vpop.f32.mrf.mxu0  ;;  %v5481_v60 = vadd.f32 %v6969_v22, %v8144_v54  ;;  %v5473_v13 = vadd.f32 %v6963_v32, %v8138_v38  ;;  %v6966_v54 = vadd.f32 %v8252_v9, %v8244_v48 }
 0x4fb   :  { %7241 = vpow2.f32 %v5758_v11  ;;  %v5722_v24 = vsub.f32 0.0, %v8268_v3  ;;  %v8275_v26 = vadd.f32 %v5617_v7, %v5457_v8  ;;  %v5754_v61 = vmul.f32 1.442695, %v5717_v33 }
 0x4fc   :  { %v7230_v53 = vpop.eup %7229  ;;  %v6973_v17 = vpop.f32.mrf.mxu1  ;;  %v6972_v36 = vadd.f32 %v6971_v15, %v6970_v0 }
 0x4fd   :  { %v7072_v1 = vpop.f32.mrf.mxu0  ;;  %v5810_v35 = vadd.f32 1.0, %v7230_v53  ;;  %v5764_v49 = vmul.f32 1.442695, %v5722_v24  ;;  %v5720_v52 = vsub.f32 0.0, %v8275_v26  ;;  %7243 = vpow2.f32 %v5754_v61 }
 0x4fe   :  { %v8280_v51 = vadd.f32 %v7072_v1, %v5468_v12  ;;  %v7232_v55 = vpop.eup %7231  ;;  %v6974_v43 = vpop.f32.mrf.mxu1  ;;  %v5484_v38 = vadd.f32 %v6972_v36, %v8147_v2 }
 0x4ff   :  { %v5620_v59 = vpop.f32.mrf.mxu0  ;;  %7245 = vrcp.f32 %v5810_v35  ;;  %v5808_v37 = vadd.f32 1.0, %v7232_v55  ;;  %v5760_v34 = vmul.f32 1.442695, %v5720_v52  ;;  %v6975_v9 = vadd.f32 %v6974_v43, %v6973_v17 }
 0x500   :  { %v5723_v50 = vsub.f32 0.0, %v8280_v51  ;;  %v7234_v57 = vpop.eup %7233  ;;  %7247 = vpow2.f32 %v5764_v49  ;;  %v8285_v58 = vadd.f32 %v5620_v59, %v5460_v28  ;;  %v6976_v30 = vpop.f32.mrf.mxu1  ;;  %v5476_v52 = vadd.f32 %v6966_v54, %v8141_v44 }
 0x501   :  { %v7075_v56 = vpop.f32.mrf.mxu0  ;;  %7249 = vrcp.f32 %v5808_v37  ;;  %v5811_v31 = vadd.f32 1.0, %v7234_v57  ;;  %v5489_v57 = vadd.f32 %v6975_v9, %v8150_v63 }
 0x502   :  { %v5766_v0 = vmul.f32 1.442695, %v5723_v50  ;;  %v8288_v6 = vadd.f32 %v7075_v56, %v5481_v60  ;;  %7251 = vpow2.f32 %v5760_v34  ;;  %v5721_v27 = vsub.f32 0.0, %v8285_v58  ;;  %v6977_v11 = vpop.f32.mrf.mxu1  ;;  %v7236_v29 = vpop.eup %7235 }
 0x503   :  { %v5633_v8 = vpop.f32.mrf.mxu0  ;;  %7253 = vrcp.f32 %v5811_v31  ;;  %v5809_v7 = vadd.f32 1.0, %v7236_v29  ;;  %v6978_v44 = vadd.f32 %v6977_v11, %v6976_v30 }
 0x504   :  { %v5726_v22 = vsub.f32 0.0, %v8288_v6  ;;  %v8294_v33 = vadd.f32 %v5633_v8, %v5473_v13  ;;  %v7238_v15 = vpop.eup %7237  ;;  %7255 = vpow2.f32 %v5766_v0  ;;  %v5762_v24 = vmul.f32 1.442695, %v5721_v27  ;;  %v6979_v12 = vpop.f32.mrf.mxu1 }
 0x505   :  { %v7076_v53 = vpop.f32.mrf.mxu0  ;;  %v5814_v48 = vadd.f32 1.0, %v7238_v15  ;;  %7257 = vrcp.f32 %v5809_v7 }
 0x506   :  { %v5724_v32 = vsub.f32 0.0, %v8294_v33  ;;  %v8298_v61 = vadd.f32 %v7076_v53, %v5484_v38  ;;  %v7240_v1 = vpop.eup %7239  ;;  %v5772_v35 = vmul.f32 1.442695, %v5726_v22  ;;  %v6980_v49 = vpop.f32.mrf.mxu1 }
 0x507   :  { %v5636_v55 = vpop.f32.mrf.mxu0  ;;  %7259 = vrcp.f32 %v5814_v48  ;;  %v5812_v2 = vadd.f32 1.0, %v7240_v1  ;;  %v6981_v60 = vadd.f32 %v6980_v49, %v6979_v12 }
 0x508   :  { %v5727_v36 = vsub.f32 0.0, %v8298_v61  ;;  %v7242_v28 = vpop.eup %7241  ;;  %7261 = vpow2.f32 %v5762_v24  ;;  %v5768_v59 = vmul.f32 1.442695, %v5724_v32  ;;  %v8302_v17 = vadd.f32 %v5636_v55, %v5476_v52  ;;  %v6982_v43 = vpop.f32.mrf.mxu1 }
 0x509   :  { %v7079_v37 = vpop.f32.mrf.mxu0  ;;  %7263 = vrcp.f32 %v5812_v2  ;;  %v5815_v34 = vadd.f32 1.0, %v7242_v28  ;;  %v5497_v13 = vadd.f32 %v6981_v60, %v8156_v21  ;;  %v5492_v32 = vadd.f32 %v6978_v44, %v8153_v18 }
 0x50a   :  { %v5774_v50 = vmul.f32 1.442695, %v5727_v36  ;;  %7265 = vpow2.f32 %v5772_v35  ;;  %v5725_v56 = vsub.f32 0.0, %v8302_v17  ;;  %v6983_v31 = vpop.f32.mrf.mxu1  ;;  %v7244_v54 = vpop.eup %7243 }
 0x50b   :  { %v5649_v0 = vpop.f32.mrf.mxu0  ;;  %7267 = vrcp.f32 %v5815_v34  ;;  %v6984_v27 = vadd.f32 %v6983_v31, %v6982_v43  ;;  %v5813_v22 = vadd.f32 1.0, %v7244_v54  ;;  %v8309_v15 = vadd.f32 %v7079_v37, %v5497_v13 }
 0x50c   :  { %v8307_v8 = vadd.f32 %v5649_v0, %v5489_v57  ;;  %v7246_v29 = vpop.eup %7245  ;;  %7269 = vpow2.f32 %v5768_v59  ;;  %v5770_v38 = vmul.f32 1.442695, %v5725_v56  ;;  %v6985_v63 = vpop.f32.mrf.mxu1 }
 0x50d   :  { %v7080_v7 = vpop.f32.mrf.mxu0  ;;  %v7248_v30 = vpop.eup %7247  ;;  %v5845_v11 = vmul.f32 %v7246_v29, %v8225_v14  ;;  %7271 = vpow2.f32 %v5774_v50  ;;  %v5500_v24 = vadd.f32 %v6984_v27, %v8163_v40  ;;  %v5730_v48 = vsub.f32 0.0, %v8309_v15 }
 0x50e   :  { %v5728_v21 = vsub.f32 0.0, %v8307_v8  ;;  %v7250_v12 = vpop.eup %7249  ;;  %7273 = vrcp.f32 %v5813_v22  ;;  %v5818_v53 = vadd.f32 1.0, %v7248_v30  ;;  %v6986_v9 = vpop.f32.mrf.mxu1 }
 0x50f   :  { %v5652_v1 = vpop.f32.mrf.mxu0  ;;  %v7252_v35 = vpop.eup %7251  ;;  %5906 = vst [vmem:[#allocation14 + $0x10] sm:$0xff] %v5845_v11  ;;  %v5841_v49 = vmul.f32 %v7250_v12, %v8231_v4  ;;  %7275 = vpow2.f32 %v5770_v38  ;;  %v8317_v52 = vadd.f32 %v7080_v7, %v5500_v24  ;;  %v5780_v2 = vmul.f32 1.442695, %v5730_v48 }
 0x510   :  { %v5776_v14 = vmul.f32 1.442695, %v5728_v21  ;;  %v7254_v55 = vpop.eup %7253  ;;  %7277 = vrcp.f32 %v5818_v53  ;;  %v5816_v40 = vadd.f32 1.0, %v7252_v35  ;;  %v6987_v36 = vadd.f32 %v6986_v9, %v6985_v63  ;;  %v6988_v28 = vpop.f32.mrf.mxu1 }
 0x511   :  { %v7083_v59 = vpop.f32.mrf.mxu0  ;;  %v7256_v60 = vpop.eup %7255  ;;  %5904 = vst [vmem:[#allocation14] sm:$0xff] %v5841_v49  ;;  %v5847_v18 = vmul.f32 %v7254_v55, %v8237_v39  ;;  %v5731_v43 = vsub.f32 0.0, %v8317_v52  ;;  %v8321_v37 = vadd.f32 %v5652_v1, %v5492_v32 }
 0x512   :  { %7279 = vpow2.f32 %v5776_v14  ;;  %v5819_v4 = vadd.f32 1.0, %v7256_v60  ;;  %v6989_v34 = vpop.f32.mrf.mxu1  ;;  %v5505_v50 = vadd.f32 %v6987_v36, %v8172_v25  ;;  %v7258_v44 = vpop.eup %7257 }
 0x513   :  { %7281 = vrcp.f32 %v5816_v40  ;;  %v5665_v57 = vpop.f32.mrf.mxu0  ;;  %5907 = vst [vmem:[#allocation14 + $0x18] sm:$0xff] %v5847_v18  ;;  %v5782_v56 = vmul.f32 1.442695, %v5731_v43  ;;  %v5729_v13 = vsub.f32 0.0, %v8321_v37  ;;  %v6990_v31 = vadd.f32 %v6989_v34, %v6988_v28 }
 0x514   :  { %7283 = vpow2.f32 %v5780_v2  ;;  %v7260_v0 = vpop.eup %7259  ;;  %v5843_v39 = vmul.f32 %v7258_v44, %v8242_v19  ;;  %v8326_v54 = vadd.f32 %v5665_v57, %v5505_v50  ;;  %v6991_v27 = vpop.f32.mrf.mxu1 }
 0x515   :  { %7285 = vrcp.f32 %v5819_v4  ;;  %v8328_v29 = vpop.f32.mrf.mxu0  ;;  %v7262_v22 = vpop.eup %7261  ;;  %v5853_v25 = vmul.f32 %v7260_v0, %v8246_v42  ;;  %v5778_v38 = vmul.f32 1.442695, %v5729_v13  ;;  %v5508_v63 = vadd.f32 %v6990_v31, %v8177_v10 }
 0x516   :  { %7287 = vpow2.f32 %v5782_v56  ;;  %v7264_v7 = vpop.eup %7263  ;;  %5905 = vst [vmem:[#allocation14 + $0x8] sm:$0xff] %v5843_v39  ;;  %v5817_v30 = vadd.f32 1.0, %v7262_v22  ;;  %v5732_v11 = vsub.f32 0.0, %v8326_v54  ;;  %v6992_v21 = vpop.f32.mrf.mxu1 }
 0x517   :  { %v5668_v19 = vpop.f32.mrf.mxu0  ;;  %v7266_v24 = vpop.eup %7265  ;;  %5910 = vst [vmem:[#allocation14 + $0x30] sm:$0xff] %v5853_v25  ;;  %v5849_v12 = vmul.f32 %v7264_v7, %v8255_v20  ;;  %7289 = vpow2.f32 %v5778_v38  ;;  %v6993_v53 = vadd.f32 %v6992_v21, %v6991_v27 }
 0x518   :  { %v8334_v48 = vadd.f32 %v5668_v19, %v5508_v63  ;;  %v7268_v42 = vpop.eup %7267  ;;  %7291 = vrcp.f32 %v5817_v30  ;;  %v5822_v9 = vadd.f32 1.0, %v7266_v24  ;;  %v5784_v32 = vmul.f32 1.442695, %v5732_v11  ;;  %v6994_v10 = vpop.f32.mrf.mxu1 }
 0x519   :  { %v8336_v1 = vpop.f32.mrf.mxu0  ;;  %v7270_v35 = vpop.eup %7269  ;;  %5908 = vst [vmem:[#allocation14 + $0x20] sm:$0xff] %v5849_v12  ;;  %v5855_v49 = vmul.f32 %v7268_v42, %v8261_v41  ;;  %v5513_v14 = vadd.f32 %v6993_v53, %v8182_v16 }
 0x51a   :  { %v5733_v55 = vsub.f32 0.0, %v8334_v48  ;;  %v7272_v20 = vpop.eup %7271  ;;  %7293 = vrcp.f32 %v5822_v9  ;;  %v5820_v40 = vadd.f32 1.0, %v7270_v35  ;;  %v6995_v2 = vpop.f32.mrf.mxu1 }
 0x51b   :  { %v7274_v36 = vpop.eup %7273  ;;  %5911 = vst [vmem:[#allocation14 + $0x38] sm:$0xff] %v5855_v49  ;;  %v5823_v28 = vadd.f32 1.0, %v7272_v20  ;;  %7295 = vpow2.f32 %v5784_v32  ;;  %v8341_v60 = vadd.f32 %v7083_v59, %v5513_v14  ;;  %v6996_v41 = vadd.f32 %v6995_v2, %v6994_v10  ;;  %v5681_v16 = vpop.f32.mrf.mxu0 }
 0x51c   :  { %v5786_v18 = vmul.f32 1.442695, %v5733_v55  ;;  %v7276_v43 = vpop.eup %7275  ;;  %v5851_v4 = vmul.f32 %v7274_v36, %v8266_v62  ;;  %7297 = vrcp.f32 %v5820_v40  ;;  %v6997_v34 = vpop.f32.mrf.mxu1 }
 0x51d   :  { %v7278_v50 = vpop.eup %7277  ;;  %7299 = vrcp.f32 %v5823_v28  ;;  %v5821_v57 = vadd.f32 1.0, %v7276_v43  ;;  %v5734_v44 = vsub.f32 0.0, %v8341_v60  ;;  %v5516_v59 = vadd.f32 %v6996_v41, %v8185_v45  ;;  %v8351_v7 = vpop.f32.mrf.mxu0  ;;  %v8423_v41 = vld [vmem:[#allocation20_spill] sm:$0xff] }
 0x51e   :  { %5909 = vst [vmem:[#allocation14 + $0x28] sm:$0xff] %v5851_v4  ;;  %v5861_v13 = vmul.f32 %v7278_v50, %v8268_v3  ;;  %7301 = vpow2.f32 %v5786_v18  ;;  %v6998_v31 = vpop.f32.mrf.mxu1 }
 0x51f   :  { %v7280_v56 = vpop.eup %7279  ;;  %7303 = vrcp.f32 %v5821_v57  ;;  %v5788_v39 = vmul.f32 1.442695, %v5734_v44  ;;  %v6999_v27 = vadd.f32 %v6998_v31, %v6997_v34  ;;  %v8349_v38 = vadd.f32 %v8328_v29, %v5516_v59  ;;  %v5684_v32 = vpop.f32.mrf.mxu0 }
 0x520   :  { %v7282_v0 = vpop.eup %7281  ;;  %v5824_v62 = vadd.f32 1.0, %v7280_v56  ;;  %5914 = vst [vmem:[#allocation14 + $0x50] sm:$0xff] %v5861_v13  ;;  %v7000_v63 = vpop.f32.mrf.mxu1 }
 0x521   :  { %v7284_v22 = vpop.eup %7283  ;;  %v5857_v25 = vmul.f32 %v7282_v0, %v8275_v26  ;;  %v5521_v45 = vadd.f32 %v6999_v27, %v8188_v5  ;;  %v5735_v19 = vsub.f32 0.0, %v8349_v38  ;;  %v8366_v34 = vpop.f32.mrf.mxu0 }
 0x522   :  { %v7286_v3 = vpop.eup %7285  ;;  %v5826_v30 = vadd.f32 1.0, %v7284_v22  ;;  %7305 = vrcp.f32 %v5824_v62  ;;  %v7001_v24 = vpop.f32.mrf.mxu1 }
 0x523   :  { %v7288_v11 = vpop.eup %7287  ;;  %5912 = vst [vmem:[#allocation14 + $0x40] sm:$0xff] %v5857_v25  ;;  %v5863_v21 = vmul.f32 %v7286_v3, %v8280_v51  ;;  %7307 = vpow2.f32 %v5788_v39  ;;  %v7002_v29 = vadd.f32 %v7001_v24, %v7000_v63  ;;  %v8356_v12 = vadd.f32 %v5681_v16, %v5521_v45 }
 0x524   :  { %7309 = vrcp.f32 %v5826_v30  ;;  %v5827_v26 = vadd.f32 1.0, %v7288_v11  ;;  %v7290_v53 = vpop.eup %7289  ;;  %v5790_v42 = vmul.f32 1.442695, %v5735_v19  ;;  %v7003_v9 = vpop.f32.mrf.mxu1 }
 0x525   :  { %5915 = vst [vmem:[#allocation14 + $0x58] sm:$0xff] %v5863_v21  ;;  %v7292_v10 = vpop.eup %7291  ;;  %v5825_v5 = vadd.f32 1.0, %v7290_v53  ;;  %v5736_v35 = vsub.f32 0.0, %v8356_v12  ;;  %v5524_v51 = vadd.f32 %v7002_v29, %v8193_v23 }
 0x526   :  { %7311 = vrcp.f32 %v5827_v26  ;;  %v5859_v49 = vmul.f32 %v7292_v10, %v8285_v58  ;;  %v7004_v14 = vpop.f32.mrf.mxu1  ;;  %v8425_v26 = vld [vmem:[#allocation22_spill] sm:$0xff] }
 0x527   :  { %7313 = vpow2.f32 %v5790_v42  ;;  %v7294_v55 = vpop.eup %7293  ;;  %v5792_v20 = vmul.f32 1.442695, %v5736_v35  ;;  %v7005_v40 = vadd.f32 %v7004_v14, %v7003_v9  ;;  %v8361_v2 = vadd.f32 %v5684_v32, %v5524_v51 }
 0x528   :  { %7315 = vrcp.f32 %v5825_v5  ;;  %v7296_v36 = vpop.eup %7295  ;;  %5913 = vst [vmem:[#allocation14 + $0x48] sm:$0xff] %v5859_v49  ;;  %v5869_v28 = vmul.f32 %v7294_v55, %v8288_v6  ;;  %v7006_v18 = vpop.f32.mrf.mxu1 }
 0x529   :  { %v7298_v43 = vpop.eup %7297  ;;  %v5828_v4 = vadd.f32 1.0, %v7296_v36  ;;  %7317 = vpow2.f32 %v5792_v20  ;;  %v5529_v23 = vadd.f32 %v7005_v40, %v8423_v41  ;;  %v5737_v58 = vsub.f32 0.0, %v8361_v2  ;;  %v8426_v20 = vld [vmem:[#allocation23_spill] sm:$0xff] }
 0x52a   :  { %v7300_v16 = vpop.eup %7299  ;;  %5918 = vst [vmem:[#allocation14 + $0x70] sm:$0xff] %v5869_v28  ;;  %v5865_v50 = vmul.f32 %v7298_v43, %v8294_v33  ;;  %v7007_v57 = vpop.f32.mrf.mxu1 }
 0x52b   :  { %v7302_v44 = vpop.eup %7301  ;;  %v5871_v56 = vmul.f32 %v7300_v16, %v8298_v61  ;;  %7319 = vrcp.f32 %v5828_v4  ;;  %v8371_v6 = vadd.f32 %v8336_v1, %v5529_v23  ;;  %v5794_v13 = vmul.f32 1.442695, %v5737_v58  ;;  %v5697_v33 = vpop.f32.mrf.mxu0  ;;  %v8424_v61 = vld [vmem:[#allocation21_spill] sm:$0xff] }
 0x52c   :  { %v7304_v59 = vpop.eup %7303  ;;  %5916 = vst [vmem:[#allocation14 + $0x60] sm:$0xff] %v5865_v50  ;;  %v5829_v31 = vadd.f32 1.0, %v7302_v44  ;;  %v7008_v0 = vadd.f32 %v7007_v57, %v7006_v18  ;;  %v7009_v62 = vpop.f32.mrf.mxu1 }
 0x52d   :  { %5919 = vst [vmem:[#allocation14 + $0x78] sm:$0xff] %v5871_v56  ;;  %v5867_v39 = vmul.f32 %v7304_v59, %v8302_v17  ;;  %v5738_v27 = vsub.f32 0.0, %v8371_v6  ;;  %7321 = vpow2.f32 %v5794_v13  ;;  %v7092_v53 = vpop.f32.mrf.mxu0 }
 0x52e   :  { %7323 = vrcp.f32 %v5829_v31  ;;  %v5532_v25 = vadd.f32 %v7008_v0, %v8424_v61  ;;  %v7010_v63 = vpop.f32.mrf.mxu1 }
 0x52f   :  { %v7306_v22 = vpop.eup %7305  ;;  %5917 = vst [vmem:[#allocation14 + $0x68] sm:$0xff] %v5867_v39  ;;  %v5796_v30 = vmul.f32 1.442695, %v5738_v27  ;;  %v7011_v45 = vadd.f32 %v7010_v63, %v7009_v62  ;;  %v5700_v36 = vpop.f32.mrf.mxu0 }
 0x530   :  { %v7308_v1 = vpop.eup %7307  ;;  %v5873_v3 = vmul.f32 %v7306_v22, %v8307_v8  ;;  %v8378_v19 = vadd.f32 %v8351_v7, %v5532_v25  ;;  %v7012_v17 = vpop.f32.mrf.mxu1 }
 0x531   :  { %v7310_v11 = vpop.eup %7309  ;;  %v5830_v21 = vadd.f32 1.0, %v7308_v1  ;;  %7325 = vpow2.f32 %v5796_v30  ;;  %v5537_v29 = vadd.f32 %v7011_v45, %v8425_v26 }
 0x532   :  { %v5877_v24 = vmul.f32 %v7310_v11, %v8309_v15  ;;  %5920 = vst [vmem:[#allocation14 + $0x80] sm:$0xff] %v5873_v3  ;;  %v5739_v9 = vsub.f32 0.0, %v8378_v19  ;;  %v7013_v8 = vpop.f32.mrf.mxu1 }
 0x533   :  { %v7312_v42 = vpop.eup %7311  ;;  %7327 = vrcp.f32 %v5830_v21  ;;  %v7014_v5 = vadd.f32 %v7013_v8, %v7012_v17  ;;  %v8384_v7 = vadd.f32 %v5697_v33, %v5537_v29 }
 0x534   :  { %v7314_v32 = vpop.eup %7313  ;;  %5922 = vst [vmem:[#allocation14 + $0x90] sm:$0xff] %v5877_v24  ;;  %v5879_v10 = vmul.f32 %v7312_v42, %v8317_v52  ;;  %v5798_v15 = vmul.f32 1.442695, %v5739_v9  ;;  %v7015_v49 = vpop.f32.mrf.mxu1 }
 0x535   :  { %v7316_v35 = vpop.eup %7315  ;;  %v5831_v51 = vadd.f32 1.0, %v7314_v32  ;;  %v5740_v55 = vsub.f32 0.0, %v8384_v7  ;;  %v5540_v40 = vadd.f32 %v7014_v5, %v8426_v20 }
 0x536   :  { %5923 = vst [vmem:[#allocation14 + $0x98] sm:$0xff] %v5879_v10  ;;  %v5875_v14 = vmul.f32 %v7316_v35, %v8321_v37  ;;  %v7318_v28 = vpop.eup %7317  ;;  %v7016_v18 = vpop.f32.mrf.mxu1 }
 0x537   :  { %7329 = vrcp.f32 %v5831_v51  ;;  %v5832_v52 = vadd.f32 1.0, %v7318_v28  ;;  %v5800_v43 = vmul.f32 1.442695, %v5740_v55  ;;  %v7017_v4 = vadd.f32 %v7016_v18, %v7015_v49 }
 0x538   :  { %5921 = vst [vmem:[#allocation14 + $0x88] sm:$0xff] %v5875_v14  ;;  %7331 = vpow2.f32 %v5798_v15  ;;  %v7320_v41 = vpop.eup %7319  ;;  %v8389_v23 = vadd.f32 %v5700_v36, %v5540_v40  ;;  %v7018_v58 = vpop.f32.mrf.mxu1 }
 0x539   :  { %v5881_v16 = vmul.f32 %v7320_v41, %v8326_v54  ;;  %7333 = vrcp.f32 %v5832_v52  ;;  %v5545_v37 = vadd.f32 %v7017_v4, %v8219_v46 }
 0x53a   :  { %v7322_v50 = vpop.eup %7321  ;;  %7335 = vpow2.f32 %v5800_v43  ;;  %v5741_v57 = vsub.f32 0.0, %v8389_v23  ;;  %v7019_v44 = vpop.f32.mrf.mxu1 }
 0x53b   :  { %v7324_v56 = vpop.eup %7323  ;;  %5924 = vst [vmem:[#allocation14 + $0xa0] sm:$0xff] %v5881_v16  ;;  %v5833_v13 = vadd.f32 1.0, %v7322_v50  ;;  %v5706_v59 = vadd.f32 %v8366_v34, %v5545_v37  ;;  %v7020_v31 = vadd.f32 %v7019_v44, %v7018_v58 }
 0x53c   :  { %v5883_v0 = vmul.f32 %v7324_v56, %v8334_v48  ;;  %v5802_v62 = vmul.f32 1.442695, %v5741_v57 }
 0x53d   :  { %7337 = vrcp.f32 %v5833_v13  ;;  %v5742_v39 = vsub.f32 0.0, %v5706_v59  ;;  %v5548_v54 = vadd.f32 %v7020_v31, %v8223_v47 }
 0x53e   :  { %v7326_v27 = vpop.eup %7325  ;;  %5925 = vst [vmem:[#allocation14 + $0xa8] sm:$0xff] %v5883_v0  ;;  %7339 = vpow2.f32 %v5802_v62 }
 0x53f   :  { %v5834_v33 = vadd.f32 1.0, %v7326_v27  ;;  %v5804_v22 = vmul.f32 1.442695, %v5742_v39  ;;  %v5709_v61 = vadd.f32 %v7092_v53, %v5548_v54 }
 0x540   :  { %v7328_v46 = vpop.eup %7327 }
 0x541   :  { %v5885_v25 = vmul.f32 %v7328_v46, %v8341_v60  ;;  %7341 = vrcp.f32 %v5834_v33  ;;  %v5743_v63 = vsub.f32 0.0, %v5709_v61 }
 0x542   :  { %7343 = vpow2.f32 %v5804_v22 }
 0x543   :  { %5926 = vst [vmem:[#allocation14 + $0xb0] sm:$0xff] %v5885_v25  ;;  %v5806_v48 = vmul.f32 1.442695, %v5743_v63 }
 0x544   :  { %v7330_v34 = vpop.eup %7329 }
 0x545   :  { %v7332_v1 = vpop.eup %7331  ;;  %v5887_v3 = vmul.f32 %v7330_v34, %v8349_v38  ;;  %7345 = vpow2.f32 %v5806_v48 }
 0x546   :  { %v5835_v30 = vadd.f32 1.0, %v7332_v1  ;;  %v7334_v47 = vpop.eup %7333 }
 0x547   :  { %5927 = vst [vmem:[#allocation14 + $0xb8] sm:$0xff] %v5887_v3  ;;  %v7336_v45 = vpop.eup %7335  ;;  %v5889_v11 = vmul.f32 %v7334_v47, %v8356_v12 }
 0x548   :  { %7347 = vrcp.f32 %v5835_v30  ;;  %v5836_v21 = vadd.f32 1.0, %v7336_v45 }
 0x549   :  { %5928 = vst [vmem:[#allocation14 + $0xc0] sm:$0xff] %v5889_v11 }
 0x54a   :  { %v7338_v60 = vpop.eup %7337  ;;  %7349 = vrcp.f32 %v5836_v21 }
 0x54b   :  { %v7340_v17 = vpop.eup %7339  ;;  %v5891_v24 = vmul.f32 %v7338_v60, %v8361_v2 }
 0x54c   :  { %v5837_v26 = vadd.f32 1.0, %v7340_v17 }
 0x54d   :  { %5929 = vst [vmem:[#allocation14 + $0xc8] sm:$0xff] %v5891_v24 }
 0x54e   :  { %v7342_v29 = vpop.eup %7341  ;;  %7351 = vrcp.f32 %v5837_v26 }
 0x54f   :  { %v7344_v38 = vpop.eup %7343  ;;  %v5893_v53 = vmul.f32 %v7342_v29, %v8371_v6 }
 0x550   :  { %v5838_v42 = vadd.f32 1.0, %v7344_v38 }
 0x551   :  { %5930 = vst [vmem:[#allocation14 + $0xd0] sm:$0xff] %v5893_v53 }
 0x552   :  { %v7346_v9 = vpop.eup %7345  ;;  %7353 = vrcp.f32 %v5838_v42 }
 0x553   :  { %v5839_v12 = vadd.f32 1.0, %v7346_v9 }
 0x555   :  { %v7348_v8 = vpop.eup %7347  ;;  %7355 = vrcp.f32 %v5839_v12 }
 0x556   :  { %v5895_v32 = vmul.f32 %v7348_v8, %v8378_v19 }
 0x557   :  { %v7350_v10 = vpop.eup %7349 }
 0x558   :  { %5931 = vst [vmem:[#allocation14 + $0xd8] sm:$0xff] %v5895_v32  ;;  %v5897_v2 = vmul.f32 %v7350_v10, %v8384_v7 }
 0x55a   :  { %5932 = vst [vmem:[#allocation14 + $0xe0] sm:$0xff] %v5897_v2 }
 0x55b   :  { %v7352_v5 = vpop.eup %7351 }
 0x55c   :  { %v5899_v35 = vmul.f32 %v7352_v5, %v8389_v23 }
 0x55e   :  { %5933 = vst [vmem:[#allocation14 + $0xe8] sm:$0xff] %v5899_v35 }
 0x55f   :  { %v7354_v51 = vpop.eup %7353 }
 0x560   :  { %v5901_v6 = vmul.f32 %v7354_v51, %v5706_v59 }
 0x562   :  { %v7356_v15 = vpop.eup %7355  ;;  %5934 = vst [vmem:[#allocation14 + $0xf0] sm:$0xff] %v5901_v6 }
 0x563   :  { %v5903_v49 = vmul.f32 %v7356_v15, %v5709_v61 }
 0x565   :  { %5935 = vst [vmem:[#allocation14 + $0xf8] sm:$0xff] %v5903_v49 }
 0x566   :  { %7508 = shalt.err (!%p7505_p11)
}
 0x567   :  { %5947 = dma.vmem_to_hbm [thread:$0]  %s5942_s6, 4096, %s8418_s7, [#allocation4], %s7536_s3, %s7536_s3, %s7537_s23  }
 0x568   :  { %7525 = dma.done.wait [#allocation4], 4096  }
 0x569   :  { %7526 = vsyncadd [#allocation4], 4294963200 }
 0x56a   :  { %5951 = vsyncpa [#allocation3], 1 }
 0x56b   :  { %5952 = vsyncpa [#allocation6], 1 }
 0x56c   :  { %5953 = vsyncpa [#allocation9], 1 }
 0x56d   :  { %5954 = vsyncpa [#allocation12], 1 }
 0x56e   :  { %5955 = vsyncpa [#allocation4], 1 }

</bundles_post_ra>
